<compile_context>
chip_gen: v7x
topology: tpu7x:2x2x1
jax: 0.10.0
libtpu: 0.0.40
codegen_flags: <defaults>
</compile_context>

<pallas_src>
import functools

import jax
import jax.numpy as jnp
from jax import lax
from jax.experimental import pallas as pl
from jax.experimental.pallas import tpu as pltpu

F32 = jnp.float32
BF16 = jnp.bfloat16
SQRT_HALF = 0.7071067811865476  # sqrt(0.5)


# ----------------------------------------------------------------------------
# small helpers
# ----------------------------------------------------------------------------
def _round_up(x, m):
    return ((x + m - 1) // m) * m


def _pad_to(x, shape):
    pads = [(0, s - d) for d, s in zip(x.shape, shape)]
    return jnp.pad(x, pads)


def _nbytes(a):
    return a.size * a.dtype.itemsize


def _pick_tile(total, target, quantum):
    """Largest multiple of `quantum` that divides `total`, at most `target`."""
    best = quantum
    t = quantum
    cap = min(total, max(target, quantum))
    while t <= cap:
        if total % t == 0:
            best = t
        t += quantum
    return best


def _vmem_limit(est_bytes):
    """Explicit scoped-VMEM limit: estimate * 1.5 headroom, floor 32 MiB,
    capped below v7x's 64 MiB physical per-TC VMEM."""
    return int(min(max(int(est_bytes * 1.5) + (2 << 20), 32 << 20), 58 << 20))


def _prep_w(w, in_p, out_p):
    """Zero-pad a [in,out] linear weight to lane-dense dims and cast to bf16."""
    return _pad_to(w, (in_p, out_p)).astype(BF16)


def _prep_b(b, out_p):
    """Zero-pad a [1,out] bias; keep f32 (added after the f32-accumulated dot)."""
    return _pad_to(b, (1, out_p)).astype(F32)


def _prep_conv(conv_w, conv_b, hp):
    """conv_w: (L,K,H,2H), conv_b: (L,1,2H)  ->  split GLU halves, im2col layout:
       wa/wg: (L, K*Hp, Hp) bf16 (k-major rows, padded in/out channels are zero),
       ba/bg: (L, 1, Hp) f32."""
    L, K, H, _ = conv_w.shape
    wa = _pad_to(conv_w[..., :H], (L, K, hp, hp)).reshape(L, K * hp, hp).astype(BF16)
    wg = _pad_to(conv_w[..., H:], (L, K, hp, hp)).reshape(L, K * hp, hp).astype(BF16)
    ba = _pad_to(conv_b[..., :H], (L, 1, hp)).astype(F32)
    bg = _pad_to(conv_b[..., H:], (L, 1, hp)).astype(F32)
    return wa, ba, wg, bg


def _bspec(shape):
    """Batch-blocked spec: leading dim tiled by the grid, trailing dims full."""
    return pl.BlockSpec(shape, lambda b: (b,) + (0,) * (len(shape) - 1))


def _wspec(arr, single_buffer):
    """Grid-invariant weight spec. With single_buffer=True the weight is held in a
    single VMEM buffer (no double-buffering) -- it never changes across the grid."""
    idx = lambda b, _n=arr.ndim: (0,) * _n
    if single_buffer:
        return pl.BlockSpec(arr.shape, idx, pipeline_mode=pl.Buffered(1))
    return pl.BlockSpec(arr.shape, idx)


def _call_single_buffered(run_fn):
    """Try single-buffered (Buffered(1)) invariant weights; fall back to default
    double-buffering if this JAX version rejects pipeline_mode."""
    try:
        return jax.block_until_ready(run_fn(True))
    except Exception:  # pragma: no cover - version-dependent fallback
        return jax.block_until_ready(run_fn(False))


# ----------------------------------------------------------------------------
# shared in-kernel conv + GLU block
# ----------------------------------------------------------------------------
def _conv_glu_block(x, xpad_ref, pad_lo, valid_rows, wa, ba, wg, bg):
    """x: (BB, T, Hp) f32.  xpad_ref: (BB, T+K-1, Hp) bf16 VMEM scratch whose pad
    rows already hold the correct pad value.  Only `valid_rows` rows of x are
    written each layer so rows beyond the real sequence stay at the pad value."""
    BB, T, Hp = x.shape
    K = xpad_ref.shape[1] - T + 1
    xpad_ref[:, pad_lo:pad_lo + valid_rows, :] = x[:, :valid_rows, :].astype(BF16)
    xp = xpad_ref[...]
    if Hp >= 512:
        # K accumulated dots per GLU half: skip the (BB*T, K*Hp) im2col temp.
        r0 = xp[:, 0:T, :].reshape(BB * T, Hp)
        a = jnp.dot(r0, wa[0:Hp], preferred_element_type=F32)
        g = jnp.dot(r0, wg[0:Hp], preferred_element_type=F32)
        for k in range(1, K):
            rk = xp[:, k:k + T, :].reshape(BB * T, Hp)
            a = a + jnp.dot(rk, wa[k * Hp:(k + 1) * Hp], preferred_element_type=F32)
            g = g + jnp.dot(rk, wg[k * Hp:(k + 1) * Hp], preferred_element_type=F32)
        a = a + ba
        g = g + bg
    else:
        # im2col: one (BB*T, K*Hp) bf16 buffer, one matmul per GLU half.
        rows = jnp.concatenate([xp[:, k:k + T, :] for k in range(K)], axis=-1)
        rows = rows.reshape(BB * T, K * Hp)
        a = jnp.dot(rows, wa, preferred_element_type=F32) + ba
        g = jnp.dot(rows, wg, preferred_element_type=F32) + bg
    return (a * jax.nn.sigmoid(g)).reshape(BB, T, Hp)


# ----------------------------------------------------------------------------
# encoder kernel
# ----------------------------------------------------------------------------
def _encoder_kernel(num_layers, kernel_size, s_real,
                    emb_ref, w_e2h_ref, b_e2h_ref,
                    cwa_ref, cba_ref, cwg_ref, cbg_ref,
                    w_h2e_ref, b_h2e_ref,
                    conv_ref, comb_ref, xpad_ref):
    scale = F32(SQRT_HALF)
    BB, Se, Ep = emb_ref.shape
    Sp = conv_ref.shape[1]
    Hp = w_e2h_ref.shape[1]
    K = kernel_size
    pad_lo = (K - 1) // 2

    # Symmetric Conv1d zero padding: initialize only the rows the layer loop
    # never rewrites (left pad, right pad, rows past the real sequence length).
    if pad_lo > 0:
        xpad_ref[:, :pad_lo, :] = jnp.zeros((BB, pad_lo, Hp), BF16)
    tail = pad_lo + s_real
    if tail < Se + K - 1:
        xpad_ref[:, tail:, :] = jnp.zeros((BB, Se + K - 1 - tail, Hp), BF16)

    emb = emb_ref[...]                                               # (BB,Se,Ep) f32
    x = jnp.dot(emb.reshape(BB * Se, Ep).astype(BF16), w_e2h_ref[...],
                preferred_element_type=F32) + b_e2h_ref[...]
    x = x.reshape(BB, Se, Hp)

    for l in range(num_layers):
        conved = _conv_glu_block(x, xpad_ref, pad_lo, s_real,
                                 cwa_ref[l], cba_ref[l], cwg_ref[l], cbg_ref[l])
        x = (conved + x) * scale

    conved_e = jnp.dot(x.reshape(BB * Se, Hp).astype(BF16), w_h2e_ref[...],
                       preferred_element_type=F32) + b_h2e_ref[...]
    conved_e = conved_e.reshape(BB, Se, Ep)
    combined_e = (conved_e + emb) * scale
    # Write bf16, already padded to the attention lane axis Sp: the decoder reads
    # these as-is (no XLA pad/cast pass, half the per-step decoder DMA).
    conv_ref[:, :Se, :] = conved_e.astype(BF16)
    comb_ref[:, :Se, :] = combined_e.astype(BF16)
    if Sp > Se:
        conv_ref[:, Se:, :] = jnp.zeros((BB, Sp - Se, Ep), BF16)
        comb_ref[:, Se:, :] = jnp.zeros((BB, Sp - Se, Ep), BF16)


def _run_encoder(emb_src_p, w_e2h, b_e2h, wa, ba, wg, bg, w_h2e, b_h2e,
                 *, num_layers, kernel_size, s_real, s_pad, block_b, single_buffer):
    B_pad, Se, Ep = emb_src_p.shape
    Hp = w_e2h.shape[1]
    K = kernel_size
    Sp = s_pad

    weights = [w_e2h, b_e2h, wa, ba, wg, bg, w_h2e, b_h2e]
    wbuf = 1 if single_buffer else 2
    est = (sum(_nbytes(a) for a in weights) * wbuf
           + block_b * Se * Ep * 4 * 2                      # emb input, double-buffered
           + 2 * block_b * Sp * Ep * 2 * 2                  # two bf16 outputs, double-buffered
           + block_b * (Se + K - 1) * Hp * 2                # bf16 pad scratch
           + block_b * Se * (K * Hp * 2 + 6 * Hp * 4 + 2 * Ep * 4))   # in-kernel temps

    kernel = functools.partial(_encoder_kernel, num_layers, K, s_real)
    return pl.pallas_call(
        kernel,
        grid=(B_pad // block_b,),
        in_specs=[_bspec((block_b, Se, Ep))]
                 + [_wspec(a, single_buffer) for a in weights],
        out_specs=[_bspec((block_b, Sp, Ep)), _bspec((block_b, Sp, Ep))],
        out_shape=[jax.ShapeDtypeStruct((B_pad, Sp, Ep), BF16),
                   jax.ShapeDtypeStruct((B_pad, Sp, Ep), BF16)],
        scratch_shapes=[pltpu.VMEM((block_b, Se + K - 1, Hp), BF16)],
        compiler_params=pltpu.CompilerParams(
            dimension_semantics=("parallel",),
            vmem_limit_bytes=_vmem_limit(est)),
    )(emb_src_p, *weights)


# ----------------------------------------------------------------------------
# decoder kernel (conv + GLU + attention stack, emits out_emb + last-layer attn)
# ----------------------------------------------------------------------------
def _decoder_kernel(num_layers, kernel_size, trg_pad_idx, s_real,
                    emb_ref, encc_ref, enccb_ref,
                    w_e2h_ref, b_e2h_ref,
                    cwa_ref, cba_ref, cwg_ref, cbg_ref,
                    w_ah2e_ref, b_ah2e_ref,
                    w_ae2h_ref, b_ae2h_ref,
                    w_h2e_ref, b_h2e_ref,
                    oemb_ref, attn_ref, xpad_ref):
    scale = F32(SQRT_HALF)
    BB, Tp, Ep = emb_ref.shape
    Sp = encc_ref.shape[1]
    Hp = w_e2h_ref.shape[1]
    K = kernel_size

    # Causal left-pad rows hold trg_pad_idx (torch .fill_(trg_pad_idx)); only the
    # K-1 pad rows need initializing, every layer rewrites rows [K-1:].
    if K > 1:
        xpad_ref[:, :K - 1, :] = jnp.full((BB, K - 1, Hp), float(trg_pad_idx), BF16)

    emb = emb_ref[...]                                               # (BB,Tp,Ep) f32
    enc_cb = enccb_ref[...]                                          # (BB,Sp,Ep) bf16
    # Hoist the (s,e)->(e,s) transpose of enc_conved out of the layer loop: one
    # XLU pass per grid step instead of one per layer.
    enc_c_t = jnp.swapaxes(encc_ref[...], 1, 2)                      # (BB,Ep,Sp) bf16

    x = jnp.dot(emb.reshape(BB * Tp, Ep).astype(BF16), w_e2h_ref[...],
                preferred_element_type=F32) + b_e2h_ref[...]
    x = x.reshape(BB, Tp, Hp)

    # mask encoder positions that only exist because of lane padding (S -> Sp)
    col = lax.broadcasted_iota(jnp.int32, (1, 1, Sp), 2)
    neg_pad = jnp.where(col < s_real, F32(0.0), F32(-1e30))

    attn = None
    for l in range(num_layers):
        conved = _conv_glu_block(x, xpad_ref, K - 1, Tp,
                                 cwa_ref[l], cba_ref[l], cwg_ref[l], cbg_ref[l])
        # ---- attention ----
        conved_emb = jnp.dot(conved.reshape(BB * Tp, Hp).astype(BF16),
                             w_ah2e_ref[...],
                             preferred_element_type=F32) + b_ah2e_ref[...]
        combined = (conved_emb.reshape(BB, Tp, Ep) + emb) * scale
        energy = jnp.einsum('bte,bes->bts', combined.astype(BF16), enc_c_t,
                            preferred_element_type=F32) + neg_pad
        energy = energy - jnp.max(energy, axis=-1, keepdims=True)
        p = jnp.exp(energy)
        attn = p * pl.reciprocal(jnp.sum(p, axis=-1, keepdims=True), approx=True)
        attended = jnp.einsum('bts,bse->bte', attn.astype(BF16), enc_cb,
                              preferred_element_type=F32)
        attended = jnp.dot(attended.reshape(BB * Tp, Ep).astype(BF16),
                           w_ae2h_ref[...],
                           preferred_element_type=F32) + b_ae2h_ref[...]
        conved = (conved + attended.reshape(BB, Tp, Hp)) * scale
        # ---- residual ----
        x = (conved + x) * scale

    out_emb = jnp.dot(x.reshape(BB * Tp, Hp).astype(BF16), w_h2e_ref[...],
                      preferred_element_type=F32) + b_h2e_ref[...]
    oemb_ref[...] = out_emb.reshape(BB, Tp, Ep).astype(BF16)
    attn_ref[...] = attn


def _run_decoder(emb_trg_p, enc_c_p, enc_cb_p,
                 w_e2h, b_e2h, wa, ba, wg, bg,
                 w_ah2e, b_ah2e, w_ae2h, b_ae2h, w_h2e, b_h2e,
                 *, num_layers, kernel_size, trg_pad_idx, s_real, block_b,
                 single_buffer):
    B_pad, Tp, Ep = emb_trg_p.shape
    Sp = enc_c_p.shape[1]
    Hp = w_e2h.shape[1]
    K = kernel_size

    weights = [w_e2h, b_e2h, wa, ba, wg, bg,
               w_ah2e, b_ah2e, w_ae2h, b_ae2h, w_h2e, b_h2e]
    wbuf = 1 if single_buffer else 2
    est = (sum(_nbytes(a) for a in weights) * wbuf
           + block_b * Tp * Ep * 4 * 2                       # emb input
           + 2 * block_b * Sp * Ep * 2 * 2                   # enc_c / enc_cb inputs
           + block_b * Tp * Ep * 2 * 2                       # out_emb output (bf16)
           + block_b * Tp * Sp * 4 * 2                       # attn output
           + block_b * (Tp + K - 1) * Hp * 2                 # bf16 pad scratch
           + block_b * Sp * Ep * 2                           # enc_c_t temp
           + block_b * Tp * (K * Hp * 2 + 6 * Hp * 4 + 4 * Ep * 4 + 3 * Sp * 4))

    kernel = functools.partial(_decoder_kernel, num_layers, K, trg_pad_idx, s_real)
    return pl.pallas_call(
        kernel,
        grid=(B_pad // block_b,),
        in_specs=[_bspec((block_b, Tp, Ep)),
                  _bspec((block_b, Sp, Ep)),
                  _bspec((block_b, Sp, Ep))]
                 + [_wspec(a, single_buffer) for a in weights],
        out_specs=[_bspec((block_b, Tp, Ep)), _bspec((block_b, Tp, Sp))],
        out_shape=[jax.ShapeDtypeStruct((B_pad, Tp, Ep), BF16),
                   jax.ShapeDtypeStruct((B_pad, Tp, Sp), F32)],
        scratch_shapes=[pltpu.VMEM((block_b, Tp + K - 1, Hp), BF16)],
        compiler_params=pltpu.CompilerParams(
            dimension_semantics=("parallel",),
            vmem_limit_bytes=_vmem_limit(est)),
    )(emb_trg_p, enc_c_p, enc_cb_p, *weights)


# ----------------------------------------------------------------------------
# output projection: vocab-OUTER grid so the ExV weight streams from HBM once
# ----------------------------------------------------------------------------
def _fc_kernel(x_ref, w_ref, b_ref, o_ref):
    o_ref[...] = (jnp.dot(x_ref[...], w_ref[...], preferred_element_type=F32)
                  + b_ref[...]).astype(o_ref.dtype)


def _run_fc(rows_bf16, w_fc, b_fc):
    R, Ep = rows_bf16.shape
    Vp = w_fc.shape[1]
    tv = _pick_tile(Vp, 2048, 128)     # wide vocab tile amortizes per-step overhead
    tm = _pick_tile(R, 512, 8)
    # Grid: vocab OUTER, rows INNER -> the W tile block index only changes with the
    # outer axis, so Pallas streams each W tile (hence all of W) from HBM exactly once.
    est = (Ep * tv * 2) * 2 + (tm * Ep * 2) * 2 + (tm * tv * 2) * 2 + tm * tv * 4
    return pl.pallas_call(
        _fc_kernel,
        grid=(Vp // tv, R // tm),
        in_specs=[pl.BlockSpec((tm, Ep), lambda j, i: (i, 0)),
                  pl.BlockSpec((Ep, tv), lambda j, i: (0, j)),
                  pl.BlockSpec((1, tv), lambda j, i: (0, j))],
        out_specs=pl.BlockSpec((tm, tv), lambda j, i: (i, j)),
        out_shape=jax.ShapeDtypeStruct((R, Vp), BF16),
        compiler_params=pltpu.CompilerParams(
            dimension_semantics=("parallel", "parallel"),
            vmem_limit_bytes=_vmem_limit(est)),
    )(rows_bf16, w_fc, b_fc)


# ----------------------------------------------------------------------------
# full seq2seq wrapper
# ----------------------------------------------------------------------------
def cnn_seq2seq_forward(src, trg, params, *, num_layers, kernel_size, trg_pad_idx):
    assert num_layers >= 1
    B, S = src.shape
    T = trg.shape[1]
    E = params['enc_tok_embedding'].shape[1]
    H = params['enc_w_emb2hid'].shape[1]
    V = params['dec_w_fc_out'].shape[1]
    L, K = num_layers, kernel_size

    Ep = _round_up(E, 128)
    Hp = _round_up(H, 128)
    Vp = _round_up(V, 128)
    Se = _round_up(S, 16)      # encoder time axis (sublane aligned, bf16 safe)
    Sp = _round_up(S, 128)     # attention lane axis (lane-dense energy / attn)
    Tp = _round_up(T, 16)

    # Fuse batch into the matmul M dim (~512 rows per grid step); pad B to a
    # multiple of the block and keep >= 2 grid steps when possible so the v7x
    # "parallel" batch axis feeds both TensorCores.
    block_b = max(1, min(B, 512 // max(Se, Tp))) if max(Se, Tp) <= 512 else 1
    B_pad = _round_up(B, block_b)
    while B_pad // block_b < 2 and block_b > 1:
        block_b = max(1, block_b // 2)
        B_pad = _round_up(B, block_b)

    # ---- plain-JAX glue: embedding gathers + zero padding ----
    # TODO(synk): token/positional embedding gathers stay in XLA (no clean tiled
    # Pallas gather at these sizes); dropout is identity (eval mode).
    emb_src = jnp.take(params['enc_tok_embedding'], src, axis=0) \
        + params['enc_pos_embedding'][:S][None]
    emb_src_p = _pad_to(emb_src.astype(F32), (B_pad, Se, Ep))

    emb_trg = jnp.take(params['dec_tok_embedding'], trg, axis=0) \
        + params['dec_pos_embedding'][:T][None]
    emb_trg_p = _pad_to(emb_trg.astype(F32), (B_pad, Tp, Ep))

    # ---- lane-padded bf16 weights / f32 biases ----
    e_wa, e_ba, e_wg, e_bg = _prep_conv(params['enc_conv_w'], params['enc_conv_b'], Hp)
    d_wa, d_ba, d_wg, d_bg = _prep_conv(params['dec_conv_w'], params['dec_conv_b'], Hp)

    enc_c_p, enc_cb_p = _call_single_buffered(lambda sb: _run_encoder(
        emb_src_p,
        _prep_w(params['enc_w_emb2hid'], Ep, Hp), _prep_b(params['enc_b_emb2hid'], Hp),
        e_wa, e_ba, e_wg, e_bg,
        _prep_w(params['enc_w_hid2emb'], Hp, Ep), _prep_b(params['enc_b_hid2emb'], Ep),
        num_layers=L, kernel_size=K, s_real=S, s_pad=Sp, block_b=block_b,
        single_buffer=sb))

    out_emb_p, attn_p = _call_single_buffered(lambda sb: _run_decoder(
        emb_trg_p, enc_c_p, enc_cb_p,
        _prep_w(params['dec_w_emb2hid'], Ep, Hp), _prep_b(params['dec_b_emb2hid'], Hp),
        d_wa, d_ba, d_wg, d_bg,
        _prep_w(params['dec_w_attn_hid2emb'], Hp, Ep), _prep_b(params['dec_b_attn_hid2emb'], Ep),
        _prep_w(params['dec_w_attn_emb2hid'], Ep, Hp), _prep_b(params['dec_b_attn_emb2hid'], Hp),
        _prep_w(params['dec_w_hid2emb'], Hp, Ep), _prep_b(params['dec_b_hid2emb'], Ep),
        num_layers=L, kernel_size=K, trg_pad_idx=trg_pad_idx, s_real=S,
        block_b=block_b, single_buffer=sb))

    # ---- fc_out: vocab-tiled projection, bf16 rows in / bf16 logits out ----
    rows = out_emb_p.reshape(B_pad * Tp, Ep)       # already bf16, rows multiple of 8
    logits_p = _run_fc(rows,
                       _prep_w(params['dec_w_fc_out'], Ep, Vp),
                       _prep_b(params['dec_b_fc_out'], Vp))

    output = logits_p.reshape(B_pad, Tp, Vp)[:B, :T, :V].astype(F32)
    attention = attn_p[:B, :T, :S]
    return output, attention


# ----------------------------------------------------------------------------
# pure-JAX reference (mirrors the PyTorch forward in eval mode; same bf16 casts
# at matmul inputs as the kernels so the comparison is apples-to-apples)
# ----------------------------------------------------------------------------
def _linear_ref(x, w, b):
    return jnp.einsum('...i,io->...o', x.astype(BF16), w.astype(BF16),
                      preferred_element_type=F32) + b


def _conv_glu_ref(xpad, w, b, T):
    K, H = w.shape[0], w.shape[1]
    acc = sum(jnp.einsum('bth,ho->bto', xpad[:, k:k + T].astype(BF16),
                         w[k].astype(BF16), preferred_element_type=F32)
              for k in range(K)) + b
    a, g = acc[..., :H], acc[..., H:]
    return a * jax.nn.sigmoid(g)


def reference_forward(src, trg, params, *, num_layers, kernel_size, trg_pad_idx):
    scale = F32(SQRT_HALF)
    L, K = num_layers, kernel_size

    # encoder
    S = src.shape[1]
    emb_s = jnp.take(params['enc_tok_embedding'], src, axis=0) \
        + params['enc_pos_embedding'][:S][None]
    x = _linear_ref(emb_s, params['enc_w_emb2hid'], params['enc_b_emb2hid'])
    pad = (K - 1) // 2
    for l in range(L):
        xp = jnp.pad(x, ((0, 0), (pad, pad), (0, 0)))
        conved = _conv_glu_ref(xp, params['enc_conv_w'][l], params['enc_conv_b'][l], S)
        x = (conved + x) * scale
    enc_conved = _linear_ref(x, params['enc_w_hid2emb'], params['enc_b_hid2emb'])
    enc_combined = (enc_conved + emb_s) * scale

    # decoder
    B, T = trg.shape
    emb_t = jnp.take(params['dec_tok_embedding'], trg, axis=0) \
        + params['dec_pos_embedding'][:T][None]
    x = _linear_ref(emb_t, params['dec_w_emb2hid'], params['dec_b_emb2hid'])
    H = x.shape[-1]
    enc_c_b, enc_cb_b = enc_conved.astype(BF16), enc_combined.astype(BF16)
    attn = None
    for l in range(L):
        padv = jnp.full((B, K - 1, H), float(trg_pad_idx), F32)
        xp = jnp.concatenate([padv, x], axis=1)
        conved = _conv_glu_ref(xp, params['dec_conv_w'][l], params['dec_conv_b'][l], T)
        conved_emb = _linear_ref(conved, params['dec_w_attn_hid2emb'],
                                 params['dec_b_attn_hid2emb'])
        combined = (conved_emb + emb_t) * scale
        energy = jnp.einsum('bte,bse->bts', combined.astype(BF16), enc_c_b,
                            preferred_element_type=F32)
        attn = jax.nn.softmax(energy, axis=-1)
        attended = jnp.einsum('bts,bse->bte', attn.astype(BF16), enc_cb_b,
                              preferred_element_type=F32)
        attended = _linear_ref(attended, params['dec_w_attn_emb2hid'],
                               params['dec_b_attn_emb2hid'])
        conved = (conved + attended) * scale
        x = (conved + x) * scale
    out_emb = _linear_ref(x, params['dec_w_hid2emb'], params['dec_b_hid2emb'])
    logits = _linear_ref(out_emb, params['dec_w_fc_out'], params['dec_b_fc_out'])
    return logits, attn


# ----------------------------------------------------------------------------
# params + demo
# ----------------------------------------------------------------------------
def init_params(key, *, src_vocab_size, trg_vocab_size, embed_dim, hidden_size,
                num_layers, kernel_size, max_length):
    E, H, L, K = embed_dim, hidden_size, num_layers, kernel_size
    keys = iter(jax.random.split(key, 32))
    n = lambda shape, s=0.1: jax.random.normal(next(keys), shape, F32) * s
    return {
        # encoder
        'enc_tok_embedding': n((src_vocab_size, E)),
        'enc_pos_embedding': n((max_length, E)),
        'enc_w_emb2hid': n((E, H)), 'enc_b_emb2hid': n((1, H), 0.02),
        'enc_w_hid2emb': n((H, E)), 'enc_b_hid2emb': n((1, E), 0.02),
        'enc_conv_w': n((L, K, H, 2 * H)), 'enc_conv_b': n((L, 1, 2 * H), 0.02),
        # decoder
        'dec_tok_embedding': n((trg_vocab_size, E)),
        'dec_pos_embedding': n((max_length, E)),
        'dec_w_emb2hid': n((E, H)), 'dec_b_emb2hid': n((1, H), 0.02),
        'dec_w_hid2emb': n((H, E)), 'dec_b_hid2emb': n((1, E), 0.02),
        'dec_w_attn_hid2emb': n((H, E)), 'dec_b_attn_hid2emb': n((1, E), 0.02),
        'dec_w_attn_emb2hid': n((E, H)), 'dec_b_attn_emb2hid': n((1, H), 0.02),
        'dec_w_fc_out': n((E, trg_vocab_size)), 'dec_b_fc_out': n((1, trg_vocab_size), 0.02),
        'dec_conv_w': n((L, K, H, 2 * H)), 'dec_conv_b': n((L, 1, 2 * H), 0.02),
    }


if __name__ == "__main__":
    B, S, T = 2, 10, 8
    E, H = 32, 32
    V_SRC, V_TRG = 50, 64
    L, K = 2, 3
    MAX_LEN = 100
    TRG_PAD_IDX = 1

    key = jax.random.PRNGKey(0)
    kp, k_src, k_trg = jax.random.split(key, 3)
    params = init_params(kp, src_vocab_size=V_SRC, trg_vocab_size=V_TRG,
                         embed_dim=E, hidden_size=H, num_layers=L,
                         kernel_size=K, max_length=MAX_LEN)
    src = jax.random.randint(k_src, (B, S), 0, V_SRC, dtype=jnp.int32)
    trg = jax.random.randint(k_trg, (B, T), 0, V_TRG, dtype=jnp.int32)

    output, attention = cnn_seq2seq_forward(
        src, trg, params, num_layers=L, kernel_size=K, trg_pad_idx=TRG_PAD_IDX)
    jax.block_until_ready((output, attention))

    ref_out, ref_attn = reference_forward(
        src, trg, params, num_layers=L, kernel_size=K, trg_pad_idx=TRG_PAD_IDX)

    assert output.shape == (B, T, V_TRG) and attention.shape == (B, T, S)
    assert jnp.allclose(output, ref_out, atol=3e-3, rtol=3e-2), \
        f"output mismatch, max abs err {jnp.max(jnp.abs(output - ref_out))}"
    assert jnp.allclose(attention, ref_attn, atol=3e-3, rtol=3e-2), \
        f"attention mismatch, max abs err {jnp.max(jnp.abs(attention - ref_attn))}"

    print("KERNEL_OK")
</pallas_src>

<mosaic_0001>
module attributes {stable_mosaic.version = 11 : i64} {
  func.func @_encoder_kernel(%arg0: i32, %arg1: memref<1x16x128xf32, #tpu.memory_space<vmem>>, %arg2: memref<128x128xbf16, #tpu.memory_space<vmem>>, %arg3: memref<1x128xf32, #tpu.memory_space<vmem>>, %arg4: memref<2x384x128xbf16, #tpu.memory_space<vmem>>, %arg5: memref<2x1x128xf32, #tpu.memory_space<vmem>>, %arg6: memref<2x384x128xbf16, #tpu.memory_space<vmem>>, %arg7: memref<2x1x128xf32, #tpu.memory_space<vmem>>, %arg8: memref<128x128xbf16, #tpu.memory_space<vmem>>, %arg9: memref<1x128xf32, #tpu.memory_space<vmem>>, %arg10: memref<1x128x128xbf16, #tpu.memory_space<vmem>>, %arg11: memref<1x128x128xbf16, #tpu.memory_space<vmem>>, %arg12: memref<1x18x128xbf16, #tpu.memory_space<vmem>>) attributes {dimension_semantics = [#tpu.dimension_semantics<parallel>], iteration_bounds = array<i64: 2>, scalar_prefetch = 0 : i64, scratch_operands = 1 : i64, tpu.core_type = #tpu.core_type<tc>, window_params = [{transform_indices = @transform_0, window_bounds = array<i64: 1, 16, 128>}, {pipeline_mode = #tpu.pipeline_mode<synchronous>, transform_indices = @transform_1, window_bounds = array<i64: 128, 128>}, {pipeline_mode = #tpu.pipeline_mode<synchronous>, transform_indices = @transform_2, window_bounds = array<i64: 1, 128>}, {pipeline_mode = #tpu.pipeline_mode<synchronous>, transform_indices = @transform_3, window_bounds = array<i64: 2, 384, 128>}, {pipeline_mode = #tpu.pipeline_mode<synchronous>, transform_indices = @transform_4, window_bounds = array<i64: 2, 1, 128>}, {pipeline_mode = #tpu.pipeline_mode<synchronous>, transform_indices = @transform_5, window_bounds = array<i64: 2, 384, 128>}, {pipeline_mode = #tpu.pipeline_mode<synchronous>, transform_indices = @transform_6, window_bounds = array<i64: 2, 1, 128>}, {pipeline_mode = #tpu.pipeline_mode<synchronous>, transform_indices = @transform_7, window_bounds = array<i64: 128, 128>}, {pipeline_mode = #tpu.pipeline_mode<synchronous>, transform_indices = @transform_8, window_bounds = array<i64: 1, 128>}, {transform_indices = @transform_9, window_bounds = array<i64: 1, 128, 128>}, {transform_indices = @transform_10, window_bounds = array<i64: 1, 128, 128>}]} {
    %cst = arith.constant 0.000000e+00 : bf16
    %0 = vector.broadcast %cst : bf16 to vector<1x1x128xbf16>
    %c0 = arith.constant 0 : index
    %c0_0 = arith.constant 0 : index
    %c0_1 = arith.constant 0 : index
    %1 = vector.load %arg12[%c0, %c0_0, %c0_1] : memref<1x18x128xbf16, #tpu.memory_space<vmem>>, vector<1x1x128xbf16>
    tpu.vector_store %arg12[%c0, %c0_0, %c0_1], %0 {strides = array<i32>} : memref<1x18x128xbf16, #tpu.memory_space<vmem>>, vector<1x1x128xbf16>,
    %cst_2 = arith.constant 0.000000e+00 : bf16
    %2 = vector.broadcast %cst_2 : bf16 to vector<1x7x128xbf16>
    %c0_3 = arith.constant 0 : index
    %c11 = arith.constant 11 : index
    %c0_4 = arith.constant 0 : index
    %3 = vector.load %arg12[%c0_3, %c11, %c0_4] : memref<1x18x128xbf16, #tpu.memory_space<vmem>>, vector<1x7x128xbf16>
    tpu.vector_store %arg12[%c0_3, %c11, %c0_4], %2 {strides = array<i32>} : memref<1x18x128xbf16, #tpu.memory_space<vmem>>, vector<1x7x128xbf16>,
    %c0_5 = arith.constant 0 : index
    %c0_6 = arith.constant 0 : index
    %c0_7 = arith.constant 0 : index
    %4 = vector.load %arg1[%c0_5, %c0_6, %c0_7] : memref<1x16x128xf32, #tpu.memory_space<vmem>>, vector<1x16x128xf32>
    %5 = vector.shape_cast %4 : vector<1x16x128xf32> to vector<16x128xf32>
    %6 = arith.truncf %5 : vector<16x128xf32> to vector<16x128xbf16>
    %c0_8 = arith.constant 0 : index
    %c0_9 = arith.constant 0 : index
    %7 = vector.load %arg2[%c0_8, %c0_9] : memref<128x128xbf16, #tpu.memory_space<vmem>>, vector<128x128xbf16>
    %cst_10 = arith.constant dense<0.000000e+00> : vector<16x128xf32>
    %8 = tpu.matmul %6, %7, %cst_10 {dimension_numbers = #tpu.dot_dimension_numbers<[1], [0], [0], [1], [0, 0, 1, 1], [], []>} : vector<16x128xbf16>, vector<128x128xbf16>, vector<16x128xf32> -> vector<16x128xf32>
    %c0_11 = arith.constant 0 : index
    %c0_12 = arith.constant 0 : index
    %9 = vector.load %arg3[%c0_11, %c0_12] : memref<1x128xf32, #tpu.memory_space<vmem>>, vector<1x128xf32>
    %10 = vector.broadcast %9 : vector<1x128xf32> to vector<16x128xf32>
    %11 = arith.addf %8, %10 : vector<16x128xf32>
    %12 = vector.shape_cast %11 : vector<16x128xf32> to vector<1x16x128xf32>
    %c0_13 = arith.constant 0 : index
    %c0_14 = arith.constant 0 : index
    %c0_15 = arith.constant 0 : index
    %13 = vector.load %arg4[%c0_13, %c0_14, %c0_15] : memref<2x384x128xbf16, #tpu.memory_space<vmem>>, vector<1x384x128xbf16>
    %14 = vector.shape_cast %13 : vector<1x384x128xbf16> to vector<384x128xbf16>
    %c0_16 = arith.constant 0 : index
    %c0_17 = arith.constant 0 : index
    %c0_18 = arith.constant 0 : index
    %15 = vector.load %arg5[%c0_16, %c0_17, %c0_18] : memref<2x1x128xf32, #tpu.memory_space<vmem>>, vector<1x1x128xf32>
    %16 = vector.shape_cast %15 : vector<1x1x128xf32> to vector<1x128xf32>
    %c0_19 = arith.constant 0 : index
    %c0_20 = arith.constant 0 : index
    %c0_21 = arith.constant 0 : index
    %17 = vector.load %arg6[%c0_19, %c0_20, %c0_21] : memref<2x384x128xbf16, #tpu.memory_space<vmem>>, vector<1x384x128xbf16>
    %18 = vector.shape_cast %17 : vector<1x384x128xbf16> to vector<384x128xbf16>
    %c0_22 = arith.constant 0 : index
    %c0_23 = arith.constant 0 : index
    %c0_24 = arith.constant 0 : index
    %19 = vector.load %arg7[%c0_22, %c0_23, %c0_24] : memref<2x1x128xf32, #tpu.memory_space<vmem>>, vector<1x1x128xf32>
    %20 = vector.shape_cast %19 : vector<1x1x128xf32> to vector<1x128xf32>
    %21 = vector.extract_strided_slice %12 {offsets = [0, 0, 0], sizes = [1, 10, 128], strides = [1, 1, 1]} : vector<1x16x128xf32> to vector<1x10x128xf32>
    %22 = arith.truncf %21 : vector<1x10x128xf32> to vector<1x10x128xbf16>
    %c0_25 = arith.constant 0 : index
    %c1 = arith.constant 1 : index
    %c0_26 = arith.constant 0 : index
    %23 = vector.load %arg12[%c0_25, %c1, %c0_26] : memref<1x18x128xbf16, #tpu.memory_space<vmem>>, vector<1x10x128xbf16>
    tpu.vector_store %arg12[%c0_25, %c1, %c0_26], %22 {strides = array<i32>} : memref<1x18x128xbf16, #tpu.memory_space<vmem>>, vector<1x10x128xbf16>,
    %c0_27 = arith.constant 0 : index
    %c0_28 = arith.constant 0 : index
    %c0_29 = arith.constant 0 : index
    %24 = vector.load %arg12[%c0_27, %c0_28, %c0_29] : memref<1x18x128xbf16, #tpu.memory_space<vmem>>, vector<1x18x128xbf16>
    %25 = vector.extract_strided_slice %24 {offsets = [0, 0, 0], sizes = [1, 16, 128], strides = [1, 1, 1]} : vector<1x18x128xbf16> to vector<1x16x128xbf16>
    %26 = vector.extract_strided_slice %24 {offsets = [0, 1, 0], sizes = [1, 16, 128], strides = [1, 1, 1]} : vector<1x18x128xbf16> to vector<1x16x128xbf16>
    %27 = vector.extract_strided_slice %24 {offsets = [0, 2, 0], sizes = [1, 16, 128], strides = [1, 1, 1]} : vector<1x18x128xbf16> to vector<1x16x128xbf16>
    %28 = tpu.concatenate %25, %26, %27 in 2 : vector<1x16x128xbf16>, vector<1x16x128xbf16>, vector<1x16x128xbf16> -> vector<1x16x384xbf16>
    %29 = vector.shape_cast %28 : vector<1x16x384xbf16> to vector<16x384xbf16>
    %cst_30 = arith.constant dense<0.000000e+00> : vector<16x128xf32>
    %30 = tpu.matmul %29, %14, %cst_30 {dimension_numbers = #tpu.dot_dimension_numbers<[1], [0], [0], [1], [0, 0, 1, 1], [], []>} : vector<16x384xbf16>, vector<384x128xbf16>, vector<16x128xf32> -> vector<16x128xf32>
    %31 = vector.broadcast %16 : vector<1x128xf32> to vector<16x128xf32>
    %32 = arith.addf %30, %31 : vector<16x128xf32>
    %cst_31 = arith.constant dense<0.000000e+00> : vector<16x128xf32>
    %33 = tpu.matmul %29, %18, %cst_31 {dimension_numbers = #tpu.dot_dimension_numbers<[1], [0], [0], [1], [0, 0, 1, 1], [], []>} : vector<16x384xbf16>, vector<384x128xbf16>, vector<16x128xf32> -> vector<16x128xf32>
    %34 = vector.broadcast %20 : vector<1x128xf32> to vector<16x128xf32>
    %35 = arith.addf %33, %34 : vector<16x128xf32>
    %36 = arith.negf %35 : vector<16x128xf32>
    %37 = math.exp %36 : vector<16x128xf32>
    %cst_32 = arith.constant 1.000000e+00 : f32
    %38 = vector.broadcast %cst_32 : f32 to vector<16x128xf32>
    %39 = arith.addf %38, %37 : vector<16x128xf32>
    %40 = arith.divf %38, %39 : vector<16x128xf32>
    %41 = arith.mulf %32, %40 : vector<16x128xf32>
    %42 = vector.shape_cast %41 : vector<16x128xf32> to vector<1x16x128xf32>
    %43 = arith.addf %42, %12 : vector<1x16x128xf32>
    %cst_33 = arith.constant 0.707106769 : f32
    %44 = vector.broadcast %cst_33 : f32 to vector<1x16x128xf32>
    %45 = arith.mulf %43, %44 : vector<1x16x128xf32>
    %c1_34 = arith.constant 1 : index
    %c0_35 = arith.constant 0 : index
    %c0_36 = arith.constant 0 : index
    %46 = vector.load %arg4[%c1_34, %c0_35, %c0_36] : memref<2x384x128xbf16, #tpu.memory_space<vmem>>, vector<1x384x128xbf16>
    %47 = vector.shape_cast %46 : vector<1x384x128xbf16> to vector<384x128xbf16>
    %c1_37 = arith.constant 1 : index
    %c0_38 = arith.constant 0 : index
    %c0_39 = arith.constant 0 : index
    %48 = vector.load %arg5[%c1_37, %c0_38, %c0_39] : memref<2x1x128xf32, #tpu.memory_space<vmem>>, vector<1x1x128xf32>
    %49 = vector.shape_cast %48 : vector<1x1x128xf32> to vector<1x128xf32>
    %c1_40 = arith.constant 1 : index
    %c0_41 = arith.constant 0 : index
    %c0_42 = arith.constant 0 : index
    %50 = vector.load %arg6[%c1_40, %c0_41, %c0_42] : memref<2x384x128xbf16, #tpu.memory_space<vmem>>, vector<1x384x128xbf16>
    %51 = vector.shape_cast %50 : vector<1x384x128xbf16> to vector<384x128xbf16>
    %c1_43 = arith.constant 1 : index
    %c0_44 = arith.constant 0 : index
    %c0_45 = arith.constant 0 : index
    %52 = vector.load %arg7[%c1_43, %c0_44, %c0_45] : memref<2x1x128xf32, #tpu.memory_space<vmem>>, vector<1x1x128xf32>
    %53 = vector.shape_cast %52 : vector<1x1x128xf32> to vector<1x128xf32>
    %54 = vector.extract_strided_slice %45 {offsets = [0, 0, 0], sizes = [1, 10, 128], strides = [1, 1, 1]} : vector<1x16x128xf32> to vector<1x10x128xf32>
    %55 = arith.truncf %54 : vector<1x10x128xf32> to vector<1x10x128xbf16>
    %c0_46 = arith.constant 0 : index
    %c1_47 = arith.constant 1 : index
    %c0_48 = arith.constant 0 : index
    %56 = vector.load %arg12[%c0_46, %c1_47, %c0_48] : memref<1x18x128xbf16, #tpu.memory_space<vmem>>, vector<1x10x128xbf16>
    tpu.vector_store %arg12[%c0_46, %c1_47, %c0_48], %55 {strides = array<i32>} : memref<1x18x128xbf16, #tpu.memory_space<vmem>>, vector<1x10x128xbf16>,
    %c0_49 = arith.constant 0 : index
    %c0_50 = arith.constant 0 : index
    %c0_51 = arith.constant 0 : index
    %57 = vector.load %arg12[%c0_49, %c0_50, %c0_51] : memref<1x18x128xbf16, #tpu.memory_space<vmem>>, vector<1x18x128xbf16>
    %58 = vector.extract_strided_slice %57 {offsets = [0, 0, 0], sizes = [1, 16, 128], strides = [1, 1, 1]} : vector<1x18x128xbf16> to vector<1x16x128xbf16>
    %59 = vector.extract_strided_slice %57 {offsets = [0, 1, 0], sizes = [1, 16, 128], strides = [1, 1, 1]} : vector<1x18x128xbf16> to vector<1x16x128xbf16>
    %60 = vector.extract_strided_slice %57 {offsets = [0, 2, 0], sizes = [1, 16, 128], strides = [1, 1, 1]} : vector<1x18x128xbf16> to vector<1x16x128xbf16>
    %61 = tpu.concatenate %58, %59, %60 in 2 : vector<1x16x128xbf16>, vector<1x16x128xbf16>, vector<1x16x128xbf16> -> vector<1x16x384xbf16>
    %62 = vector.shape_cast %61 : vector<1x16x384xbf16> to vector<16x384xbf16>
    %cst_52 = arith.constant dense<0.000000e+00> : vector<16x128xf32>
    %63 = tpu.matmul %62, %47, %cst_52 {dimension_numbers = #tpu.dot_dimension_numbers<[1], [0], [0], [1], [0, 0, 1, 1], [], []>} : vector<16x384xbf16>, vector<384x128xbf16>, vector<16x128xf32> -> vector<16x128xf32>
    %64 = vector.broadcast %49 : vector<1x128xf32> to vector<16x128xf32>
    %65 = arith.addf %63, %64 : vector<16x128xf32>
    %cst_53 = arith.constant dense<0.000000e+00> : vector<16x128xf32>
    %66 = tpu.matmul %62, %51, %cst_53 {dimension_numbers = #tpu.dot_dimension_numbers<[1], [0], [0], [1], [0, 0, 1, 1], [], []>} : vector<16x384xbf16>, vector<384x128xbf16>, vector<16x128xf32> -> vector<16x128xf32>
    %67 = vector.broadcast %53 : vector<1x128xf32> to vector<16x128xf32>
    %68 = arith.addf %66, %67 : vector<16x128xf32>
    %69 = arith.negf %68 : vector<16x128xf32>
    %70 = math.exp %69 : vector<16x128xf32>
    %cst_54 = arith.constant 1.000000e+00 : f32
    %71 = vector.broadcast %cst_54 : f32 to vector<16x128xf32>
    %72 = arith.addf %71, %70 : vector<16x128xf32>
    %73 = arith.divf %71, %72 : vector<16x128xf32>
    %74 = arith.mulf %65, %73 : vector<16x128xf32>
    %75 = vector.shape_cast %74 : vector<16x128xf32> to vector<1x16x128xf32>
    %76 = arith.addf %75, %45 : vector<1x16x128xf32>
    %cst_55 = arith.constant 0.707106769 : f32
    %77 = vector.broadcast %cst_55 : f32 to vector<1x16x128xf32>
    %78 = arith.mulf %76, %77 : vector<1x16x128xf32>
    %79 = vector.shape_cast %78 : vector<1x16x128xf32> to vector<16x128xf32>
    %80 = arith.truncf %79 : vector<16x128xf32> to vector<16x128xbf16>
    %c0_56 = arith.constant 0 : index
    %c0_57 = arith.constant 0 : index
    %81 = vector.load %arg8[%c0_56, %c0_57] : memref<128x128xbf16, #tpu.memory_space<vmem>>, vector<128x128xbf16>
    %cst_58 = arith.constant dense<0.000000e+00> : vector<16x128xf32>
    %82 = tpu.matmul %80, %81, %cst_58 {dimension_numbers = #tpu.dot_dimension_numbers<[1], [0], [0], [1], [0, 0, 1, 1], [], []>} : vector<16x128xbf16>, vector<128x128xbf16>, vector<16x128xf32> -> vector<16x128xf32>
    %c0_59 = arith.constant 0 : index
    %c0_60 = arith.constant 0 : index
    %83 = vector.load %arg9[%c0_59, %c0_60] : memref<1x128xf32, #tpu.memory_space<vmem>>, vector<1x128xf32>
    %84 = vector.broadcast %83 : vector<1x128xf32> to vector<16x128xf32>
    %85 = arith.addf %82, %84 : vector<16x128xf32>
    %86 = vector.shape_cast %85 : vector<16x128xf32> to vector<1x16x128xf32>
    %87 = arith.addf %86, %4 : vector<1x16x128xf32>
    %cst_61 = arith.constant 0.707106769 : f32
    %88 = vector.broadcast %cst_61 : f32 to vector<1x16x128xf32>
    %89 = arith.mulf %87, %88 : vector<1x16x128xf32>
    %90 = arith.truncf %86 : vector<1x16x128xf32> to vector<1x16x128xbf16>
    %c0_62 = arith.constant 0 : index
    %c0_63 = arith.constant 0 : index
    %c0_64 = arith.constant 0 : index
    %91 = vector.load %arg10[%c0_62, %c0_63, %c0_64] : memref<1x128x128xbf16, #tpu.memory_space<vmem>>, vector<1x16x128xbf16>
    tpu.vector_store %arg10[%c0_62, %c0_63, %c0_64], %90 {strides = array<i32>} : memref<1x128x128xbf16, #tpu.memory_space<vmem>>, vector<1x16x128xbf16>,
    %92 = arith.truncf %89 : vector<1x16x128xf32> to vector<1x16x128xbf16>
    %c0_65 = arith.constant 0 : index
    %c0_66 = arith.constant 0 : index
    %c0_67 = arith.constant 0 : index
    %93 = vector.load %arg11[%c0_65, %c0_66, %c0_67] : memref<1x128x128xbf16, #tpu.memory_space<vmem>>, vector<1x16x128xbf16>
    tpu.vector_store %arg11[%c0_65, %c0_66, %c0_67], %92 {strides = array<i32>} : memref<1x128x128xbf16, #tpu.memory_space<vmem>>, vector<1x16x128xbf16>,
    %cst_68 = arith.constant 0.000000e+00 : bf16
    %94 = vector.broadcast %cst_68 : bf16 to vector<1x112x128xbf16>
    %c0_69 = arith.constant 0 : index
    %c16 = arith.constant 16 : index
    %c0_70 = arith.constant 0 : index
    %95 = vector.load %arg10[%c0_69, %c16, %c0_70] : memref<1x128x128xbf16, #tpu.memory_space<vmem>>, vector<1x112x128xbf16>
    tpu.vector_store %arg10[%c0_69, %c16, %c0_70], %94 {strides = array<i32>} : memref<1x128x128xbf16, #tpu.memory_space<vmem>>, vector<1x112x128xbf16>,
    %cst_71 = arith.constant 0.000000e+00 : bf16
    %96 = vector.broadcast %cst_71 : bf16 to vector<1x112x128xbf16>
    %c0_72 = arith.constant 0 : index
    %c16_73 = arith.constant 16 : index
    %c0_74 = arith.constant 0 : index
    %97 = vector.load %arg11[%c0_72, %c16_73, %c0_74] : memref<1x128x128xbf16, #tpu.memory_space<vmem>>, vector<1x112x128xbf16>
    tpu.vector_store %arg11[%c0_72, %c16_73, %c0_74], %96 {strides = array<i32>} : memref<1x128x128xbf16, #tpu.memory_space<vmem>>, vector<1x112x128xbf16>,
    return
  }
  func.func @transform_0(%arg0: i32) -> (i32, i32, i32) {
    %c0_i32 = arith.constant 0 : i32
    %c0_i32_0 = arith.constant 0 : i32
    %c0_i32_1 = arith.constant 0 : i32
    return %arg0, %c0_i32, %c0_i32_0 : i32, i32, i32
  }
  func.func @transform_1(%arg0: i32) -> (i32, i32) {
    %c0_i32 = arith.constant 0 : i32
    %c0_i32_0 = arith.constant 0 : i32
    %c0_i32_1 = arith.constant 0 : i32
    return %c0_i32, %c0_i32_0 : i32, i32
  }
  func.func @transform_2(%arg0: i32) -> (i32, i32) {
    %c0_i32 = arith.constant 0 : i32
    %c0_i32_0 = arith.constant 0 : i32
    %c0_i32_1 = arith.constant 0 : i32
    return %c0_i32, %c0_i32_0 : i32, i32
  }
  func.func @transform_3(%arg0: i32) -> (i32, i32, i32) {
    %c0_i32 = arith.constant 0 : i32
    %c0_i32_0 = arith.constant 0 : i32
    %c0_i32_1 = arith.constant 0 : i32
    %c0_i32_2 = arith.constant 0 : i32
    return %c0_i32, %c0_i32_0, %c0_i32_1 : i32, i32, i32
  }
  func.func @transform_4(%arg0: i32) -> (i32, i32, i32) {
    %c0_i32 = arith.constant 0 : i32
    %c0_i32_0 = arith.constant 0 : i32
    %c0_i32_1 = arith.constant 0 : i32
    %c0_i32_2 = arith.constant 0 : i32
    return %c0_i32, %c0_i32_0, %c0_i32_1 : i32, i32, i32
  }
  func.func @transform_5(%arg0: i32) -> (i32, i32, i32) {
    %c0_i32 = arith.constant 0 : i32
    %c0_i32_0 = arith.constant 0 : i32
    %c0_i32_1 = arith.constant 0 : i32
    %c0_i32_2 = arith.constant 0 : i32
    return %c0_i32, %c0_i32_0, %c0_i32_1 : i32, i32, i32
  }
  func.func @transform_6(%arg0: i32) -> (i32, i32, i32) {
    %c0_i32 = arith.constant 0 : i32
    %c0_i32_0 = arith.constant 0 : i32
    %c0_i32_1 = arith.constant 0 : i32
    %c0_i32_2 = arith.constant 0 : i32
    return %c0_i32, %c0_i32_0, %c0_i32_1 : i32, i32, i32
  }
  func.func @transform_7(%arg0: i32) -> (i32, i32) {
    %c0_i32 = arith.constant 0 : i32
    %c0_i32_0 = arith.constant 0 : i32
    %c0_i32_1 = arith.constant 0 : i32
    return %c0_i32, %c0_i32_0 : i32, i32
  }
  func.func @transform_8(%arg0: i32) -> (i32, i32) {
    %c0_i32 = arith.constant 0 : i32
    %c0_i32_0 = arith.constant 0 : i32
    %c0_i32_1 = arith.constant 0 : i32
    return %c0_i32, %c0_i32_0 : i32, i32
  }
  func.func @transform_9(%arg0: i32) -> (i32, i32, i32) {
    %c0_i32 = arith.constant 0 : i32
    %c0_i32_0 = arith.constant 0 : i32
    %c0_i32_1 = arith.constant 0 : i32
    return %arg0, %c0_i32, %c0_i32_0 : i32, i32, i32
  }
  func.func @transform_10(%arg0: i32) -> (i32, i32, i32) {
    %c0_i32 = arith.constant 0 : i32
    %c0_i32_0 = arith.constant 0 : i32
    %c0_i32_1 = arith.constant 0 : i32
    return %arg0, %c0_i32, %c0_i32_0 : i32, i32, i32
  }
}

module attributes {stable_mosaic.version = 11 : i64} {
  func.func @_encoder_kernel(%arg0: i32, %arg1: memref<1x16x128xf32, #tpu.memory_space<vmem>>, %arg2: memref<128x128xbf16, #tpu.memory_space<vmem>>, %arg3: memref<1x128xf32, #tpu.memory_space<vmem>>, %arg4: memref<2x384x128xbf16, #tpu.memory_space<vmem>>, %arg5: memref<2x1x128xf32, #tpu.memory_space<vmem>>, %arg6: memref<2x384x128xbf16, #tpu.memory_space<vmem>>, %arg7: memref<2x1x128xf32, #tpu.memory_space<vmem>>, %arg8: memref<128x128xbf16, #tpu.memory_space<vmem>>, %arg9: memref<1x128xf32, #tpu.memory_space<vmem>>, %arg10: memref<1x128x128xbf16, #tpu.memory_space<vmem>>, %arg11: memref<1x128x128xbf16, #tpu.memory_space<vmem>>, %arg12: memref<1x18x128xbf16, #tpu.memory_space<vmem>>) attributes {dimension_semantics = [#tpu.dimension_semantics<parallel>], iteration_bounds = array<i64: 2>, scalar_prefetch = 0 : i64, scratch_operands = 1 : i64, tpu.core_type = #tpu.core_type<tc>, window_params = [{transform_indices = @transform_0, window_bounds = array<i64: 1, 16, 128>}, {pipeline_mode = #tpu.pipeline_mode<synchronous>, transform_indices = @transform_1, window_bounds = array<i64: 128, 128>}, {pipeline_mode = #tpu.pipeline_mode<synchronous>, transform_indices = @transform_2, window_bounds = array<i64: 1, 128>}, {pipeline_mode = #tpu.pipeline_mode<synchronous>, transform_indices = @transform_3, window_bounds = array<i64: 2, 384, 128>}, {pipeline_mode = #tpu.pipeline_mode<synchronous>, transform_indices = @transform_4, window_bounds = array<i64: 2, 1, 128>}, {pipeline_mode = #tpu.pipeline_mode<synchronous>, transform_indices = @transform_5, window_bounds = array<i64: 2, 384, 128>}, {pipeline_mode = #tpu.pipeline_mode<synchronous>, transform_indices = @transform_6, window_bounds = array<i64: 2, 1, 128>}, {pipeline_mode = #tpu.pipeline_mode<synchronous>, transform_indices = @transform_7, window_bounds = array<i64: 128, 128>}, {pipeline_mode = #tpu.pipeline_mode<synchronous>, transform_indices = @transform_8, window_bounds = array<i64: 1, 128>}, {transform_indices = @transform_9, window_bounds = array<i64: 1, 128, 128>}, {transform_indices = @transform_10, window_bounds = array<i64: 1, 128, 128>}]} {
    %cst = arith.constant 0.000000e+00 : bf16
    %0 = vector.broadcast %cst : bf16 to vector<1x1x128xbf16>
    %c0 = arith.constant 0 : index
    %c0_0 = arith.constant 0 : index
    %c0_1 = arith.constant 0 : index
    %1 = vector.load %arg12[%c0, %c0_0, %c0_1] : memref<1x18x128xbf16, #tpu.memory_space<vmem>>, vector<1x1x128xbf16>
    tpu.vector_store %arg12[%c0, %c0_0, %c0_1], %0 {strides = array<i32>} : memref<1x18x128xbf16, #tpu.memory_space<vmem>>, vector<1x1x128xbf16>,
    %cst_2 = arith.constant 0.000000e+00 : bf16
    %2 = vector.broadcast %cst_2 : bf16 to vector<1x7x128xbf16>
    %c0_3 = arith.constant 0 : index
    %c11 = arith.constant 11 : index
    %c0_4 = arith.constant 0 : index
    %3 = vector.load %arg12[%c0_3, %c11, %c0_4] : memref<1x18x128xbf16, #tpu.memory_space<vmem>>, vector<1x7x128xbf16>
    tpu.vector_store %arg12[%c0_3, %c11, %c0_4], %2 {strides = array<i32>} : memref<1x18x128xbf16, #tpu.memory_space<vmem>>, vector<1x7x128xbf16>,
    %c0_5 = arith.constant 0 : index
    %c0_6 = arith.constant 0 : index
    %c0_7 = arith.constant 0 : index
    %4 = vector.load %arg1[%c0_5, %c0_6, %c0_7] : memref<1x16x128xf32, #tpu.memory_space<vmem>>, vector<1x16x128xf32>
    %5 = vector.shape_cast %4 : vector<1x16x128xf32> to vector<16x128xf32>
    %6 = arith.truncf %5 : vector<16x128xf32> to vector<16x128xbf16>
    %c0_8 = arith.constant 0 : index
    %c0_9 = arith.constant 0 : index
    %7 = vector.load %arg2[%c0_8, %c0_9] : memref<128x128xbf16, #tpu.memory_space<vmem>>, vector<128x128xbf16>
    %cst_10 = arith.constant dense<0.000000e+00> : vector<16x128xf32>
    %8 = tpu.matmul %6, %7, %cst_10 {dimension_numbers = #tpu.dot_dimension_numbers<[1], [0], [0], [1], [0, 0, 1, 1], [], []>} : vector<16x128xbf16>, vector<128x128xbf16>, vector<16x128xf32> -> vector<16x128xf32>
    %c0_11 = arith.constant 0 : index
    %c0_12 = arith.constant 0 : index
    %9 = vector.load %arg3[%c0_11, %c0_12] : memref<1x128xf32, #tpu.memory_space<vmem>>, vector<1x128xf32>
    %10 = vector.broadcast %9 : vector<1x128xf32> to vector<16x128xf32>
    %11 = arith.addf %8, %10 : vector<16x128xf32>
    %12 = vector.shape_cast %11 : vector<16x128xf32> to vector<1x16x128xf32>
    %c0_13 = arith.constant 0 : index
    %c0_14 = arith.constant 0 : index
    %c0_15 = arith.constant 0 : index
    %13 = vector.load %arg4[%c0_13, %c0_14, %c0_15] : memref<2x384x128xbf16, #tpu.memory_space<vmem>>, vector<1x384x128xbf16>
    %14 = vector.shape_cast %13 : vector<1x384x128xbf16> to vector<384x128xbf16>
    %c0_16 = arith.constant 0 : index
    %c0_17 = arith.constant 0 : index
    %c0_18 = arith.constant 0 : index
    %15 = vector.load %arg5[%c0_16, %c0_17, %c0_18] : memref<2x1x128xf32, #tpu.memory_space<vmem>>, vector<1x1x128xf32>
    %16 = vector.shape_cast %15 : vector<1x1x128xf32> to vector<1x128xf32>
    %c0_19 = arith.constant 0 : index
    %c0_20 = arith.constant 0 : index
    %c0_21 = arith.constant 0 : index
    %17 = vector.load %arg6[%c0_19, %c0_20, %c0_21] : memref<2x384x128xbf16, #tpu.memory_space<vmem>>, vector<1x384x128xbf16>
    %18 = vector.shape_cast %17 : vector<1x384x128xbf16> to vector<384x128xbf16>
    %c0_22 = arith.constant 0 : index
    %c0_23 = arith.constant 0 : index
    %c0_24 = arith.constant 0 : index
    %19 = vector.load %arg7[%c0_22, %c0_23, %c0_24] : memref<2x1x128xf32, #tpu.memory_space<vmem>>, vector<1x1x128xf32>
    %20 = vector.shape_cast %19 : vector<1x1x128xf32> to vector<1x128xf32>
    %21 = vector.extract_strided_slice %12 {offsets = [0, 0, 0], sizes = [1, 10, 128], strides = [1, 1, 1]} : vector<1x16x128xf32> to vector<1x10x128xf32>
    %22 = arith.truncf %21 : vector<1x10x128xf32> to vector<1x10x128xbf16>
    %c0_25 = arith.constant 0 : index
    %c1 = arith.constant 1 : index
    %c0_26 = arith.constant 0 : index
    %23 = vector.load %arg12[%c0_25, %c1, %c0_26] : memref<1x18x128xbf16, #tpu.memory_space<vmem>>, vector<1x10x128xbf16>
    tpu.vector_store %arg12[%c0_25, %c1, %c0_26], %22 {strides = array<i32>} : memref<1x18x128xbf16, #tpu.memory_space<vmem>>, vector<1x10x128xbf16>,
    %c0_27 = arith.constant 0 : index
    %c0_28 = arith.constant 0 : index
    %c0_29 = arith.constant 0 : index
    %24 = vector.load %arg12[%c0_27, %c0_28, %c0_29] : memref<1x18x128xbf16, #tpu.memory_space<vmem>>, vector<1x18x128xbf16>
    %25 = vector.extract_strided_slice %24 {offsets = [0, 0, 0], sizes = [1, 16, 128], strides = [1, 1, 1]} : vector<1x18x128xbf16> to vector<1x16x128xbf16>
    %26 = vector.extract_strided_slice %24 {offsets = [0, 1, 0], sizes = [1, 16, 128], strides = [1, 1, 1]} : vector<1x18x128xbf16> to vector<1x16x128xbf16>
    %27 = vector.extract_strided_slice %24 {offsets = [0, 2, 0], sizes = [1, 16, 128], strides = [1, 1, 1]} : vector<1x18x128xbf16> to vector<1x16x128xbf16>
    %28 = tpu.concatenate %25, %26, %27 in 2 : vector<1x16x128xbf16>, vector<1x16x128xbf16>, vector<1x16x128xbf16> -> vector<1x16x384xbf16>
    %29 = vector.shape_cast %28 : vector<1x16x384xbf16> to vector<16x384xbf16>
    %cst_30 = arith.constant dense<0.000000e+00> : vector<16x128xf32>
    %30 = tpu.matmul %29, %14, %cst_30 {dimension_numbers = #tpu.dot_dimension_numbers<[1], [0], [0], [1], [0, 0, 1, 1], [], []>} : vector<16x384xbf16>, vector<384x128xbf16>, vector<16x128xf32> -> vector<16x128xf32>
    %31 = vector.broadcast %16 : vector<1x128xf32> to vector<16x128xf32>
    %32 = arith.addf %30, %31 : vector<16x128xf32>
    %cst_31 = arith.constant dense<0.000000e+00> : vector<16x128xf32>
    %33 = tpu.matmul %29, %18, %cst_31 {dimension_numbers = #tpu.dot_dimension_numbers<[1], [0], [0], [1], [0, 0, 1, 1], [], []>} : vector<16x384xbf16>, vector<384x128xbf16>, vector<16x128xf32> -> vector<16x128xf32>
    %34 = vector.broadcast %20 : vector<1x128xf32> to vector<16x128xf32>
    %35 = arith.addf %33, %34 : vector<16x128xf32>
    %36 = arith.negf %35 : vector<16x128xf32>
    %37 = math.exp %36 : vector<16x128xf32>
    %cst_32 = arith.constant 1.000000e+00 : f32
    %38 = vector.broadcast %cst_32 : f32 to vector<16x128xf32>
    %39 = arith.addf %38, %37 : vector<16x128xf32>
    %40 = arith.divf %38, %39 : vector<16x128xf32>
    %41 = arith.mulf %32, %40 : vector<16x128xf32>
    %42 = vector.shape_cast %41 : vector<16x128xf32> to vector<1x16x128xf32>
    %43 = arith.addf %42, %12 : vector<1x16x128xf32>
    %cst_33 = arith.constant 0.707106769 : f32
    %44 = vector.broadcast %cst_33 : f32 to vector<1x16x128xf32>
    %45 = arith.mulf %43, %44 : vector<1x16x128xf32>
    %c1_34 = arith.constant 1 : index
    %c0_35 = arith.constant 0 : index
    %c0_36 = arith.constant 0 : index
    %46 = vector.load %arg4[%c1_34, %c0_35, %c0_36] : memref<2x384x128xbf16, #tpu.memory_space<vmem>>, vector<1x384x128xbf16>
    %47 = vector.shape_cast %46 : vector<1x384x128xbf16> to vector<384x128xbf16>
    %c1_37 = arith.constant 1 : index
    %c0_38 = arith.constant 0 : index
    %c0_39 = arith.constant 0 : index
    %48 = vector.load %arg5[%c1_37, %c0_38, %c0_39] : memref<2x1x128xf32, #tpu.memory_space<vmem>>, vector<1x1x128xf32>
    %49 = vector.shape_cast %48 : vector<1x1x128xf32> to vector<1x128xf32>
    %c1_40 = arith.constant 1 : index
    %c0_41 = arith.constant 0 : index
    %c0_42 = arith.constant 0 : index
    %50 = vector.load %arg6[%c1_40, %c0_41, %c0_42] : memref<2x384x128xbf16, #tpu.memory_space<vmem>>, vector<1x384x128xbf16>
    %51 = vector.shape_cast %50 : vector<1x384x128xbf16> to vector<384x128xbf16>
    %c1_43 = arith.constant 1 : index
    %c0_44 = arith.constant 0 : index
    %c0_45 = arith.constant 0 : index
    %52 = vector.load %arg7[%c1_43, %c0_44, %c0_45] : memref<2x1x128xf32, #tpu.memory_space<vmem>>, vector<1x1x128xf32>
    %53 = vector.shape_cast %52 : vector<1x1x128xf32> to vector<1x128xf32>
    %54 = vector.extract_strided_slice %45 {offsets = [0, 0, 0], sizes = [1, 10, 128], strides = [1, 1, 1]} : vector<1x16x128xf32> to vector<1x10x128xf32>
    %55 = arith.truncf %54 : vector<1x10x128xf32> to vector<1x10x128xbf16>
    %c0_46 = arith.constant 0 : index
    %c1_47 = arith.constant 1 : index
    %c0_48 = arith.constant 0 : index
    %56 = vector.load %arg12[%c0_46, %c1_47, %c0_48] : memref<1x18x128xbf16, #tpu.memory_space<vmem>>, vector<1x10x128xbf16>
    tpu.vector_store %arg12[%c0_46, %c1_47, %c0_48], %55 {strides = array<i32>} : memref<1x18x128xbf16, #tpu.memory_space<vmem>>, vector<1x10x128xbf16>,
    %c0_49 = arith.constant 0 : index
    %c0_50 = arith.constant 0 : index
    %c0_51 = arith.constant 0 : index
    %57 = vector.load %arg12[%c0_49, %c0_50, %c0_51] : memref<1x18x128xbf16, #tpu.memory_space<vmem>>, vector<1x18x128xbf16>
    %58 = vector.extract_strided_slice %57 {offsets = [0, 0, 0], sizes = [1, 16, 128], strides = [1, 1, 1]} : vector<1x18x128xbf16> to vector<1x16x128xbf16>
    %59 = vector.extract_strided_slice %57 {offsets = [0, 1, 0], sizes = [1, 16, 128], strides = [1, 1, 1]} : vector<1x18x128xbf16> to vector<1x16x128xbf16>
    %60 = vector.extract_strided_slice %57 {offsets = [0, 2, 0], sizes = [1, 16, 128], strides = [1, 1, 1]} : vector<1x18x128xbf16> to vector<1x16x128xbf16>
    %61 = tpu.concatenate %58, %59, %60 in 2 : vector<1x16x128xbf16>, vector<1x16x128xbf16>, vector<1x16x128xbf16> -> vector<1x16x384xbf16>
    %62 = vector.shape_cast %61 : vector<1x16x384xbf16> to vector<16x384xbf16>
    %cst_52 = arith.constant dense<0.000000e+00> : vector<16x128xf32>
    %63 = tpu.matmul %62, %47, %cst_52 {dimension_numbers = #tpu.dot_dimension_numbers<[1], [0], [0], [1], [0, 0, 1, 1], [], []>} : vector<16x384xbf16>, vector<384x128xbf16>, vector<16x128xf32> -> vector<16x128xf32>
    %64 = vector.broadcast %49 : vector<1x128xf32> to vector<16x128xf32>
    %65 = arith.addf %63, %64 : vector<16x128xf32>
    %cst_53 = arith.constant dense<0.000000e+00> : vector<16x128xf32>
    %66 = tpu.matmul %62, %51, %cst_53 {dimension_numbers = #tpu.dot_dimension_numbers<[1], [0], [0], [1], [0, 0, 1, 1], [], []>} : vector<16x384xbf16>, vector<384x128xbf16>, vector<16x128xf32> -> vector<16x128xf32>
    %67 = vector.broadcast %53 : vector<1x128xf32> to vector<16x128xf32>
    %68 = arith.addf %66, %67 : vector<16x128xf32>
    %69 = arith.negf %68 : vector<16x128xf32>
    %70 = math.exp %69 : vector<16x128xf32>
    %cst_54 = arith.constant 1.000000e+00 : f32
    %71 = vector.broadcast %cst_54 : f32 to vector<16x128xf32>
    %72 = arith.addf %71, %70 : vector<16x128xf32>
    %73 = arith.divf %71, %72 : vector<16x128xf32>
    %74 = arith.mulf %65, %73 : vector<16x128xf32>
    %75 = vector.shape_cast %74 : vector<16x128xf32> to vector<1x16x128xf32>
    %76 = arith.addf %75, %45 : vector<1x16x128xf32>
    %cst_55 = arith.constant 0.707106769 : f32
    %77 = vector.broadcast %cst_55 : f32 to vector<1x16x128xf32>
    %78 = arith.mulf %76, %77 : vector<1x16x128xf32>
    %79 = vector.shape_cast %78 : vector<1x16x128xf32> to vector<16x128xf32>
    %80 = arith.truncf %79 : vector<16x128xf32> to vector<16x128xbf16>
    %c0_56 = arith.constant 0 : index
    %c0_57 = arith.constant 0 : index
    %81 = vector.load %arg8[%c0_56, %c0_57] : memref<128x128xbf16, #tpu.memory_space<vmem>>, vector<128x128xbf16>
    %cst_58 = arith.constant dense<0.000000e+00> : vector<16x128xf32>
    %82 = tpu.matmul %80, %81, %cst_58 {dimension_numbers = #tpu.dot_dimension_numbers<[1], [0], [0], [1], [0, 0, 1, 1], [], []>} : vector<16x128xbf16>, vector<128x128xbf16>, vector<16x128xf32> -> vector<16x128xf32>
    %c0_59 = arith.constant 0 : index
    %c0_60 = arith.constant 0 : index
    %83 = vector.load %arg9[%c0_59, %c0_60] : memref<1x128xf32, #tpu.memory_space<vmem>>, vector<1x128xf32>
    %84 = vector.broadcast %83 : vector<1x128xf32> to vector<16x128xf32>
    %85 = arith.addf %82, %84 : vector<16x128xf32>
    %86 = vector.shape_cast %85 : vector<16x128xf32> to vector<1x16x128xf32>
    %87 = arith.addf %86, %4 : vector<1x16x128xf32>
    %cst_61 = arith.constant 0.707106769 : f32
    %88 = vector.broadcast %cst_61 : f32 to vector<1x16x128xf32>
    %89 = arith.mulf %87, %88 : vector<1x16x128xf32>
    %90 = arith.truncf %86 : vector<1x16x128xf32> to vector<1x16x128xbf16>
    %c0_62 = arith.constant 0 : index
    %c0_63 = arith.constant 0 : index
    %c0_64 = arith.constant 0 : index
    %91 = vector.load %arg10[%c0_62, %c0_63, %c0_64] : memref<1x128x128xbf16, #tpu.memory_space<vmem>>, vector<1x16x128xbf16>
    tpu.vector_store %arg10[%c0_62, %c0_63, %c0_64], %90 {strides = array<i32>} : memref<1x128x128xbf16, #tpu.memory_space<vmem>>, vector<1x16x128xbf16>,
    %92 = arith.truncf %89 : vector<1x16x128xf32> to vector<1x16x128xbf16>
    %c0_65 = arith.constant 0 : index
    %c0_66 = arith.constant 0 : index
    %c0_67 = arith.constant 0 : index
    %93 = vector.load %arg11[%c0_65, %c0_66, %c0_67] : memref<1x128x128xbf16, #tpu.memory_space<vmem>>, vector<1x16x128xbf16>
    tpu.vector_store %arg11[%c0_65, %c0_66, %c0_67], %92 {strides = array<i32>} : memref<1x128x128xbf16, #tpu.memory_space<vmem>>, vector<1x16x128xbf16>,
    %cst_68 = arith.constant 0.000000e+00 : bf16
    %94 = vector.broadcast %cst_68 : bf16 to vector<1x112x128xbf16>
    %c0_69 = arith.constant 0 : index
    %c16 = arith.constant 16 : index
    %c0_70 = arith.constant 0 : index
    %95 = vector.load %arg10[%c0_69, %c16, %c0_70] : memref<1x128x128xbf16, #tpu.memory_space<vmem>>, vector<1x112x128xbf16>
    tpu.vector_store %arg10[%c0_69, %c16, %c0_70], %94 {strides = array<i32>} : memref<1x128x128xbf16, #tpu.memory_space<vmem>>, vector<1x112x128xbf16>,
    %cst_71 = arith.constant 0.000000e+00 : bf16
    %96 = vector.broadcast %cst_71 : bf16 to vector<1x112x128xbf16>
    %c0_72 = arith.constant 0 : index
    %c16_73 = arith.constant 16 : index
    %c0_74 = arith.constant 0 : index
    %97 = vector.load %arg11[%c0_72, %c16_73, %c0_74] : memref<1x128x128xbf16, #tpu.memory_space<vmem>>, vector<1x112x128xbf16>
    tpu.vector_store %arg11[%c0_72, %c16_73, %c0_74], %96 {strides = array<i32>} : memref<1x128x128xbf16, #tpu.memory_space<vmem>>, vector<1x112x128xbf16>,
    return
  }
  func.func @transform_0(%arg0: i32) -> (i32, i32, i32) {
    %c0_i32 = arith.constant 0 : i32
    %c0_i32_0 = arith.constant 0 : i32
    %c0_i32_1 = arith.constant 0 : i32
    return %arg0, %c0_i32, %c0_i32_0 : i32, i32, i32
  }
  func.func @transform_1(%arg0: i32) -> (i32, i32) {
    %c0_i32 = arith.constant 0 : i32
    %c0_i32_0 = arith.constant 0 : i32
    %c0_i32_1 = arith.constant 0 : i32
    return %c0_i32, %c0_i32_0 : i32, i32
  }
  func.func @transform_2(%arg0: i32) -> (i32, i32) {
    %c0_i32 = arith.constant 0 : i32
    %c0_i32_0 = arith.constant 0 : i32
    %c0_i32_1 = arith.constant 0 : i32
    return %c0_i32, %c0_i32_0 : i32, i32
  }
  func.func @transform_3(%arg0: i32) -> (i32, i32, i32) {
    %c0_i32 = arith.constant 0 : i32
    %c0_i32_0 = arith.constant 0 : i32
    %c0_i32_1 = arith.constant 0 : i32
    %c0_i32_2 = arith.constant 0 : i32
    return %c0_i32, %c0_i32_0, %c0_i32_1 : i32, i32, i32
  }
  func.func @transform_4(%arg0: i32) -> (i32, i32, i32) {
    %c0_i32 = arith.constant 0 : i32
    %c0_i32_0 = arith.constant 0 : i32
    %c0_i32_1 = arith.constant 0 : i32
    %c0_i32_2 = arith.constant 0 : i32
    return %c0_i32, %c0_i32_0, %c0_i32_1 : i32, i32, i32
  }
  func.func @transform_5(%arg0: i32) -> (i32, i32, i32) {
    %c0_i32 = arith.constant 0 : i32
    %c0_i32_0 = arith.constant 0 : i32
    %c0_i32_1 = arith.constant 0 : i32
    %c0_i32_2 = arith.constant 0 : i32
    return %c0_i32, %c0_i32_0, %c0_i32_1 : i32, i32, i32
  }
  func.func @transform_6(%arg0: i32) -> (i32, i32, i32) {
    %c0_i32 = arith.constant 0 : i32
    %c0_i32_0 = arith.constant 0 : i32
    %c0_i32_1 = arith.constant 0 : i32
    %c0_i32_2 = arith.constant 0 : i32
    return %c0_i32, %c0_i32_0, %c0_i32_1 : i32, i32, i32
  }
  func.func @transform_7(%arg0: i32) -> (i32, i32) {
    %c0_i32 = arith.constant 0 : i32
    %c0_i32_0 = arith.constant 0 : i32
    %c0_i32_1 = arith.constant 0 : i32
    return %c0_i32, %c0_i32_0 : i32, i32
  }
  func.func @transform_8(%arg0: i32) -> (i32, i32) {
    %c0_i32 = arith.constant 0 : i32
    %c0_i32_0 = arith.constant 0 : i32
    %c0_i32_1 = arith.constant 0 : i32
    return %c0_i32, %c0_i32_0 : i32, i32
  }
  func.func @transform_9(%arg0: i32) -> (i32, i32, i32) {
    %c0_i32 = arith.constant 0 : i32
    %c0_i32_0 = arith.constant 0 : i32
    %c0_i32_1 = arith.constant 0 : i32
    return %arg0, %c0_i32, %c0_i32_0 : i32, i32, i32
  }
  func.func @transform_10(%arg0: i32) -> (i32, i32, i32) {
    %c0_i32 = arith.constant 0 : i32
    %c0_i32_0 = arith.constant 0 : i32
    %c0_i32_1 = arith.constant 0 : i32
    return %arg0, %c0_i32, %c0_i32_0 : i32, i32, i32
  }
}

</mosaic_0001>

<bundles_post_ra>
// kernel: tpu_custom_call.1
= control target key start
LH: loop header
LB: loop body
LE: loop exit
PB: predicated region body
PF: predicated region fallthrough
CT: control target
= control target key end

     0   :  { %s3762_s0 = inlined_call_operand.hbm [shape: f32[2,16,128], index: 0, kind: input, shape index: {}]   ;;  %s3763_s1 = inlined_call_operand.hbm [shape: bf16[128,128], index: 1, kind: input, shape index: {}]   ;;  %s3764_s2 = inlined_call_operand.vmem [shape: f32[1,128], index: 2, kind: input, shape index: {}]   ;;  %s3765_s3 = inlined_call_operand.hbm [shape: bf16[2,384,128], index: 3, kind: input, shape index: {}]   ;;  %s3766_s4 = inlined_call_operand.vmem [shape: f32[2,1,128], index: 4, kind: input, shape index: {}]   ;;  %s3767_s5 = inlined_call_operand.hbm [shape: bf16[2,384,128], index: 5, kind: input, shape index: {}]   ;;  %s3768_s6 = inlined_call_operand.vmem [shape: f32[2,1,128], index: 6, kind: input, shape index: {}]   ;;  %s3769_s7 = inlined_call_operand.hbm [shape: bf16[128,128], index: 7, kind: input, shape index: {}]   ;;  %s3770_s8 = inlined_call_operand.vmem [shape: f32[1,128], index: 8, kind: input, shape index: {}]   ;;  %s3771_s9 = inlined_call_operand.hbm [shape: bf16[2,128,128], index: 9, kind: output, shape index: {0}]   ;;  %s3772_s10 = inlined_call_operand.hbm [shape: bf16[2,128,128], index: 10, kind: output, shape index: {1}]  }
   0x1   :  { %3780 = sst [smem:[#allocation22_spill]] %s3762_s0 }
   0x2   :  { %3781 = sst [smem:[#allocation23_spill]] %s3771_s9 }
   0x3   :  { %3782 = sst [smem:[#allocation24_spill]] %s3772_s10 }
   0x4   :  { %16 = vsyncpa [#allocation4], 0 }
   0x5   :  { %18 = vsyncpa [#allocation4 + $0x1], 0 }
   0x6   :  { %19 = vsyncpa [#allocation7], 0 }
   0x7   :  { %20 = vsyncpa [#allocation10], 0 }
   0x8   :  { %21 = vsyncpa [#allocation5], 0 }
   0x9   :  { %23 = vsyncpa [#allocation5 + $0x1], 0 }
   0xa   :  { %24 = vsyncpa [#allocation14], 0 }
   0xb   :  { %26 = vsyncpa [#allocation14 + $0x1], 0  ;;  %s3212_s13 = smov 0   ;;  %s3214_s14 = smov 0  }
   0xc   :  { %s3216_s15 = smov 0   ;;  %s3218_s16 = smov 0  }
   0xd LB: > { %3783 = sst [smem:[#allocation20_spill]] %s3127_s13  ;;  %s3233_s17 = sadd.s32 4294967295, %s3139_s16   ;;  %s3139_s16 = sphi %s3218_s16, %s3817_s16   ;;  %s3135_s15 = sphi %s3216_s15, %s3816_s15   ;;  %s3131_s14 = sphi %s3214_s14, %s3815_s14   ;;  %s3127_s13 = sphi %s3212_s13, %s3814_s13  }
   0xe   : > { %s2211_s18 = sadd.s32 4294967294, %s3139_s16   ;;  %p52_p0 = scmp.ne.s32.totalorder %s3131_s14, %s3127_s13 }
   0xf   : > { %p3773_p1 = scmp.eq.s32.totalorder %s3233_s17, 0  ;;  %p250_p3 = scmp.eq.s32.totalorder %s2211_s18, 1 }
  0x10   : > { %p2212_p5 = scmp.ge.s32.totalorder %s3139_s16, 1  ;;  %p283_p7 = scmp.lt.s32.totalorder %s3139_s16, 3 }
  0x11   : > { %p3242_p4 = por %p3773_p1, %p52_p0  ;;  %p3247_p6 = por %p250_p3, %p52_p0 }
  0x12   : > { %p3252_p8 = pnand %p2212_p5, %p283_p7  ;;  %s3141_s22 = smov [#allocation6]  }
  0x13   : > { %s3784_s19 = scalar_select %p3242_p4, 1, 0 }
  0x14   : > { %s3785_s20 = scalar_select %p3247_p6, 1, 0 }
  0x15   : > { %s3787_s21 = scalar_select %p3252_p8, 1, 0 }
  0x16   : > { %3786 = sst [smem:[#allocation21_spill]] %s3785_s20  ;;  %s295_s23 = sshll.u32 %s3141_s22, 4  ;;  %s3256_s23 = int_to_ptr.vmem [resolvable:$true] %s295_s23 }
  0x17   : > { %p2678_p9 = pneg %p3252_p8  ;;  %s3142_s25 = smov [#allocation9]  }
  0x18   : > { %s327_s26 = sshll.u32 %s3142_s25, 4  ;;  %s3143_s27 = smov [#allocation8]   ;;  %s3267_s26 = int_to_ptr.vmem [resolvable:$true] %s327_s26 }
  0x19   : > { %p3263_p11 = pnand %p2678_p9, %p3773_p1  ;;  %s3269_s28 = sshll.u32 %s3143_s27, 4  ;;  %s312_s28 = int_to_ptr.vmem [resolvable:$true] %s3269_s28 }
  0x1a   : > { %s2891_s11 = scalar_lea.hbm %s3763_s1, 1024 }
  0x1b   : > { %p2892_p12 = scmp.ne.s32.totalorder %s3763_s1, %s2891_s11  ;;  %p3279_p13 = pneg %p3263_p11 }
  0x1c   : > { %p2898_p5 = scmp.lt.u32.totalorder %s2891_s11, %s3763_s1 }
  0x1d   : > { %p2894_p0 = pnand %p3279_p13, %p2892_p12 }
  0x1f   : > { %p2895_p3 = pneg %p2894_p0 }
  0x21   : > { %p2900_p7 = pnand %p2898_p5, %p2895_p3 }
  0x23   : > { %2903 = shalt.err (!%p2900_p7)
}
  0x24   : > { %s2904_s29 = scalar_lea.vmem %s3256_s23, 1024  ;;  %p2912_p2 = scmp.lt.s32.totalorder %s3256_s23, %s3256_s23 }
  0x25   : > { %p2905_p9 = scmp.ne.s32.totalorder %s3256_s23, %s2904_s29  ;;  %p2913_p6 = scmp.lt.s32.totalorder %s2904_s29, %s2904_s29 }
  0x27   : > { %p2907_p10 = pnand %p2905_p9, %p3279_p13  ;;  %p2914_p12 = por %p2913_p6, %p2912_p2 }
  0x29   : > { %p2908_p1 = pneg %p2907_p10 }
  0x2b   : > { %p2915_p0 = pnand %p2914_p12, %p2908_p1 }
  0x2d   : > { %2918 = shalt.err (!%p2915_p0)
}
  0x2e   : > { %s3144_s30 = smov 64   ;;  %s3145_s11 = smov 4  }
  0x2f   : > { %2681 = dma.hbm_to_vmem [thread:$0]  (!%p3263_p11), %s3763_s1, 1024, %s3256_s23, [#allocation7], %s3144_s30, %s3144_s30, %s3145_s11  }
  0x30   : > { %s2919_s29 = scalar_lea.hbm %s3767_s5, 6144 }
  0x31   : > { %p2920_p1 = scmp.ne.s32.totalorder %s3767_s5, %s2919_s29  ;;  %p2926_p10 = scmp.lt.u32.totalorder %s2919_s29, %s3767_s5 }
  0x33   : > { %p2922_p2 = pnand %p2920_p1, %p3279_p13 }
  0x35   : > { %p2923_p6 = pneg %p2922_p2 }
  0x37   : > { %p2928_p3 = pnand %p2926_p10, %p2923_p6 }
  0x39   : > { %2931 = shalt.err (!%p2928_p3)
}
  0x3a   : > { %s2932_s23 = scalar_lea.vmem %s3267_s26, 6144  ;;  %p2940_p12 = scmp.lt.s32.totalorder %s3267_s26, %s3267_s26 }
  0x3b   : > { %p2933_p5 = scmp.ne.s32.totalorder %s3267_s26, %s2932_s23  ;;  %p2941_p0 = scmp.lt.s32.totalorder %s2932_s23, %s2932_s23 }
  0x3d   : > { %p2935_p7 = pnand %p2933_p5, %p3279_p13  ;;  %p2942_p1 = por %p2941_p0, %p2940_p12 }
  0x3f   : > { %p2936_p9 = pneg %p2935_p7 }
  0x41   : > { %p2943_p2 = pnand %p2942_p1, %p2936_p9 }
  0x43   : > { %2946 = shalt.err (!%p2943_p2)
}
  0x44   : > { %2687 = dma.hbm_to_vmem [thread:$0]  (!%p3263_p11), %s3767_s5, 6144, %s3267_s26, [#allocation10], %s3144_s30, %s3144_s30, %s3145_s11  }
  0x45   : > { %s2947_s12 = scalar_lea.hbm %s3765_s3, 6144 }
  0x46   : > { %p2948_p6 = scmp.ne.s32.totalorder %s3765_s3, %s2947_s12  ;;  %p2954_p5 = scmp.lt.u32.totalorder %s2947_s12, %s3765_s3 }
  0x48   : > { %p2950_p10 = pnand %p2948_p6, %p3279_p13 }
  0x4a   : > { %p2951_p3 = pneg %p2950_p10 }
  0x4c   : > { %p2956_p7 = pnand %p2954_p5, %p2951_p3 }
  0x4e   : > { %2959 = shalt.err (!%p2956_p7)
}
  0x4f   : > { %s2960_s23 = scalar_lea.vmem %s312_s28, 6144  ;;  %p2968_p1 = scmp.lt.s32.totalorder %s312_s28, %s312_s28 }
  0x50   : > { %p2961_p9 = scmp.ne.s32.totalorder %s312_s28, %s2960_s23  ;;  %p2969_p2 = scmp.lt.s32.totalorder %s2960_s23, %s2960_s23 }
  0x52   : > { %p2963_p12 = pnand %p2961_p9, %p3279_p13  ;;  %p2970_p4 = por %p2969_p2, %p2968_p1 }
  0x54   : > { %p2964_p0 = pneg %p2963_p12 }
  0x56   : > { %p2971_p8 = pnand %p2970_p4, %p2964_p0 }
  0x58   : > { %2974 = shalt.err (!%p2971_p8)
}
  0x59   : > { %2684 = dma.hbm_to_vmem [thread:$0]  (!%p3263_p11), %s3765_s3, 6144, %s312_s28, [#allocation7], %s3144_s30, %s3144_s30, %s3145_s11  }
  0x5a   : > { %s3146_s10 = smov [#allocation11]   ;;  %s2975_s18 = scalar_lea.hbm %s3769_s7, 1024 }
  0x5b   : > { %s343_s13 = sshll.u32 %s3146_s10, 4  ;;  %p2976_p4 = scmp.ne.s32.totalorder %s3769_s7, %s2975_s18  ;;  %s344_s13 = int_to_ptr.vmem [resolvable:$true] %s343_s13 }
  0x5c   : > { %p2982_p10 = scmp.lt.u32.totalorder %s2975_s18, %s3769_s7 }
  0x5d   : > { %p2978_p8 = pnand %p2976_p4, %p3279_p13 }
  0x5f   : > { %p2979_p6 = pneg %p2978_p8 }
  0x61   : > { %p2984_p3 = pnand %p2982_p10, %p2979_p6 }
  0x63   : > { %2987 = shalt.err (!%p2984_p3)
}
  0x64   : > { %s2988_s28 = scalar_lea.vmem %s344_s13, 1024  ;;  %p2996_p12 = scmp.lt.s32.totalorder %s344_s13, %s344_s13 }
  0x65   : > { %p2989_p5 = scmp.ne.s32.totalorder %s344_s13, %s2988_s28  ;;  %p2997_p0 = scmp.lt.s32.totalorder %s2988_s28, %s2988_s28 }
  0x67   : > { %p2991_p7 = pnand %p2989_p5, %p3279_p13  ;;  %p2998_p1 = por %p2997_p0, %p2996_p12 }
  0x69   : > { %p2992_p9 = pneg %p2991_p7 }
  0x6b   : > { %p2999_p2 = pnand %p2998_p1, %p2992_p9 }
  0x6d   : > { %3002 = shalt.err (!%p2999_p2)
}
  0x6e   : > { %2690 = dma.hbm_to_vmem [thread:$0]  (!%p3263_p11), %s3769_s7, 1024, %s344_s13, [#allocation10], %s3144_s30, %s3144_s30, %s3145_s11  }
  0x6f   : > { %s3373_s22 = sadd.s32 1, %s3139_s16   ;;  %s39_s24 = sadd.s32 1, %s3135_s15 }
  0x70   : > { %s36_s10 = ssub.s32 %s3139_s16, %s3373_s22  ;;  %p46_p13 = scmp.ne.s32.totalorder %s3135_s15, %s3131_s14 }
  0x71   : > { %p37_p4 = scmp.eq.s32.totalorder %s36_s10, 0  ;;  %p47_p8 = scmp.eq.s32.totalorder %s3139_s16, 0 }
  0x72   : > { %p3790_p6 = scmp.eq.s32.totalorder %s3233_s17, 1  ;;  %p2706_p3 = scmp.lt.s32.totalorder %s3139_s16, 2 }
  0x73   : > { %s3389_s12 = scalar_select %p37_p4, %s3135_s15, %s39_s24  }
  0x74   : > { %p3383_p10 = por %p3790_p6, %p46_p13  ;;  %p48_p5 = por %p47_p8, %p46_p13 }
  0x75   : > { %s360_s18 = sand.u32 1, %s3135_s15   ;;  %s2373_s30 = sshll.u32 %s3139_s16, 8 }
  0x76   : > { %s2218_s25 = sshll.u32 %s360_s18, 4  ;;  %s3792_s0 = sld [smem:[#allocation22_spill]] }
  0x77   : > { %s364_s29 = scalar_lea.vmem [#allocation3], %s2218_s25  ;;  %p3400_p11 = pnand %p2706_p3, %p48_p5 }
  0x78   : > { %s371_s23 = sshll.u32 %s364_s29, 4  ;;  %s3404_s26 = scalar_lea.sflag [#allocation4], %s360_s18  ;;  %s3398_s23 = int_to_ptr.vmem [resolvable:$true] %s371_s23 }
  0x79   : > { %p3005_p9 = pneg %p3400_p11 }
  0x7c   : > { %s3396_s27 = scalar_lea.hbm %s3792_s0, %s2373_s30  ;;  %s3008_s25 = scalar_lea.hbm %s3792_s0, 512 }
  0x7d   : > { %s3003_s9 = scalar_lea.hbm %s3396_s27, 256  ;;  %p3009_p1 = scmp.lt.u32.totalorder %s3396_s27, %s3792_s0 }
  0x7e   : > { %p3004_p7 = scmp.ne.s32.totalorder %s3396_s27, %s3003_s9  ;;  %p3010_p2 = scmp.lt.u32.totalorder %s3008_s25, %s3003_s9 }
  0x7f   : > { %p3012_p4 = scmp.lt.u32.totalorder %s3003_s9, %s3396_s27 }
  0x80   : > { %p3006_p12 = pnand %p3005_p9, %p3004_p7  ;;  %p3011_p13 = por %p3010_p2, %p3009_p1 }
  0x82   : > { %p3007_p0 = pneg %p3006_p12  ;;  %p3013_p8 = por %p3012_p4, %p3011_p13 }
  0x84   : > { %p3014_p6 = pnand %p3013_p8, %p3007_p0 }
  0x86   : > { %3017 = shalt.err (!%p3014_p6)
}
  0x87   : > { %s3018_s18 = scalar_lea.vmem %s3398_s23, 256  ;;  %s3147_s13 = smov [#allocation3]  }
  0x88   : > { %p3019_p3 = scmp.ne.s32.totalorder %s3398_s23, %s3018_s18  ;;  %s3023_s29 = sshll.u32 %s3147_s13, 4  ;;  %s3024_s29 = int_to_ptr.vmem [resolvable:$false] %s3023_s29 }
  0x89   : > { %s3025_s24 = scalar_lea.vmem %s3024_s29, 512  ;;  %p3026_p12 = scmp.lt.s32.totalorder %s3398_s23, %s3024_s29 }
  0x8a   : > { %p3021_p5 = pnand %p3019_p3, %p3005_p9  ;;  %p3027_p1 = scmp.lt.s32.totalorder %s3025_s24, %s3018_s18 }
  0x8c   : > { %p3022_p7 = pneg %p3021_p5  ;;  %p3028_p2 = por %p3027_p1, %p3026_p12 }
  0x8e   : > { %p3029_p13 = pnand %p3028_p2, %p3022_p7 }
  0x90   : > { %3032 = shalt.err (!%p3029_p13)
}
  0x91   : > { %s3148_s9 = smov 128   ;;  %s3149_s10 = smov 8  }
  0x92   : > { %2694 = dma.hbm_to_vmem [thread:$0]  (!%p3400_p11), %s3396_s27, 256, %s3398_s23, %s3404_s26, %s3148_s9, %s3148_s9, %s3149_s10  }
  0x93   : > { %p3794_p9 = scmp.ne.s32.totalorder %s3787_s21, 0 }
  0x94   : > { %s3435_s25 = sand.u32 (!%p3794_p9), 1, %s3131_s14   ;;  %p3795_p0 = scmp.ne.s32.totalorder (!%p3794_p9), %s3784_s19, 0 }
  0x95   : > { %383 = sbr.rel (%p3794_p9) target bundleno = 1294 (0x50e), region = 56  ;;  %s2222_s30 = sshll.u32 (!%p3794_p9), %s3435_s25, 4 }
  0x96   : > { %s386_s11 = scalar_lea.sflag (!%p3794_p9), [#allocation4], %s3435_s25  ;;  %s3439_s18 = scalar_lea.vmem (!%p3794_p9), [#allocation3], %s2222_s30 }
  0x9c   : > { %3106 = dma.done.wait (%p3795_p0), %s386_s11, 256  }
  0x9d   : > { %3108 = vsyncadd (%p3795_p0), %s386_s11, 4294967040  ;;  %p3796_p11 = scmp.eq.s32.totalorder %s3233_s17, 0 }
  0x9f   : > { %3110 = dma.done.wait (%p3796_p11), [#allocation7], 7168   ;;  %p3797_p4 = pmov %p3796_p11 }
  0xa1   : > { %3112 = vsyncadd (%p3797_p4), [#allocation7], 4294960128  ;;  %p3798_p8 = pmov %p3797_p4 }
  0xa2   : > { %p3799_p6 = pmov %p3797_p4 }
  0xa3   : > { %3114 = dma.done.wait (%p3798_p8), [#allocation10], 7168  }
  0xa4   : > { %3116 = vsyncadd (%p3799_p6), [#allocation10], 4294960128  ;;  %v3150_v0 = vmov 0.0   ;;  %vm3151_vm0 = vmmov 0   ;;  %v2757_v1 = vld [vmem:[#allocation6] sm:$0xff]   ;;  %v2758_v2 = vld [vmem:[#allocation6 + $0x8] sm:$0xff]  }
  0xa5   : > { %2536 = vmatprep.subr.bf16.mxu0 %v3150_v0  ;;  %2552 = vmatprep.mubr.msk.bf16.mxu0 %vm3151_vm0, %v3150_v0  ;;  %vm448_vm1 = vcmask 1040384   ;;  %vm449_vm2 = vsmask.f32 256  ;;  %v2759_v3 = vld [vmem:[#allocation6 + $0x10] sm:$0xff]   ;;  %v2760_v5 = vld [vmem:[#allocation6 + $0x18] sm:$0xff]   ;;  %v2761_v7 = vld [vmem:[#allocation6 + $0x20] sm:$0xff]  }
  0xa6   : > { %2537 = vmatpush3.bf16.msra.mxu0 %v2757_v1  ;;  %vm450_vm3 = vmand %vm448_vm1, %vm449_vm2  ;;  %v451_v4 = vld [vmem:[#allocation2] sm:$0x1]  ;;  %v2762_v8 = vld [vmem:[#allocation6 + $0x28] sm:$0xff]   ;;  %vm454_vm4 = vcmask 1043457   ;;  %vm455_vm5 = vsmask.f32 7942 }
  0xa7   : > { %2538 = vmatprep.subr.bf16.mxu0 %v3150_v0  ;;  %v452_v6 = vsel %vm450_vm3, 0, %v451_v4  ;;  %v2763_v9 = vld [vmem:[#allocation6 + $0x30] sm:$0xff]   ;;  %v2764_v10 = vld [vmem:[#allocation6 + $0x38] sm:$0xff]   ;;  %v2765_v13 = vld [vmem:[#allocation8 + $0x80] sm:$0xff]   ;;  %v3152_v33 = vmov 0   ;;  %vm700_vm7 = vcmask 1043456  }
  0xa8   : > { %453 = vst [vmem:[#allocation2] sm:$0x1] %v452_v6  ;;  %v461_v11 = vld [vmem:[%s3439_s18] sm:$0xff]  ;;  %v462_v12 = vld [vmem:[%s3439_s18 + $0x8] sm:$0xff]  ;;  %vm456_vm6 = vmand %vm454_vm4, %vm455_vm5  ;;  %vm701_vm8 = vsmask.f32 7938 }
  0xa9   : > { %v463_v14 = vpack.c.bf16 %v462_v12, %v461_v11  ;;  %v2766_v15 = vld [vmem:[#allocation8 + $0x40] sm:$0xff]   ;;  %v2767_v16 = vld [vmem:[#allocation8 + $0x88] sm:$0xff]   ;;  %v2770_v19 = vld [vmem:[#allocation8 + $0x90] sm:$0xff]   ;;  %460 = vst [vmem:[#allocation2 + $0x8] sm:$0x1] %v3152_v33  ;;  %vm706_vm11 = vcmask 1041408  }
  0xaa   : > { %2539 = vmatpush3.bf16.msra.mxu0 %v2758_v2  ;;  %v2768_v17 = vld [vmem:[#allocation8] sm:$0xff]   ;;  %2403 = vmatprep.subr.bf16.mxu1 %v2766_v15  ;;  %v2769_v18 = vld [vmem:[#allocation8 + $0x48] sm:$0xff]   ;;  %v457_v21 = vld [vmem:[#allocation2 + $0x4] sm:$0xe]  ;;  %vm680_vm9 = vsmask.f32 4368 }
  0xab   : > { %2540 = vmatprep.subr.bf16.mxu0 %v3150_v0  ;;  %2404 = vmatpush3.bf16.msra.mxu1 %v2768_v17  ;;  %v2771_v20 = vld [vmem:[#allocation8 + $0x8] sm:$0xff]   ;;  %v458_v22 = vsel %vm456_vm6, 0, %v457_v21  ;;  %v2772_v23 = vld [vmem:[#allocation8 + $0x50] sm:$0xff]   ;;  %v2773_v24 = vld [vmem:[#allocation8 + $0x98] sm:$0xff]   ;;  %vm707_vm12 = vsmask.f32 1280 }
  0xac   : > { %2405 = vmatprep.subr.bf16.mxu1 %v2769_v18  ;;  %459 = vst [vmem:[#allocation2 + $0x4] sm:$0xe] %v458_v22  ;;  %v2774_v25 = vld [vmem:[#allocation8 + $0x10] sm:$0xff]   ;;  %v2775_v26 = vld [vmem:[#allocation8 + $0x58] sm:$0xff]   ;;  %v2776_v27 = vld [vmem:[#allocation8 + $0xa0] sm:$0xff]   ;;  %vm738_vm15 = vcmask 1046528  }
  0xad   : > { %v2777_v28 = vld [vmem:[#allocation8 + $0x18] sm:$0xff]   ;;  %v2778_v29 = vld [vmem:[#allocation8 + $0x60] sm:$0xff]   ;;  %v2779_v30 = vld [vmem:[#allocation8 + $0xa8] sm:$0xff]   ;;  %vm724_vm1 = vsmask.f32 7424  ;;  %s2227_s10 = sshll.u32 %s3435_s25, 6 }
  0xae   : > { %2541 = vmatpush3.bf16.msra.mxu0 %v2759_v3  ;;  %v2780_v31 = vld [vmem:[#allocation8 + $0x20] sm:$0xff]   ;;  %v2781_v32 = vld [vmem:[#allocation8 + $0x68] sm:$0xff]   ;;  %v2782_v34 = vld [vmem:[#allocation8 + $0xb0] sm:$0xff]   ;;  %s3600_s30 = scalar_lea.vmem [#allocation12], %s2227_s10  ;;  %s3630_s11 = scalar_lea.vmem [#allocation13], %s2227_s10 }
  0xaf   : > { %2542 = vmatprep.subr.bf16.mxu0 %v3150_v0  ;;  %2406 = vmatpush3.bf16.msra.mxu1 %v2771_v20  ;;  %v2783_v35 = vld [vmem:[#allocation8 + $0x28] sm:$0xff]   ;;  %v2784_v36 = vld [vmem:[#allocation8 + $0x70] sm:$0xff]   ;;  %v2785_v37 = vld [vmem:[#allocation8 + $0xb8] sm:$0xff]   ;;  %2005 = vst [vmem:[%s3600_s30 + $0x8] sm:$0xf] %v3152_v33  ;;  %s2382_s27 = sshll.u32 %s3233_s17, 10 }
  0xb0   : > { %2407 = vmatprep.subr.bf16.mxu1 %v2772_v23  ;;  %v2786_v38 = vld [vmem:[#allocation8 + $0x30] sm:$0xff]   ;;  %v2787_v39 = vld [vmem:[#allocation8 + $0x78] sm:$0xff]   ;;  %v2792_v41 = vld [vmem:[#allocation9 + $0x40] sm:$0xff]   ;;  %2006 = vst [vmem:[%s3600_s30 + $0xc] sm:$0xf] %v3152_v33  ;;  %s2052_s23 = sshll.u32 %s3600_s30, 4  ;;  %s3673_s23 = int_to_ptr.vmem [resolvable:$true] %s2052_s23 }
  0xb1   : > { %v2791_v40 = vld [vmem:[#allocation8 + $0x38] sm:$0xff]   ;;  %v2229_v42 = vld [vmem:[%s3764_s2] ss:$0 sm:$0xff]  ;;  %vm3489_vm10 = vmand %vm700_vm7, %vm701_vm8  ;;  %2007 = vst [vmem:[%s3600_s30 + $0x10] sm:$0xf] %v3152_v33  ;;  %s3806_s13 = sld [smem:[#allocation23_spill]] }
  0xb2   : > { %2543 = vmatpush3.bf16.msra.mxu0 %v2760_v5  ;;  %v703_v56 = vld [vmem:[#allocation2] sm:$0xf]  ;;  %vm3494_vm13 = vmor %vm449_vm2, %vm680_vm9  ;;  %v2789_v5 = vld [vmem:[#allocation2 + $0x8] ss:$0 sps:$4 sm:$0x11]   ;;  %s2034_s10 = scalar_lea.sflag [#allocation5], %s3435_s25 }
  0xb3   : > { %2544 = vmatprep.subr.bf16.mxu0 %v3150_v0  ;;  %2408 = vmatpush3.bf16.msra.mxu1 %v2774_v25  ;;  %vm3500_vm14 = vmand %vm706_vm11, %vm707_vm12  ;;  %v709_v2 = vld [vmem:[#allocation2 + $0x4] sm:$0x3]  ;;  %v2793_v17 = vld [vmem:[#allocation9 + $0x88] sm:$0xff]   ;;  %2008 = vst [vmem:[%s3600_s30 + $0x14] sm:$0xf] %v3152_v33  ;;  %s3033_s19 = scalar_lea.vmem %s3673_s23, 1024 }
  0xb4   : > { %2409 = vmatprep.subr.bf16.mxu1 %v2775_v26  ;;  %v2794_v18 = vld [vmem:[#allocation9] sm:$0xff]   ;;  %v2795_v20 = vld [vmem:[#allocation9 + $0x48] sm:$0xff]   ;;  %v2796_v21 = vld [vmem:[#allocation9 + $0x90] sm:$0xff]   ;;  %2009 = vst [vmem:[%s3600_s30 + $0x18] sm:$0xf] %v3152_v33  ;;  %p3034_p3 = scmp.ne.s32.totalorder %s3673_s23, %s3033_s19  ;;  %s3153_s21 = smov [#allocation12]  }
  0xb5   : > { %v2797_v22 = vld [vmem:[#allocation9 + $0x8] sm:$0xff]   ;;  %v2798_v23 = vld [vmem:[#allocation9 + $0x50] sm:$0xff]   ;;  %v2801_v26 = vld [vmem:[#allocation9 + $0x58] sm:$0xff]   ;;  %2010 = vst [vmem:[%s3600_s30 + $0x1c] sm:$0xf] %v3152_v33  ;;  %s3037_s28 = sshll.u32 %s3153_s21, 4  ;;  %s3038_s28 = int_to_ptr.vmem [resolvable:$false] %s3037_s28 }
  0xb6   : > { %2545 = vmatpush3.bf16.msra.mxu0 %v2761_v7  ;;  %v740_v7 = vrot.slane %v2789_v5, 1  ;;  %v2800_v25 = vld [vmem:[#allocation9 + $0x10] sm:$0xff]   ;;  %2011 = vst [vmem:[%s3600_s30 + $0x20] sm:$0xf] %v3152_v33  ;;  %2012 = vst [vmem:[%s3600_s30 + $0x24] sm:$0xf] %v3152_v33  ;;  %p3035_p5 = pnand %p3034_p3, %p3383_p10  ;;  %p3040_p12 = scmp.lt.s32.totalorder %s3673_s23, %s3038_s28 }
  0xb7   : > { %2546 = vmatprep.subr.bf16.mxu0 %v3150_v0  ;;  %2410 = vmatpush3.bf16.msra.mxu1 %v2777_v28  ;;  %v2803_v28 = vld [vmem:[#allocation9 + $0x18] sm:$0xff]   ;;  %2013 = vst [vmem:[%s3600_s30 + $0x28] sm:$0xf] %v3152_v33  ;;  %2014 = vst [vmem:[%s3600_s30 + $0x2c] sm:$0xf] %v3152_v33  ;;  %s3807_s29 = smov %s3806_s13  ;;  %s3671_s24 = scalar_lea.hbm %s3806_s13, %s2382_s27 }
  0xb8   : > { %2411 = vmatprep.subr.bf16.mxu1 %v2778_v29  ;;  %v2804_v29 = vld [vmem:[#allocation9 + $0x60] sm:$0xff]   ;;  %2015 = vst [vmem:[%s3600_s30 + $0x30] sm:$0xf] %v3152_v33  ;;  %2016 = vst [vmem:[%s3600_s30 + $0x34] sm:$0xf] %v3152_v33  ;;  %p3036_p7 = pneg %p3035_p5  ;;  %s3039_s26 = scalar_lea.vmem %s3038_s28, 2048 }
  0xb9   : > { %2017 = vst [vmem:[%s3600_s30 + $0x38] sm:$0xf] %v3152_v33  ;;  %2018 = vst [vmem:[%s3600_s30 + $0x3c] sm:$0xf] %v3152_v33  ;;  %p3041_p1 = scmp.lt.s32.totalorder %s3039_s26, %s3033_s19 }
  0xba   : > { %2547 = vmatpush3.bf16.msra.mxu0 %v2762_v8  ;;  %v733_v8 = vshll.u32 %v2789_v5, 16  ;;  %v2837_v5 = vld [vmem:[#allocation8 + $0x138] sm:$0xff]   ;;  %2019 = vst [vmem:[%s3630_s11 + $0x8] sm:$0xf] %v3152_v33  ;;  %2020 = vst [vmem:[%s3630_s11 + $0xc] sm:$0xf] %v3152_v33 }
  0xbb   : > { %2548 = vmatprep.subr.bf16.mxu0 %v3150_v0  ;;  %2412 = vmatpush3.bf16.msra.mxu1 %v2780_v31  ;;  %v2806_v31 = vld [vmem:[#allocation9 + $0x20] sm:$0xff]   ;;  %2021 = vst [vmem:[%s3630_s11 + $0x10] sm:$0xf] %v3152_v33  ;;  %2022 = vst [vmem:[%s3630_s11 + $0x14] sm:$0xf] %v3152_v33  ;;  %p3042_p2 = por %p3041_p1, %p3040_p12 }
  0xbc   : > { %2413 = vmatprep.subr.bf16.mxu1 %v2781_v32  ;;  %v735_v15 = vrot.slane %v733_v8, 1  ;;  %v2807_v32 = vld [vmem:[#allocation9 + $0x68] sm:$0xff]   ;;  %2023 = vst [vmem:[%s3630_s11 + $0x18] sm:$0xf] %v3152_v33  ;;  %2024 = vst [vmem:[%s3630_s11 + $0x1c] sm:$0xf] %v3152_v33 }
  0xbd   : > { %2025 = vst [vmem:[%s3630_s11 + $0x20] sm:$0xf] %v3152_v33  ;;  %2026 = vst [vmem:[%s3630_s11 + $0x24] sm:$0xf] %v3152_v33  ;;  %p3043_p13 = pnand %p3042_p2, %p3036_p7 }
  0xbe   : > { %2549 = vmatpush3.bf16.msra.mxu0 %v2763_v9  ;;  %2027 = vst [vmem:[%s3630_s11 + $0x28] sm:$0xf] %v3152_v33  ;;  %2028 = vst [vmem:[%s3630_s11 + $0x2c] sm:$0xf] %v3152_v33 }
  0xbf   : > { %2550 = vmatprep.subr.bf16.mxu0 %v3150_v0  ;;  %2414 = vmatpush3.bf16.msra.mxu1 %v2783_v35  ;;  %v2809_v35 = vld [vmem:[#allocation9 + $0x28] sm:$0xff]   ;;  %2029 = vst [vmem:[%s3630_s11 + $0x30] sm:$0xf] %v3152_v33  ;;  %2030 = vst [vmem:[%s3630_s11 + $0x34] sm:$0xf] %v3152_v33 }
  0xc0   : > { %2415 = vmatprep.subr.bf16.mxu1 %v2784_v36  ;;  %v2810_v36 = vld [vmem:[#allocation9 + $0x70] sm:$0xff]   ;;  %2031 = vst [vmem:[%s3630_s11 + $0x38] sm:$0xf] %v3152_v33  ;;  %2032 = vst [vmem:[%s3630_s11 + $0x3c] sm:$0xf] %v3152_v33  ;;  %v2890_v33 = vld [vmem:[%s3439_s18 + $0x8] sm:$0xff] }
  0xc2   : > { %2551 = vmatpush3.bf16.msra.mxu0 %v2764_v10  ;;  %v2790_v10 = vld [vmem:[#allocation9 + $0x80] sm:$0xff]  }
  0xc3   : > { %2556 = vmatprep.subr.bf16.mxu0 %v3150_v0  ;;  %2416 = vmatpush3.bf16.msra.mxu1 %v2786_v38  ;;  %v2812_v38 = vld [vmem:[#allocation9 + $0x30] sm:$0xff]  }
  0xc4   : > { %2417 = vmatprep.subr.bf16.mxu1 %v2787_v39  ;;  %v2813_v39 = vld [vmem:[#allocation9 + $0x78] sm:$0xff]  }
  0xc5   : > { %2553 = vmatmul.mubr.bf16.vlgmr.msra.gmra.mrb[0].mxu0 %v463_v14 }
  0xc6   : > { %2557 = vmatpush3.bf16.msra.mxu0 %v2765_v13  ;;  %2572 = vmatprep.mubr.msk.bf16.mxu0 %vm3151_vm0, %v3150_v0 }
  0xc7   : > { %2558 = vmatprep.subr.bf16.mxu0 %v3150_v0  ;;  %2418 = vmatpush3.bf16.msra.mxu1 %v2791_v40  ;;  %v2814_v40 = vld [vmem:[#allocation9 + $0x38] sm:$0xff]  }
  0xc8   : > { %2434 = vmatprep.subr.bf16.mxu1 %v2792_v41  ;;  %v2815_v41 = vld [vmem:[#allocation8 + $0x140] sm:$0xff]  }
  0xca   : > { %2559 = vmatpush3.bf16.msra.mxu0 %v2767_v16 }
  0xcb   : > { %2560 = vmatprep.subr.bf16.mxu0 %v3150_v0 }
  0xce   : > { %2561 = vmatpush3.bf16.msra.mxu0 %v2770_v19 }
  0xcf   : > { %2562 = vmatprep.subr.bf16.mxu0 %v3150_v0 }
  0xd2   : > { %2563 = vmatpush3.bf16.msra.mxu0 %v2773_v24  ;;  %v2799_v24 = vld [vmem:[#allocation9 + $0x98] sm:$0xff]  }
  0xd3   : > { %2564 = vmatprep.subr.bf16.mxu0 %v3150_v0 }
  0xd6   : > { %2565 = vmatpush3.bf16.msra.mxu0 %v2776_v27  ;;  %v2802_v27 = vld [vmem:[#allocation9 + $0xa0] sm:$0xff]  }
  0xd7   : > { %2566 = vmatprep.subr.bf16.mxu0 %v3150_v0 }
  0xda   : > { %2567 = vmatpush3.bf16.msra.mxu0 %v2779_v30  ;;  %v2805_v30 = vld [vmem:[#allocation9 + $0xa8] sm:$0xff]  }
  0xdb   : > { %2568 = vmatprep.subr.bf16.mxu0 %v3150_v0 }
  0xde   : > { %2569 = vmatpush3.bf16.msra.mxu0 %v2782_v34  ;;  %v2808_v34 = vld [vmem:[#allocation9 + $0xb0] sm:$0xff]  }
  0xdf   : > { %2570 = vmatprep.subr.bf16.mxu0 %v3150_v0 }
  0xe2   : > { %2571 = vmatpush3.bf16.msra.mxu0 %v2785_v37  ;;  %v2811_v37 = vld [vmem:[#allocation9 + $0xb8] sm:$0xff]  }
  0xe3   : > { %2576 = vmatprep.subr.bf16.mxu0 %v3150_v0 }
 0x198   : > { %v569_v43 = vpop.f32.mrb[0].mxu0 }
 0x199   : > { %v3481_v44 = vadd.f32 %v2229_v42, %v569_v43  ;;  %v2554_v45 = vpop.f32.mrb[1].mxu0  ;;  %v2817_v43 = vld [vmem:[#allocation8 + $0x148] sm:$0xff]  }
 0x19a   : > { %v572_v46 = vpop.f32.mrb[2].mxu0  ;;  %v2818_v45 = vld [vmem:[#allocation8 + $0xc0] sm:$0xff]  }
 0x19b   : > { %v2374_v47 = vpack.c.bf16 %v3481_v44, %v3481_v44  ;;  %v3485_v48 = vadd.f32 %v2229_v42, %v572_v46  ;;  %v2555_v49 = vpop.f32.mrb[3].mxu0  ;;  %v2816_v42 = vld [vmem:[#allocation8 + $0x100] sm:$0xff]   ;;  %v2819_v46 = vld [vmem:[#allocation8 + $0x108] sm:$0xff]  }
 0x19c   : > { %v2821_v49 = vld [vmem:[#allocation8 + $0xc8] sm:$0xff]  }
 0x19d   : > { %v683_v50 = vshrl.u32 %v2374_v47, 16  ;;  %v2375_v51 = vpack.c.bf16 %v3485_v48, %v3485_v48  ;;  %v686_v53 = vshll.u32 %v2374_v47, 16  ;;  %v2820_v47 = vld [vmem:[#allocation8 + $0x150] sm:$0xff]  }
 0x19f   : > { %v685_v52 = vrot.slane %v683_v50, 7  ;;  %v691_v54 = vshrl.u32 %v2375_v51, 16  ;;  %v694_v59 = vshll.u32 %v2375_v51, 16  ;;  %v2822_v50 = vld [vmem:[#allocation8 + $0x110] sm:$0xff]   ;;  %v2823_v51 = vld [vmem:[#allocation8 + $0x158] sm:$0xff]  }
 0x1a1   : > { %v688_v57 = vor.u32 %v686_v53, %v685_v52  ;;  %v693_v58 = vrot.slane %v691_v54, 7  ;;  %v689_v61 = vrot.slane %v685_v52, 4  ;;  %v2824_v52 = vld [vmem:[#allocation8 + $0xd0] sm:$0xff]   ;;  %v2825_v53 = vld [vmem:[#allocation8 + $0x118] sm:$0xff]   ;;  %v2826_v54 = vld [vmem:[#allocation8 + $0x160] sm:$0xff]  }
 0x1a3   : > { %v704_v62 = vsel %vm3489_vm10, %v688_v57, %v703_v56  ;;  %v696_v63 = vor.u32 %v694_v59, %v693_v58  ;;  %v2827_v56 = vld [vmem:[#allocation8 + $0xd8] sm:$0xff]   ;;  %v2828_v57 = vld [vmem:[#allocation8 + $0x120] sm:$0xff]   ;;  %v2829_v58 = vld [vmem:[#allocation8 + $0x168] sm:$0xff]  }
 0x1a4   : > { %705 = vst [vmem:[#allocation2] sm:$0xf] %v704_v62  ;;  %v2830_v59 = vld [vmem:[#allocation8 + $0xe0] sm:$0xff]   ;;  %v2832_v62 = vld [vmem:[#allocation8 + $0x170] sm:$0xff]  }
 0x1a5   : > { %v697_v3 = vsel %vm3494_vm13, %v689_v61, %v696_v63  ;;  %v2831_v61 = vld [vmem:[#allocation8 + $0x128] sm:$0xff]  }
 0x1a6   : > { %v710_v4 = vsel %vm3500_vm14, %v697_v3, %v709_v2  ;;  %v2833_v63 = vld [vmem:[#allocation8 + $0xe8] sm:$0xff]   ;;  %v2834_v2 = vld [vmem:[#allocation8 + $0x130] sm:$0xff]   ;;  %v2835_v3 = vld [vmem:[#allocation8 + $0x178] sm:$0xff]  }
 0x1a7   : > { %711 = vst [vmem:[#allocation2 + $0x4] sm:$0x3] %v710_v4  ;;  %v2836_v4 = vld [vmem:[#allocation8 + $0xf0] sm:$0xff]  }
 0x1ae   : > { %v3508_v6 = vld [vmem:[#allocation2] sm:$0xff]  }
 0x1af   : > { %v739_v9 = vrot.slane %v3508_v6, 1  ;;  %v728_v11 = vshll.u32 %v3508_v6, 16  ;;  %v726_v13 = vshrl.u32 %v3508_v6, 16 }
 0x1b1   : > { %v3513_v12 = vsel %vm738_vm15, %v739_v9, %v740_v7  ;;  %v730_v14 = vrot.slane %v728_v11, 1  ;;  %v2842_v7 = vld [vmem:[#allocation9 + $0x100] sm:$0xff]  }
 0x1b2   : > { %2573 = vmatmul.mubr.bf16.vlgmr.msra.gmra.mrb[4].mxu0 %v3513_v12 }
 0x1b3   : > { %2577 = vmatpush3.bf16.msra.mxu0 %v2790_v10  ;;  %v731_v16 = vor.u32 %v730_v14, %v726_v13  ;;  %2592 = vmatprep.mubr.msk.bf16.mxu0 %vm3151_vm0, %v3150_v0  ;;  %v2242_v13 = vld [vmem:[%s3766_s4] ss:$0 sm:$0xff] }
 0x1b4   : > { %2578 = vmatprep.subr.bf16.mxu0 %v3150_v0 }
 0x1b5   : > { %v736_v19 = vsel %vm724_vm1, %v731_v16, %v735_v15 }
 0x1b6   : > { %925 = vmatprep.mubr.bf16.mxu1 %v736_v19 }
 0x1b7   : > { %2579 = vmatpush3.bf16.msra.mxu0 %v2793_v17  ;;  %926 = vmatmul.mubr.bf16.vlgmr.msra.gmra.mrb[0].mxu1 %v3508_v6 }
 0x1b8   : > { %2435 = vmatpush3.bf16.msra.mxu1 %v2794_v18  ;;  %1157 = vmatprep.mubr.bf16.mxu1 %v736_v19 }
 0x1b9   : > { %2580 = vmatprep.subr.bf16.mxu0 %v3150_v0  ;;  %2436 = vmatprep.subr.bf16.mxu1 %v2795_v20 }
 0x1bb   : > { %2581 = vmatpush3.bf16.msra.mxu0 %v2796_v21 }
 0x1bc   : > { %2437 = vmatpush3.bf16.msra.mxu1 %v2797_v22  ;;  %2582 = vmatprep.subr.bf16.mxu0 %v3150_v0 }
 0x1bd   : > { %2438 = vmatprep.subr.bf16.mxu1 %v2798_v23 }
 0x1bf   : > { %2583 = vmatpush3.bf16.msra.mxu0 %v2799_v24 }
 0x1c0   : > { %2439 = vmatpush3.bf16.msra.mxu1 %v2800_v25  ;;  %2584 = vmatprep.subr.bf16.mxu0 %v3150_v0 }
 0x1c1   : > { %2440 = vmatprep.subr.bf16.mxu1 %v2801_v26 }
 0x1c3   : > { %2585 = vmatpush3.bf16.msra.mxu0 %v2802_v27 }
 0x1c4   : > { %2441 = vmatpush3.bf16.msra.mxu1 %v2803_v28  ;;  %2586 = vmatprep.subr.bf16.mxu0 %v3150_v0  ;;  %v2267_v28 = vld [vmem:[%s3768_s6] ss:$0 sm:$0xff] }
 0x1c5   : > { %2442 = vmatprep.subr.bf16.mxu1 %v2804_v29 }
 0x1c7   : > { %2587 = vmatpush3.bf16.msra.mxu0 %v2805_v30 }
 0x1c8   : > { %2443 = vmatpush3.bf16.msra.mxu1 %v2806_v31  ;;  %2588 = vmatprep.subr.bf16.mxu0 %v3150_v0 }
 0x1c9   : > { %2444 = vmatprep.subr.bf16.mxu1 %v2807_v32 }
 0x1cb   : > { %2589 = vmatpush3.bf16.msra.mxu0 %v2808_v34 }
 0x1cc   : > { %2445 = vmatpush3.bf16.msra.mxu1 %v2809_v35  ;;  %2590 = vmatprep.subr.bf16.mxu0 %v3150_v0 }
 0x1cd   : > { %2446 = vmatprep.subr.bf16.mxu1 %v2810_v36 }
 0x1cf   : > { %2591 = vmatpush3.bf16.msra.mxu0 %v2811_v37 }
 0x1d0   : > { %2447 = vmatpush3.bf16.msra.mxu1 %v2812_v38  ;;  %2596 = vmatprep.subr.bf16.mxu0 %v3150_v0 }
 0x1d1   : > { %2448 = vmatprep.subr.bf16.mxu1 %v2813_v39 }
 0x1d2   : > { %2593 = vmatmul.mubr.bf16.vlgmr.msra.gmra.mrb[8].mxu0 %v3513_v12 }
 0x1d3   : > { %2612 = vmatprep.mubr.msk.bf16.mxu0 %vm3151_vm0, %v3150_v0  ;;  %2597 = vmatpush3.bf16.msra.mxu0 %v2815_v41 }
 0x1d4   : > { %2449 = vmatpush3.bf16.msra.mxu1 %v2814_v40  ;;  %2598 = vmatprep.subr.bf16.mxu0 %v3150_v0 }
 0x1d5   : > { %2465 = vmatprep.subr.bf16.mxu1 %v2816_v42 }
 0x1d7   : > { %1158 = vmatmul.mubr.bf16.vlgmr.msra.gmra.mrb[4].mxu1 %v3508_v6  ;;  %2599 = vmatpush3.bf16.msra.mxu0 %v2817_v43  ;;  %v2841_v6 = vld [vmem:[#allocation8 + $0xf8] sm:$0xff]  }
 0x1d8   : > { %2466 = vmatpush3.bf16.msra.mxu1 %v2818_v45  ;;  %2600 = vmatprep.subr.bf16.mxu0 %v3150_v0 }
 0x1d9   : > { %2467 = vmatprep.subr.bf16.mxu1 %v2819_v46 }
 0x1db   : > { %2601 = vmatpush3.bf16.msra.mxu0 %v2820_v47 }
 0x1dc   : > { %2468 = vmatpush3.bf16.msra.mxu1 %v2821_v49  ;;  %2602 = vmatprep.subr.bf16.mxu0 %v3150_v0 }
 0x1dd   : > { %2469 = vmatprep.subr.bf16.mxu1 %v2822_v50 }
 0x1df   : > { %2603 = vmatpush3.bf16.msra.mxu0 %v2823_v51 }
 0x1e0   : > { %2470 = vmatpush3.bf16.msra.mxu1 %v2824_v52  ;;  %2604 = vmatprep.subr.bf16.mxu0 %v3150_v0 }
 0x1e1   : > { %2471 = vmatprep.subr.bf16.mxu1 %v2825_v53 }
 0x1e3   : > { %2605 = vmatpush3.bf16.msra.mxu0 %v2826_v54 }
 0x1e4   : > { %2472 = vmatpush3.bf16.msra.mxu1 %v2827_v56  ;;  %2606 = vmatprep.subr.bf16.mxu0 %v3150_v0 }
 0x1e5   : > { %2473 = vmatprep.subr.bf16.mxu1 %v2828_v57 }
 0x1e7   : > { %2607 = vmatpush3.bf16.msra.mxu0 %v2829_v58 }
 0x1e8   : > { %2474 = vmatpush3.bf16.msra.mxu1 %v2830_v59  ;;  %2608 = vmatprep.subr.bf16.mxu0 %v3150_v0 }
 0x1e9   : > { %2475 = vmatprep.subr.bf16.mxu1 %v2831_v61 }
 0x1eb   : > { %2609 = vmatpush3.bf16.msra.mxu0 %v2832_v62 }
 0x1ec   : > { %2476 = vmatpush3.bf16.msra.mxu1 %v2833_v63  ;;  %2610 = vmatprep.subr.bf16.mxu0 %v3150_v0 }
 0x1ed   : > { %2477 = vmatprep.subr.bf16.mxu1 %v2834_v2 }
 0x1ef   : > { %2611 = vmatpush3.bf16.msra.mxu0 %v2835_v3  ;;  %v1351_v3 = vld [vmem:[#allocation2] sm:$0xf] }
 0x1f0   : > { %2478 = vmatpush3.bf16.msra.mxu1 %v2836_v4  ;;  %2616 = vmatprep.subr.bf16.mxu0 %v3150_v0 }
 0x1f1   : > { %2479 = vmatprep.subr.bf16.mxu1 %v2837_v5 }
 0x1f4   : > { %2480 = vmatpush3.bf16.msra.mxu1 %v2841_v6 }
 0x1f5   : > { %2496 = vmatprep.subr.bf16.mxu1 %v2842_v7  ;;  %v1354_v7 = vld [vmem:[#allocation2 + $0x4] sm:$0x3] }
 0x285   : > { %v968_v8 = vpop.f32.mrb[4].mxu0 }
 0x286   : > { %v2574_v9 = vpop.f32.mrb[5].mxu0 }
 0x287   : > { %v971_v10 = vpop.f32.mrb[6].mxu0  ;;  %v2839_v9 = vld [vmem:[#allocation2 + $0x8] ss:$0 sps:$4 sm:$0x11]  }
 0x288   : > { %v2575_v11 = vpop.f32.mrb[7].mxu0 }
 0x289   : > { %v1383_v11 = vrot.slane %v2839_v9, 1 }
 0x28a   : > { %v2419_v12 = vpop.f32.mrb[0].mxu1 }
 0x28b   : > { %v2420_v14 = vpop.f32.mrb[1].mxu1 }
 0x28c   : > { %v2421_v15 = vadd.f32 %v2420_v14, %v2419_v12  ;;  %v2422_v16 = vpop.f32.mrb[2].mxu1  ;;  %v1377_v12 = vshll.u32 %v2839_v9, 16  ;;  %v2840_v14 = vld [vmem:[#allocation9 + $0x140] sm:$0xff]  }
 0x28d   : > { %v2423_v17 = vpop.f32.mrb[3].mxu1 }
 0x28e   : > { %v928_v18 = vadd.f32 %v2421_v15, %v2242_v13  ;;  %v2424_v19 = vadd.f32 %v2423_v17, %v2422_v16  ;;  %v1379_v17 = vrot.slane %v1377_v12, 1 }
 0x290   : > { %v969_v20 = vadd.f32 %v968_v8, %v928_v18  ;;  %v931_v21 = vadd.f32 %v2424_v19, %v2242_v13  ;;  %v2843_v18 = vld [vmem:[#allocation9 + $0x148] sm:$0xff]   ;;  %v2844_v19 = vld [vmem:[#allocation9 + $0xc0] sm:$0xff]  }
 0x292   : > { %v972_v22 = vadd.f32 %v971_v10, %v931_v21  ;;  %v2845_v21 = vld [vmem:[#allocation9 + $0x108] sm:$0xff]  }
 0x2a5   : > { %v1200_v23 = vpop.f32.mrb[8].mxu0 }
 0x2a6   : > { %v2594_v24 = vpop.f32.mrb[9].mxu0 }
 0x2a7   : > { %v1203_v25 = vpop.f32.mrb[10].mxu0  ;;  %v2848_v24 = vld [vmem:[#allocation9 + $0x110] sm:$0xff]  }
 0x2a8   : > { %v2595_v26 = vpop.f32.mrb[11].mxu0 }
 0x2a9   : > { %v2850_v26 = vld [vmem:[#allocation9 + $0xd0] sm:$0xff]  }
 0x2aa   : > { %v2450_v27 = vpop.f32.mrb[4].mxu1 }
 0x2ab   : > { %v2451_v29 = vpop.f32.mrb[5].mxu1 }
 0x2ac   : > { %v2452_v30 = vadd.f32 %v2451_v29, %v2450_v27  ;;  %v2453_v31 = vpop.f32.mrb[6].mxu1  ;;  %v2851_v27 = vld [vmem:[#allocation9 + $0x118] sm:$0xff]  }
 0x2ad   : > { %v2454_v32 = vpop.f32.mrb[7].mxu1  ;;  %v2853_v29 = vld [vmem:[#allocation9 + $0xd8] sm:$0xff]  }
 0x2ae   : > { %v1160_v34 = vadd.f32 %v2452_v30, %v2267_v28  ;;  %v2455_v35 = vadd.f32 %v2454_v32, %v2453_v31  ;;  %v2854_v30 = vld [vmem:[#allocation9 + $0x120] sm:$0xff]   ;;  %v2855_v31 = vld [vmem:[#allocation9 + $0x168] sm:$0xff]  }
 0x2af   : > { %v2856_v32 = vld [vmem:[#allocation9 + $0xe0] sm:$0xff]  }
 0x2b0   : > { %v1201_v36 = vadd.f32 %v1200_v23, %v1160_v34  ;;  %v1163_v37 = vadd.f32 %v2455_v35, %v2267_v28  ;;  %v2847_v23 = vld [vmem:[#allocation9 + $0xc8] sm:$0xff]   ;;  %v2852_v28 = vld [vmem:[#allocation9 + $0x160] sm:$0xff]   ;;  %v2858_v35 = vld [vmem:[#allocation9 + $0x170] sm:$0xff]  }
 0x2b1   : > { %v2857_v34 = vld [vmem:[#allocation9 + $0x128] sm:$0xff]  }
 0x2b2   : > { %v2292_v38 = vmul.f32 -1.442695, %v1201_v36  ;;  %v1204_v39 = vadd.f32 %v1203_v25, %v1163_v37  ;;  %v2849_v25 = vld [vmem:[#allocation9 + $0x158] sm:$0xff]   ;;  %v2859_v36 = vld [vmem:[#allocation9 + $0xe8] sm:$0xff]   ;;  %v2860_v37 = vld [vmem:[#allocation9 + $0x130] sm:$0xff]  }
 0x2b4   : > { %2873 = vpow2.f32 %v2292_v38  ;;  %v2293_v40 = vmul.f32 -1.442695, %v1204_v39  ;;  %v2861_v38 = vld [vmem:[#allocation9 + $0x178] sm:$0xff]   ;;  %v2862_v39 = vld [vmem:[#allocation9 + $0xf0] sm:$0xff]  }
 0x2b6   : > { %2875 = vpow2.f32 %v2293_v40  ;;  %v2863_v40 = vld [vmem:[#allocation9 + $0x138] sm:$0xff]  }
 0x2be   : > { %v2874_v41 = vpop.eup %2873 }
 0x2bf   : > { %v1213_v42 = vadd.f32 1.0, %v2874_v41  ;;  %v2864_v41 = vld [vmem:[#allocation9 + $0xf8] sm:$0xff]  }
 0x2c0   : > { %v2876_v43 = vpop.eup %2875 }
 0x2c1   : > { %2877 = vrcp.f32 %v1213_v42  ;;  %v1214_v45 = vadd.f32 1.0, %v2876_v43  ;;  %v2865_v42 = vld [vmem:[#allocation11] sm:$0xff]   ;;  %v2866_v43 = vld [vmem:[#allocation11 + $0x8] sm:$0xff]  }
 0x2c3   : > { %2879 = vrcp.f32 %v1214_v45  ;;  %v2867_v45 = vld [vmem:[#allocation11 + $0x10] sm:$0xff]  }
 0x2cb   : > { %v2878_v46 = vpop.eup %2877 }
 0x2cc   : > { %v1219_v47 = vmul.f32 %v2878_v46, %v969_v20  ;;  %v2868_v46 = vld [vmem:[#allocation11 + $0x18] sm:$0xff]  }
 0x2cd   : > { %v2880_v49 = vpop.eup %2879 }
 0x2ce   : > { %v1221_v50 = vadd.f32 %v1219_v47, %v3481_v44  ;;  %v1220_v51 = vmul.f32 %v2880_v49, %v972_v22  ;;  %v2846_v22 = vld [vmem:[#allocation9 + $0x150] sm:$0xff]   ;;  %v2869_v47 = vld [vmem:[#allocation11 + $0x20] sm:$0xff]   ;;  %v2870_v49 = vld [vmem:[#allocation11 + $0x28] sm:$0xff]  }
 0x2d0   : > { %v3548_v52 = vmul.f32 0.70710677, %v1221_v50  ;;  %v1222_v53 = vadd.f32 %v1220_v51, %v3485_v48  ;;  %v2871_v50 = vld [vmem:[#allocation11 + $0x30] sm:$0xff]   ;;  %v2872_v51 = vld [vmem:[#allocation11 + $0x38] sm:$0xff]  }
 0x2d2   : > { %v2376_v54 = vpack.c.bf16 %v3548_v52, %v3548_v52  ;;  %v3553_v56 = vmul.f32 0.70710677, %v1222_v53 }
 0x2d4   : > { %v1334_v57 = vshrl.u32 %v2376_v54, 16  ;;  %v2377_v58 = vpack.c.bf16 %v3553_v56, %v3553_v56  ;;  %v1337_v61 = vshll.u32 %v2376_v54, 16 }
 0x2d6   : > { %v1336_v59 = vrot.slane %v1334_v57, 7  ;;  %v1342_v62 = vshrl.u32 %v2377_v58, 16  ;;  %v1345_v44 = vshll.u32 %v2377_v58, 16 }
 0x2d8   : > { %v1339_v63 = vor.u32 %v1337_v61, %v1336_v59  ;;  %v1344_v2 = vrot.slane %v1342_v62, 7  ;;  %v1340_v4 = vrot.slane %v1336_v59, 4  ;;  %v2300_v61 = vld [vmem:[%s3766_s4 + $0x1] ss:$0 sm:$0xff] }
 0x2da   : > { %v1352_v48 = vsel %vm3489_vm10, %v1339_v63, %v1351_v3  ;;  %v1347_v5 = vor.u32 %v1345_v44, %v1344_v2 }
 0x2db   : > { %1353 = vst [vmem:[#allocation2] sm:$0xf] %v1352_v48 }
 0x2dc   : > { %v1348_v6 = vsel %vm3494_vm13, %v1340_v4, %v1347_v5 }
 0x2dd   : > { %v1355_v8 = vsel %vm3500_vm14, %v1348_v6, %v1354_v7 }
 0x2de   : > { %1356 = vst [vmem:[#allocation2 + $0x4] sm:$0x3] %v1355_v8 }
 0x2e5   : > { %v3563_v10 = vld [vmem:[#allocation2] sm:$0xff]  }
 0x2e6   : > { %v1382_v13 = vrot.slane %v3563_v10, 1  ;;  %v1372_v55 = vshll.u32 %v3563_v10, 16  ;;  %v1370_v60 = vshrl.u32 %v3563_v10, 16 }
 0x2e8   : > { %v1384_v15 = vsel %vm738_vm15, %v1382_v13, %v1383_v11  ;;  %v1374_v16 = vrot.slane %v1372_v55, 1  ;;  %v2325_v11 = vld [vmem:[%s3768_s6 + $0x1] ss:$0 sm:$0xff] }
 0x2e9   : > { %2613 = vmatmul.mubr.bf16.vlgmr.msra.gmra.mrb[12].mxu0 %v1384_v15 }
 0x2ea   : > { %2617 = vmatpush3.bf16.msra.mxu0 %v2840_v14  ;;  %v1375_v1 = vor.u32 %v1374_v16, %v1370_v60  ;;  %2632 = vmatprep.mubr.msk.bf16.mxu0 %vm3151_vm0, %v3150_v0 }
 0x2eb   : > { %2618 = vmatprep.subr.bf16.mxu0 %v3150_v0 }
 0x2ec   : > { %v1380_v20 = vsel %vm724_vm1, %v1375_v1, %v1379_v17 }
 0x2ed   : > { %1568 = vmatprep.mubr.bf16.mxu1 %v1380_v20 }
 0x2ee   : > { %2619 = vmatpush3.bf16.msra.mxu0 %v2843_v18  ;;  %1569 = vmatmul.mubr.bf16.vlgmr.msra.gmra.mrb[8].mxu1 %v3563_v10 }
 0x2ef   : > { %2497 = vmatpush3.bf16.msra.mxu1 %v2844_v19  ;;  %1800 = vmatprep.mubr.bf16.mxu1 %v1380_v20 }
 0x2f0   : > { %2620 = vmatprep.subr.bf16.mxu0 %v3150_v0  ;;  %2498 = vmatprep.subr.bf16.mxu1 %v2845_v21 }
 0x2f2   : > { %2621 = vmatpush3.bf16.msra.mxu0 %v2846_v22 }
 0x2f3   : > { %2499 = vmatpush3.bf16.msra.mxu1 %v2847_v23  ;;  %2622 = vmatprep.subr.bf16.mxu0 %v3150_v0 }
 0x2f4   : > { %2500 = vmatprep.subr.bf16.mxu1 %v2848_v24 }
 0x2f6   : > { %2623 = vmatpush3.bf16.msra.mxu0 %v2849_v25 }
 0x2f7   : > { %2501 = vmatpush3.bf16.msra.mxu1 %v2850_v26  ;;  %2624 = vmatprep.subr.bf16.mxu0 %v3150_v0 }
 0x2f8   : > { %2502 = vmatprep.subr.bf16.mxu1 %v2851_v27 }
 0x2fa   : > { %2625 = vmatpush3.bf16.msra.mxu0 %v2852_v28 }
 0x2fb   : > { %2503 = vmatpush3.bf16.msra.mxu1 %v2853_v29  ;;  %2626 = vmatprep.subr.bf16.mxu0 %v3150_v0 }
 0x2fc   : > { %2504 = vmatprep.subr.bf16.mxu1 %v2854_v30 }
 0x2fe   : > { %2627 = vmatpush3.bf16.msra.mxu0 %v2855_v31 }
 0x2ff   : > { %2505 = vmatpush3.bf16.msra.mxu1 %v2856_v32  ;;  %2628 = vmatprep.subr.bf16.mxu0 %v3150_v0 }
 0x300   : > { %2506 = vmatprep.subr.bf16.mxu1 %v2857_v34 }
 0x302   : > { %2629 = vmatpush3.bf16.msra.mxu0 %v2858_v35 }
 0x303   : > { %2507 = vmatpush3.bf16.msra.mxu1 %v2859_v36  ;;  %2630 = vmatprep.subr.bf16.mxu0 %v3150_v0 }
 0x304   : > { %2508 = vmatprep.subr.bf16.mxu1 %v2860_v37  ;;  %v2889_v37 = vld [vmem:[%s3439_s18] sm:$0xff] }
 0x306   : > { %2631 = vmatpush3.bf16.msra.mxu0 %v2861_v38 }
 0x307   : > { %2509 = vmatpush3.bf16.msra.mxu1 %v2862_v39 }
 0x308   : > { %2510 = vmatprep.subr.bf16.mxu1 %v2863_v40 }
 0x309   : > { %2633 = vmatmul.mubr.bf16.vlgmr.msra.gmra.mrb[16].mxu0 %v1384_v15 }
 0x30b   : > { %2511 = vmatpush3.bf16.msra.mxu1 %v2864_v41 }
 0x30c   : > { %2636 = vmatprep.subr.bf16.mxu1 %v3150_v0 }
 0x30e   : > { %1801 = vmatmul.mubr.bf16.vlgmr.msra.gmra.mrb[12].mxu1 %v3563_v10 }
 0x30f   : > { %2652 = vmatprep.mubr.msk.bf16.mxu1 %vm3151_vm0, %v3150_v0  ;;  %2637 = vmatpush3.bf16.msra.mxu1 %v2865_v42 }
 0x310   : > { %2638 = vmatprep.subr.bf16.mxu1 %v3150_v0 }
 0x313   : > { %2639 = vmatpush3.bf16.msra.mxu1 %v2866_v43 }
 0x314   : > { %2640 = vmatprep.subr.bf16.mxu1 %v3150_v0 }
 0x317   : > { %2641 = vmatpush3.bf16.msra.mxu1 %v2867_v45 }
 0x318   : > { %2642 = vmatprep.subr.bf16.mxu1 %v3150_v0 }
 0x31b   : > { %2643 = vmatpush3.bf16.msra.mxu1 %v2868_v46 }
 0x31c   : > { %2644 = vmatprep.subr.bf16.mxu1 %v3150_v0 }
 0x31f   : > { %2645 = vmatpush3.bf16.msra.mxu1 %v2869_v47 }
 0x320   : > { %2646 = vmatprep.subr.bf16.mxu1 %v3150_v0 }
 0x323   : > { %2647 = vmatpush3.bf16.msra.mxu1 %v2870_v49 }
 0x324   : > { %2648 = vmatprep.subr.bf16.mxu1 %v3150_v0 }
 0x327   : > { %2649 = vmatpush3.bf16.msra.mxu1 %v2871_v50 }
 0x328   : > { %2650 = vmatprep.subr.bf16.mxu1 %v3150_v0 }
 0x32b   : > { %2651 = vmatpush3.bf16.msra.mxu1 %v2872_v51 }
 0x3bc   : > { %v1611_v53 = vpop.f32.mrb[12].mxu0 }
 0x3bd   : > { %v2614_v54 = vpop.f32.mrb[13].mxu0 }
 0x3be   : > { %v1614_v57 = vpop.f32.mrb[14].mxu0 }
 0x3bf   : > { %v2615_v58 = vpop.f32.mrb[15].mxu0 }
 0x3c1   : > { %v2481_v59 = vpop.f32.mrb[8].mxu1 }
 0x3c2   : > { %v2482_v62 = vpop.f32.mrb[9].mxu1 }
 0x3c3   : > { %v2483_v63 = vadd.f32 %v2482_v62, %v2481_v59  ;;  %v2484_v2 = vpop.f32.mrb[10].mxu1 }
 0x3c4   : > { %v2485_v44 = vpop.f32.mrb[11].mxu1 }
 0x3c5   : > { %v1571_v3 = vadd.f32 %v2483_v63, %v2300_v61  ;;  %v2486_v4 = vadd.f32 %v2485_v44, %v2484_v2 }
 0x3c7   : > { %v1612_v48 = vadd.f32 %v1611_v53, %v1571_v3  ;;  %v1574_v5 = vadd.f32 %v2486_v4, %v2300_v61 }
 0x3c9   : > { %v1615_v6 = vadd.f32 %v1614_v57, %v1574_v5 }
 0x3dc   : > { %v1843_v0 = vpop.f32.mrb[16].mxu0 }
 0x3dd   : > { %v2634_v7 = vpop.f32.mrb[17].mxu0 }
 0x3de   : > { %v1846_v8 = vpop.f32.mrb[18].mxu0 }
 0x3df   : > { %v2635_v9 = vpop.f32.mrb[19].mxu0 }
 0x3e1   : > { %v2512_v10 = vpop.f32.mrb[12].mxu1 }
 0x3e2   : > { %v2513_v12 = vpop.f32.mrb[13].mxu1 }
 0x3e3   : > { %v2514_v13 = vadd.f32 %v2513_v12, %v2512_v10  ;;  %v2515_v14 = vpop.f32.mrb[14].mxu1 }
 0x3e4   : > { %v2516_v55 = vpop.f32.mrb[15].mxu1 }
 0x3e5   : > { %v1803_v15 = vadd.f32 %v2514_v13, %v2325_v11  ;;  %v2517_v60 = vadd.f32 %v2516_v55, %v2515_v14 }
 0x3e7   : > { %v1844_v16 = vadd.f32 %v1843_v0, %v1803_v15  ;;  %v1806_v17 = vadd.f32 %v2517_v60, %v2325_v11 }
 0x3e9   : > { %v2350_v1 = vmul.f32 -1.442695, %v1844_v16  ;;  %v1847_v18 = vadd.f32 %v1846_v8, %v1806_v17 }
 0x3eb   : > { %2881 = vpow2.f32 %v2350_v1  ;;  %v2351_v19 = vmul.f32 -1.442695, %v1847_v18 }
 0x3ed   : > { %2883 = vpow2.f32 %v2351_v19 }
 0x3f5   : > { %v2882_v20 = vpop.eup %2881 }
 0x3f6   : > { %v1856_v21 = vadd.f32 1.0, %v2882_v20 }
 0x3f7   : > { %v2884_v22 = vpop.eup %2883 }
 0x3f8   : > { %2885 = vrcp.f32 %v1856_v21  ;;  %v1857_v23 = vadd.f32 1.0, %v2884_v22 }
 0x3fa   : > { %2887 = vrcp.f32 %v1857_v23 }
 0x402   : > { %v2886_v24 = vpop.eup %2885 }
 0x403   : > { %v1862_v25 = vmul.f32 %v2886_v24, %v1612_v48 }
 0x404   : > { %v2888_v26 = vpop.eup %2887 }
 0x405   : > { %v1863_v27 = vmul.f32 %v2888_v26, %v1615_v6  ;;  %v1864_v28 = vadd.f32 %v1862_v25, %v3548_v52  ;;  %v2352_v52 = vld [vmem:[%s3770_s8] ss:$0 sm:$0xff] }
 0x407   : > { %v1865_v29 = vadd.f32 %v1863_v27, %v3553_v56  ;;  %v1866_v30 = vmul.f32 0.70710677, %v1864_v28 }
 0x409   : > { %v1867_v31 = vmul.f32 0.70710677, %v1865_v29 }
 0x40b   : > { %v1868_v32 = vpack.c.bf16 %v1867_v31, %v1866_v30 }
 0x40d   : > { %2653 = vmatmul.mubr.bf16.vlgmr.msra.gmra.mrb[16].mxu1 %v1868_v32 }
 0x4e0   : > { %v1974_v56 = vpop.f32.mrb[16].mxu1 }
 0x4e1   : > { %v1975_v34 = vadd.f32 %v2352_v52, %v1974_v56  ;;  %v2654_v35 = vpop.f32.mrb[17].mxu1 }
 0x4e2   : > { %v1977_v36 = vpop.f32.mrb[18].mxu1 }
 0x4e3   : > { %v1981_v38 = vadd.f32 %v2889_v37, %v1975_v34  ;;  %v1978_v39 = vadd.f32 %v2352_v52, %v1977_v36  ;;  %v2655_v40 = vpop.f32.mrb[19].mxu1 }
 0x4e5   : > { %v1982_v41 = vadd.f32 %v2890_v33, %v1978_v39  ;;  %v2387_v42 = vpack.c.bf16 %v1978_v39, %v1975_v34  ;;  %v1983_v43 = vmul.f32 0.70710677, %v1981_v38 }
 0x4e7   : > { %v1984_v45 = vmul.f32 0.70710677, %v1982_v41  ;;  %2388 = vst [vmem:[%s3600_s30] sm:$0xff] %v2387_v42  }
 0x4e8   : > { %3046 = shalt.err (!%p3043_p13)
}
 0x4e9   : > { %s3047_s18 = scalar_lea.hbm %s3671_s24, 1024  ;;  %s3051_s21 = scalar_lea.hbm %s3807_s29, 2048 }
 0x4ea   : > { %p3048_p9 = scmp.ne.s32.totalorder %s3671_s24, %s3047_s18  ;;  %p3052_p4 = scmp.lt.u32.totalorder %s3671_s24, %s3807_s29 }
 0x4eb   : > { %p3053_p8 = scmp.lt.u32.totalorder %s3051_s21, %s3047_s18  ;;  %p3055_p3 = scmp.lt.u32.totalorder %s3047_s18, %s3671_s24 }
 0x4ec   : > { %p3049_p0 = pnand %p3048_p9, %p3383_p10 }
 0x4ed   : > { %p3054_p6 = por %p3053_p8, %p3052_p4 }
 0x4ee   : > { %p3050_p11 = pneg %p3049_p0 }
 0x4ef   : > { %p3056_p5 = por %p3055_p3, %p3054_p6 }
 0x4f1   : > { %p3057_p7 = pnand %p3056_p5, %p3050_p11 }
 0x4f3   : > { %3060 = shalt.err (!%p3057_p7)
}
 0x4f4   : > { %s3154_s19 = smov 64   ;;  %s3155_s26 = smov 4   ;;  %v2392_v46 = vpack.c.bf16 %v1984_v45, %v1983_v43 }
 0x4f5   : > { %2674 = dma.vmem_to_hbm [thread:$0]  (%p3383_p10), %s3673_s23, 1024, %s3671_s24, %s2034_s10, %s3154_s19, %s3154_s19, %s3155_s26  }
 0x4f6   : > { %s3808_s30 = sld [smem:[#allocation24_spill]]  ;;  %s3809_s21 = sshll.u32 %s3630_s11, 4  ;;  %2393 = vst [vmem:[%s3630_s11] sm:$0xff] %v2392_v46   ;;  %s3714_s21 = int_to_ptr.vmem [resolvable:$true] %s3809_s21 }
 0x4f7   : > { %s2039_s28 = scalar_lea.sflag [#allocation14], %s3435_s25  ;;  %s3061_s0 = scalar_lea.vmem %s3714_s21, 1024 }
 0x4f8   : > { %p3062_p12 = scmp.ne.s32.totalorder %s3714_s21, %s3061_s0  ;;  %s3156_s23 = smov [#allocation13]  }
 0x4f9   : > { %s3065_s17 = sshll.u32 %s3156_s23, 4  ;;  %s3066_s17 = int_to_ptr.vmem [resolvable:$false] %s3065_s17 }
 0x4fa   : > { %p3063_p1 = pnand %p3062_p12, %p3383_p10  ;;  %s3067_s24 = scalar_lea.vmem %s3066_s17, 2048 }
 0x4fb   : > { %p3068_p13 = scmp.lt.s32.totalorder %s3714_s21, %s3066_s17  ;;  %p3069_p9 = scmp.lt.s32.totalorder %s3067_s24, %s3061_s0 }
 0x4fc   : > { %s3710_s13 = scalar_lea.hbm %s3808_s30, %s2382_s27  ;;  %p3064_p2 = pneg %p3063_p1 }
 0x4fd   : > { %p3070_p0 = por %p3069_p9, %p3068_p13 }
 0x4ff   : > { %p3071_p11 = pnand %p3070_p0, %p3064_p2 }
 0x501   : > { %3074 = shalt.err (!%p3071_p11)
}
 0x502   : > { %s3075_s11 = scalar_lea.hbm %s3710_s13, 1024  ;;  %s3079_s9 = scalar_lea.hbm %s3808_s30, 2048 }
 0x503   : > { %p3076_p4 = scmp.ne.s32.totalorder %s3710_s13, %s3075_s11  ;;  %p3080_p3 = scmp.lt.u32.totalorder %s3710_s13, %s3808_s30 }
 0x504   : > { %p3081_p5 = scmp.lt.u32.totalorder %s3079_s9, %s3075_s11  ;;  %p3083_p12 = scmp.lt.u32.totalorder %s3075_s11, %s3710_s13 }
 0x505   : > { %p3077_p8 = pnand %p3076_p4, %p3383_p10 }
 0x506   : > { %p3082_p7 = por %p3081_p5, %p3080_p3 }
 0x507   : > { %p3078_p6 = pneg %p3077_p8 }
 0x508   : > { %p3084_p1 = por %p3083_p12, %p3082_p7 }
 0x50a   : > { %p3085_p2 = pnand %p3084_p1, %p3078_p6 }
 0x50c   : > { %3088 = shalt.err (!%p3085_p2)
}
 0x50d   : > { %2675 = dma.vmem_to_hbm [thread:$0]  (%p3383_p10), %s3714_s21, 1024, %s3710_s13, %s2039_s28, %s3154_s19, %s3154_s19, %s3155_s26  }
 0x50e PF: > { %s3810_s0 = sld [smem:[#allocation20_spill]]  ;;  %s3811_s17 = sld [smem:[#allocation21_spill]] }
 0x50f   : > { %p3813_p9 = scmp.ge.s32.totalorder %s3139_s16, 2 }
 0x514   : > { %s2083_s24 = sand.u32 1, %s3810_s0   ;;  %p3812_p13 = scmp.ne.s32.totalorder %s3811_s17, 0 }
 0x515   : > { %s2084_s11 = scalar_lea.sflag [#allocation5], %s2083_s24 }
 0x516   : > { %p2696_p0 = pnand %p3813_p9, %p3812_p13 }
 0x518   : > { %3118 = dma.done.wait (!%p2696_p0), %s2084_s11, 1024  }
 0x519   : > { %3120 = vsyncadd (!%p2696_p0), %s2084_s11, 4294966272  ;;  %s2093_s20 = scalar_lea.sflag [#allocation14], %s2083_s24 }
 0x51a   : > { %3122 = dma.done.wait (!%p2696_p0), %s2093_s20, 1024  }
 0x51b   : > { %3124 = vsyncadd (!%p2696_p0), %s2093_s20, 4294966272  ;;  %p29_p10 = scmp.ge.s32.totalorder %s3373_s22, 4   ;;  %s3814_s13 = smov %s3131_s14 }
 0x51c   : > { %s3815_s14 = smov %s3135_s15  ;;  %s3816_s15 = smov %s3389_s12 }
 0x51d   : > { %s3817_s16 = smov %s3373_s22  ;;  %31 = sbr.rel (!%p29_p10) target bundleno = 13 (0xd), region = 138 }
 0x524   :  { %2098 = vsyncpa [#allocation4], 1 }
 0x525   :  { %2100 = vsyncpa [#allocation4 + $0x1], 1 }
 0x526   :  { %2101 = vsyncpa [#allocation7], 1 }
 0x527   :  { %2102 = vsyncpa [#allocation10], 1 }
 0x528   :  { %2103 = vsyncpa [#allocation5], 1 }
 0x529   :  { %2105 = vsyncpa [#allocation5 + $0x1], 1 }
 0x52a   :  { %2106 = vsyncpa [#allocation14], 1 }
 0x52b   :  { %2108 = vsyncpa [#allocation14 + $0x1], 1 }

// kernel: tpu_custom_call.1
= control target key start
LH: loop header
LB: loop body
LE: loop exit
PB: predicated region body
PF: predicated region fallthrough
CT: control target
= control target key end

     0   :  { %s3762_s0 = inlined_call_operand.hbm [shape: f32[2,16,128], index: 0, kind: input, shape index: {}]   ;;  %s3763_s1 = inlined_call_operand.hbm [shape: bf16[128,128], index: 1, kind: input, shape index: {}]   ;;  %s3764_s2 = inlined_call_operand.vmem [shape: f32[1,128], index: 2, kind: input, shape index: {}]   ;;  %s3765_s3 = inlined_call_operand.hbm [shape: bf16[2,384,128], index: 3, kind: input, shape index: {}]   ;;  %s3766_s4 = inlined_call_operand.vmem [shape: f32[2,1,128], index: 4, kind: input, shape index: {}]   ;;  %s3767_s5 = inlined_call_operand.hbm [shape: bf16[2,384,128], index: 5, kind: input, shape index: {}]   ;;  %s3768_s6 = inlined_call_operand.vmem [shape: f32[2,1,128], index: 6, kind: input, shape index: {}]   ;;  %s3769_s7 = inlined_call_operand.hbm [shape: bf16[128,128], index: 7, kind: input, shape index: {}]   ;;  %s3770_s8 = inlined_call_operand.vmem [shape: f32[1,128], index: 8, kind: input, shape index: {}]   ;;  %s3771_s9 = inlined_call_operand.hbm [shape: bf16[2,128,128], index: 9, kind: output, shape index: {0}]   ;;  %s3772_s10 = inlined_call_operand.hbm [shape: bf16[2,128,128], index: 10, kind: output, shape index: {1}]  }
   0x1   :  { %3780 = sst [smem:[#allocation22_spill]] %s3762_s0 }
   0x2   :  { %3781 = sst [smem:[#allocation23_spill]] %s3771_s9 }
   0x3   :  { %3782 = sst [smem:[#allocation24_spill]] %s3772_s10 }
   0x4   :  { %16 = vsyncpa [#allocation4], 0 }
   0x5   :  { %18 = vsyncpa [#allocation4 + $0x1], 0 }
   0x6   :  { %19 = vsyncpa [#allocation7], 0 }
   0x7   :  { %20 = vsyncpa [#allocation10], 0 }
   0x8   :  { %21 = vsyncpa [#allocation5], 0 }
   0x9   :  { %23 = vsyncpa [#allocation5 + $0x1], 0 }
   0xa   :  { %24 = vsyncpa [#allocation14], 0 }
   0xb   :  { %26 = vsyncpa [#allocation14 + $0x1], 0  ;;  %s3212_s13 = smov 0   ;;  %s3214_s14 = smov 0  }
   0xc   :  { %s3216_s15 = smov 0   ;;  %s3218_s16 = smov 0  }
   0xd LB: > { %3783 = sst [smem:[#allocation20_spill]] %s3127_s13  ;;  %s3233_s17 = sadd.s32 4294967295, %s3139_s16   ;;  %s3139_s16 = sphi %s3218_s16, %s3817_s16   ;;  %s3135_s15 = sphi %s3216_s15, %s3816_s15   ;;  %s3131_s14 = sphi %s3214_s14, %s3815_s14   ;;  %s3127_s13 = sphi %s3212_s13, %s3814_s13  }
   0xe   : > { %s2211_s18 = sadd.s32 4294967294, %s3139_s16   ;;  %p52_p0 = scmp.ne.s32.totalorder %s3131_s14, %s3127_s13 }
   0xf   : > { %p3773_p1 = scmp.eq.s32.totalorder %s3233_s17, 0  ;;  %p250_p3 = scmp.eq.s32.totalorder %s2211_s18, 1 }
  0x10   : > { %p2212_p5 = scmp.ge.s32.totalorder %s3139_s16, 1  ;;  %p283_p7 = scmp.lt.s32.totalorder %s3139_s16, 3 }
  0x11   : > { %p3242_p4 = por %p3773_p1, %p52_p0  ;;  %p3247_p6 = por %p250_p3, %p52_p0 }
  0x12   : > { %p3252_p8 = pnand %p2212_p5, %p283_p7  ;;  %s3141_s22 = smov [#allocation6]  }
  0x13   : > { %s3784_s19 = scalar_select %p3242_p4, 1, 0 }
  0x14   : > { %s3785_s20 = scalar_select %p3247_p6, 1, 0 }
  0x15   : > { %s3787_s21 = scalar_select %p3252_p8, 1, 0 }
  0x16   : > { %3786 = sst [smem:[#allocation21_spill]] %s3785_s20  ;;  %s295_s23 = sshll.u32 %s3141_s22, 4  ;;  %s3256_s23 = int_to_ptr.vmem [resolvable:$true] %s295_s23 }
  0x17   : > { %p2678_p9 = pneg %p3252_p8  ;;  %s3142_s25 = smov [#allocation9]  }
  0x18   : > { %s327_s26 = sshll.u32 %s3142_s25, 4  ;;  %s3143_s27 = smov [#allocation8]   ;;  %s3267_s26 = int_to_ptr.vmem [resolvable:$true] %s327_s26 }
  0x19   : > { %p3263_p11 = pnand %p2678_p9, %p3773_p1  ;;  %s3269_s28 = sshll.u32 %s3143_s27, 4  ;;  %s312_s28 = int_to_ptr.vmem [resolvable:$true] %s3269_s28 }
  0x1a   : > { %s2891_s11 = scalar_lea.hbm %s3763_s1, 1024 }
  0x1b   : > { %p2892_p12 = scmp.ne.s32.totalorder %s3763_s1, %s2891_s11  ;;  %p3279_p13 = pneg %p3263_p11 }
  0x1c   : > { %p2898_p5 = scmp.lt.u32.totalorder %s2891_s11, %s3763_s1 }
  0x1d   : > { %p2894_p0 = pnand %p3279_p13, %p2892_p12 }
  0x1f   : > { %p2895_p3 = pneg %p2894_p0 }
  0x21   : > { %p2900_p7 = pnand %p2898_p5, %p2895_p3 }
  0x23   : > { %2903 = shalt.err (!%p2900_p7)
}
  0x24   : > { %s2904_s29 = scalar_lea.vmem %s3256_s23, 1024  ;;  %p2912_p2 = scmp.lt.s32.totalorder %s3256_s23, %s3256_s23 }
  0x25   : > { %p2905_p9 = scmp.ne.s32.totalorder %s3256_s23, %s2904_s29  ;;  %p2913_p6 = scmp.lt.s32.totalorder %s2904_s29, %s2904_s29 }
  0x27   : > { %p2907_p10 = pnand %p2905_p9, %p3279_p13  ;;  %p2914_p12 = por %p2913_p6, %p2912_p2 }
  0x29   : > { %p2908_p1 = pneg %p2907_p10 }
  0x2b   : > { %p2915_p0 = pnand %p2914_p12, %p2908_p1 }
  0x2d   : > { %2918 = shalt.err (!%p2915_p0)
}
  0x2e   : > { %s3144_s30 = smov 64   ;;  %s3145_s11 = smov 4  }
  0x2f   : > { %2681 = dma.hbm_to_vmem [thread:$0]  (!%p3263_p11), %s3763_s1, 1024, %s3256_s23, [#allocation7], %s3144_s30, %s3144_s30, %s3145_s11  }
  0x30   : > { %s2919_s29 = scalar_lea.hbm %s3767_s5, 6144 }
  0x31   : > { %p2920_p1 = scmp.ne.s32.totalorder %s3767_s5, %s2919_s29  ;;  %p2926_p10 = scmp.lt.u32.totalorder %s2919_s29, %s3767_s5 }
  0x33   : > { %p2922_p2 = pnand %p2920_p1, %p3279_p13 }
  0x35   : > { %p2923_p6 = pneg %p2922_p2 }
  0x37   : > { %p2928_p3 = pnand %p2926_p10, %p2923_p6 }
  0x39   : > { %2931 = shalt.err (!%p2928_p3)
}
  0x3a   : > { %s2932_s23 = scalar_lea.vmem %s3267_s26, 6144  ;;  %p2940_p12 = scmp.lt.s32.totalorder %s3267_s26, %s3267_s26 }
  0x3b   : > { %p2933_p5 = scmp.ne.s32.totalorder %s3267_s26, %s2932_s23  ;;  %p2941_p0 = scmp.lt.s32.totalorder %s2932_s23, %s2932_s23 }
  0x3d   : > { %p2935_p7 = pnand %p2933_p5, %p3279_p13  ;;  %p2942_p1 = por %p2941_p0, %p2940_p12 }
  0x3f   : > { %p2936_p9 = pneg %p2935_p7 }
  0x41   : > { %p2943_p2 = pnand %p2942_p1, %p2936_p9 }
  0x43   : > { %2946 = shalt.err (!%p2943_p2)
}
  0x44   : > { %2687 = dma.hbm_to_vmem [thread:$0]  (!%p3263_p11), %s3767_s5, 6144, %s3267_s26, [#allocation10], %s3144_s30, %s3144_s30, %s3145_s11  }
  0x45   : > { %s2947_s12 = scalar_lea.hbm %s3765_s3, 6144 }
  0x46   : > { %p2948_p6 = scmp.ne.s32.totalorder %s3765_s3, %s2947_s12  ;;  %p2954_p5 = scmp.lt.u32.totalorder %s2947_s12, %s3765_s3 }
  0x48   : > { %p2950_p10 = pnand %p2948_p6, %p3279_p13 }
  0x4a   : > { %p2951_p3 = pneg %p2950_p10 }
  0x4c   : > { %p2956_p7 = pnand %p2954_p5, %p2951_p3 }
  0x4e   : > { %2959 = shalt.err (!%p2956_p7)
}
  0x4f   : > { %s2960_s23 = scalar_lea.vmem %s312_s28, 6144  ;;  %p2968_p1 = scmp.lt.s32.totalorder %s312_s28, %s312_s28 }
  0x50   : > { %p2961_p9 = scmp.ne.s32.totalorder %s312_s28, %s2960_s23  ;;  %p2969_p2 = scmp.lt.s32.totalorder %s2960_s23, %s2960_s23 }
  0x52   : > { %p2963_p12 = pnand %p2961_p9, %p3279_p13  ;;  %p2970_p4 = por %p2969_p2, %p2968_p1 }
  0x54   : > { %p2964_p0 = pneg %p2963_p12 }
  0x56   : > { %p2971_p8 = pnand %p2970_p4, %p2964_p0 }
  0x58   : > { %2974 = shalt.err (!%p2971_p8)
}
  0x59   : > { %2684 = dma.hbm_to_vmem [thread:$0]  (!%p3263_p11), %s3765_s3, 6144, %s312_s28, [#allocation7], %s3144_s30, %s3144_s30, %s3145_s11  }
  0x5a   : > { %s3146_s10 = smov [#allocation11]   ;;  %s2975_s18 = scalar_lea.hbm %s3769_s7, 1024 }
  0x5b   : > { %s343_s13 = sshll.u32 %s3146_s10, 4  ;;  %p2976_p4 = scmp.ne.s32.totalorder %s3769_s7, %s2975_s18  ;;  %s344_s13 = int_to_ptr.vmem [resolvable:$true] %s343_s13 }
  0x5c   : > { %p2982_p10 = scmp.lt.u32.totalorder %s2975_s18, %s3769_s7 }
  0x5d   : > { %p2978_p8 = pnand %p2976_p4, %p3279_p13 }
  0x5f   : > { %p2979_p6 = pneg %p2978_p8 }
  0x61   : > { %p2984_p3 = pnand %p2982_p10, %p2979_p6 }
  0x63   : > { %2987 = shalt.err (!%p2984_p3)
}
  0x64   : > { %s2988_s28 = scalar_lea.vmem %s344_s13, 1024  ;;  %p2996_p12 = scmp.lt.s32.totalorder %s344_s13, %s344_s13 }
  0x65   : > { %p2989_p5 = scmp.ne.s32.totalorder %s344_s13, %s2988_s28  ;;  %p2997_p0 = scmp.lt.s32.totalorder %s2988_s28, %s2988_s28 }
  0x67   : > { %p2991_p7 = pnand %p2989_p5, %p3279_p13  ;;  %p2998_p1 = por %p2997_p0, %p2996_p12 }
  0x69   : > { %p2992_p9 = pneg %p2991_p7 }
  0x6b   : > { %p2999_p2 = pnand %p2998_p1, %p2992_p9 }
  0x6d   : > { %3002 = shalt.err (!%p2999_p2)
}
  0x6e   : > { %2690 = dma.hbm_to_vmem [thread:$0]  (!%p3263_p11), %s3769_s7, 1024, %s344_s13, [#allocation10], %s3144_s30, %s3144_s30, %s3145_s11  }
  0x6f   : > { %s3373_s22 = sadd.s32 1, %s3139_s16   ;;  %s39_s24 = sadd.s32 1, %s3135_s15 }
  0x70   : > { %s36_s10 = ssub.s32 %s3139_s16, %s3373_s22  ;;  %p46_p13 = scmp.ne.s32.totalorder %s3135_s15, %s3131_s14 }
  0x71   : > { %p37_p4 = scmp.eq.s32.totalorder %s36_s10, 0  ;;  %p47_p8 = scmp.eq.s32.totalorder %s3139_s16, 0 }
  0x72   : > { %p3790_p6 = scmp.eq.s32.totalorder %s3233_s17, 1  ;;  %p2706_p3 = scmp.lt.s32.totalorder %s3139_s16, 2 }
  0x73   : > { %s3389_s12 = scalar_select %p37_p4, %s3135_s15, %s39_s24  }
  0x74   : > { %p3383_p10 = por %p3790_p6, %p46_p13  ;;  %p48_p5 = por %p47_p8, %p46_p13 }
  0x75   : > { %s360_s18 = sand.u32 1, %s3135_s15   ;;  %s2373_s30 = sshll.u32 %s3139_s16, 8 }
  0x76   : > { %s2218_s25 = sshll.u32 %s360_s18, 4  ;;  %s3792_s0 = sld [smem:[#allocation22_spill]] }
  0x77   : > { %s364_s29 = scalar_lea.vmem [#allocation3], %s2218_s25  ;;  %p3400_p11 = pnand %p2706_p3, %p48_p5 }
  0x78   : > { %s371_s23 = sshll.u32 %s364_s29, 4  ;;  %s3404_s26 = scalar_lea.sflag [#allocation4], %s360_s18  ;;  %s3398_s23 = int_to_ptr.vmem [resolvable:$true] %s371_s23 }
  0x79   : > { %p3005_p9 = pneg %p3400_p11 }
  0x7c   : > { %s3396_s27 = scalar_lea.hbm %s3792_s0, %s2373_s30  ;;  %s3008_s25 = scalar_lea.hbm %s3792_s0, 512 }
  0x7d   : > { %s3003_s9 = scalar_lea.hbm %s3396_s27, 256  ;;  %p3009_p1 = scmp.lt.u32.totalorder %s3396_s27, %s3792_s0 }
  0x7e   : > { %p3004_p7 = scmp.ne.s32.totalorder %s3396_s27, %s3003_s9  ;;  %p3010_p2 = scmp.lt.u32.totalorder %s3008_s25, %s3003_s9 }
  0x7f   : > { %p3012_p4 = scmp.lt.u32.totalorder %s3003_s9, %s3396_s27 }
  0x80   : > { %p3006_p12 = pnand %p3005_p9, %p3004_p7  ;;  %p3011_p13 = por %p3010_p2, %p3009_p1 }
  0x82   : > { %p3007_p0 = pneg %p3006_p12  ;;  %p3013_p8 = por %p3012_p4, %p3011_p13 }
  0x84   : > { %p3014_p6 = pnand %p3013_p8, %p3007_p0 }
  0x86   : > { %3017 = shalt.err (!%p3014_p6)
}
  0x87   : > { %s3018_s18 = scalar_lea.vmem %s3398_s23, 256  ;;  %s3147_s13 = smov [#allocation3]  }
  0x88   : > { %p3019_p3 = scmp.ne.s32.totalorder %s3398_s23, %s3018_s18  ;;  %s3023_s29 = sshll.u32 %s3147_s13, 4  ;;  %s3024_s29 = int_to_ptr.vmem [resolvable:$false] %s3023_s29 }
  0x89   : > { %s3025_s24 = scalar_lea.vmem %s3024_s29, 512  ;;  %p3026_p12 = scmp.lt.s32.totalorder %s3398_s23, %s3024_s29 }
  0x8a   : > { %p3021_p5 = pnand %p3019_p3, %p3005_p9  ;;  %p3027_p1 = scmp.lt.s32.totalorder %s3025_s24, %s3018_s18 }
  0x8c   : > { %p3022_p7 = pneg %p3021_p5  ;;  %p3028_p2 = por %p3027_p1, %p3026_p12 }
  0x8e   : > { %p3029_p13 = pnand %p3028_p2, %p3022_p7 }
  0x90   : > { %3032 = shalt.err (!%p3029_p13)
}
  0x91   : > { %s3148_s9 = smov 128   ;;  %s3149_s10 = smov 8  }
  0x92   : > { %2694 = dma.hbm_to_vmem [thread:$0]  (!%p3400_p11), %s3396_s27, 256, %s3398_s23, %s3404_s26, %s3148_s9, %s3148_s9, %s3149_s10  }
  0x93   : > { %p3794_p9 = scmp.ne.s32.totalorder %s3787_s21, 0 }
  0x94   : > { %s3435_s25 = sand.u32 (!%p3794_p9), 1, %s3131_s14   ;;  %p3795_p0 = scmp.ne.s32.totalorder (!%p3794_p9), %s3784_s19, 0 }
  0x95   : > { %383 = sbr.rel (%p3794_p9) target bundleno = 1294 (0x50e), region = 56  ;;  %s2222_s30 = sshll.u32 (!%p3794_p9), %s3435_s25, 4 }
  0x96   : > { %s386_s11 = scalar_lea.sflag (!%p3794_p9), [#allocation4], %s3435_s25  ;;  %s3439_s18 = scalar_lea.vmem (!%p3794_p9), [#allocation3], %s2222_s30 }
  0x9c   : > { %3106 = dma.done.wait (%p3795_p0), %s386_s11, 256  }
  0x9d   : > { %3108 = vsyncadd (%p3795_p0), %s386_s11, 4294967040  ;;  %p3796_p11 = scmp.eq.s32.totalorder %s3233_s17, 0 }
  0x9f   : > { %3110 = dma.done.wait (%p3796_p11), [#allocation7], 7168   ;;  %p3797_p4 = pmov %p3796_p11 }
  0xa1   : > { %3112 = vsyncadd (%p3797_p4), [#allocation7], 4294960128  ;;  %p3798_p8 = pmov %p3797_p4 }
  0xa2   : > { %p3799_p6 = pmov %p3797_p4 }
  0xa3   : > { %3114 = dma.done.wait (%p3798_p8), [#allocation10], 7168  }
  0xa4   : > { %3116 = vsyncadd (%p3799_p6), [#allocation10], 4294960128  ;;  %v3150_v0 = vmov 0.0   ;;  %vm3151_vm0 = vmmov 0   ;;  %v2757_v1 = vld [vmem:[#allocation6] sm:$0xff]   ;;  %v2758_v2 = vld [vmem:[#allocation6 + $0x8] sm:$0xff]  }
  0xa5   : > { %2536 = vmatprep.subr.bf16.mxu0 %v3150_v0  ;;  %2552 = vmatprep.mubr.msk.bf16.mxu0 %vm3151_vm0, %v3150_v0  ;;  %vm448_vm1 = vcmask 1040384   ;;  %vm449_vm2 = vsmask.f32 256  ;;  %v2759_v3 = vld [vmem:[#allocation6 + $0x10] sm:$0xff]   ;;  %v2760_v5 = vld [vmem:[#allocation6 + $0x18] sm:$0xff]   ;;  %v2761_v7 = vld [vmem:[#allocation6 + $0x20] sm:$0xff]  }
  0xa6   : > { %2537 = vmatpush3.bf16.msra.mxu0 %v2757_v1  ;;  %vm450_vm3 = vmand %vm448_vm1, %vm449_vm2  ;;  %v451_v4 = vld [vmem:[#allocation2] sm:$0x1]  ;;  %v2762_v8 = vld [vmem:[#allocation6 + $0x28] sm:$0xff]   ;;  %vm454_vm4 = vcmask 1043457   ;;  %vm455_vm5 = vsmask.f32 7942 }
  0xa7   : > { %2538 = vmatprep.subr.bf16.mxu0 %v3150_v0  ;;  %v452_v6 = vsel %vm450_vm3, 0, %v451_v4  ;;  %v2763_v9 = vld [vmem:[#allocation6 + $0x30] sm:$0xff]   ;;  %v2764_v10 = vld [vmem:[#allocation6 + $0x38] sm:$0xff]   ;;  %v2765_v13 = vld [vmem:[#allocation8 + $0x80] sm:$0xff]   ;;  %v3152_v33 = vmov 0   ;;  %vm700_vm7 = vcmask 1043456  }
  0xa8   : > { %453 = vst [vmem:[#allocation2] sm:$0x1] %v452_v6  ;;  %v461_v11 = vld [vmem:[%s3439_s18] sm:$0xff]  ;;  %v462_v12 = vld [vmem:[%s3439_s18 + $0x8] sm:$0xff]  ;;  %vm456_vm6 = vmand %vm454_vm4, %vm455_vm5  ;;  %vm701_vm8 = vsmask.f32 7938 }
  0xa9   : > { %v463_v14 = vpack.c.bf16 %v462_v12, %v461_v11  ;;  %v2766_v15 = vld [vmem:[#allocation8 + $0x40] sm:$0xff]   ;;  %v2767_v16 = vld [vmem:[#allocation8 + $0x88] sm:$0xff]   ;;  %v2770_v19 = vld [vmem:[#allocation8 + $0x90] sm:$0xff]   ;;  %460 = vst [vmem:[#allocation2 + $0x8] sm:$0x1] %v3152_v33  ;;  %vm706_vm11 = vcmask 1041408  }
  0xaa   : > { %2539 = vmatpush3.bf16.msra.mxu0 %v2758_v2  ;;  %v2768_v17 = vld [vmem:[#allocation8] sm:$0xff]   ;;  %2403 = vmatprep.subr.bf16.mxu1 %v2766_v15  ;;  %v2769_v18 = vld [vmem:[#allocation8 + $0x48] sm:$0xff]   ;;  %v457_v21 = vld [vmem:[#allocation2 + $0x4] sm:$0xe]  ;;  %vm680_vm9 = vsmask.f32 4368 }
  0xab   : > { %2540 = vmatprep.subr.bf16.mxu0 %v3150_v0  ;;  %2404 = vmatpush3.bf16.msra.mxu1 %v2768_v17  ;;  %v2771_v20 = vld [vmem:[#allocation8 + $0x8] sm:$0xff]   ;;  %v458_v22 = vsel %vm456_vm6, 0, %v457_v21  ;;  %v2772_v23 = vld [vmem:[#allocation8 + $0x50] sm:$0xff]   ;;  %v2773_v24 = vld [vmem:[#allocation8 + $0x98] sm:$0xff]   ;;  %vm707_vm12 = vsmask.f32 1280 }
  0xac   : > { %2405 = vmatprep.subr.bf16.mxu1 %v2769_v18  ;;  %459 = vst [vmem:[#allocation2 + $0x4] sm:$0xe] %v458_v22  ;;  %v2774_v25 = vld [vmem:[#allocation8 + $0x10] sm:$0xff]   ;;  %v2775_v26 = vld [vmem:[#allocation8 + $0x58] sm:$0xff]   ;;  %v2776_v27 = vld [vmem:[#allocation8 + $0xa0] sm:$0xff]   ;;  %vm738_vm15 = vcmask 1046528  }
  0xad   : > { %v2777_v28 = vld [vmem:[#allocation8 + $0x18] sm:$0xff]   ;;  %v2778_v29 = vld [vmem:[#allocation8 + $0x60] sm:$0xff]   ;;  %v2779_v30 = vld [vmem:[#allocation8 + $0xa8] sm:$0xff]   ;;  %vm724_vm1 = vsmask.f32 7424  ;;  %s2227_s10 = sshll.u32 %s3435_s25, 6 }
  0xae   : > { %2541 = vmatpush3.bf16.msra.mxu0 %v2759_v3  ;;  %v2780_v31 = vld [vmem:[#allocation8 + $0x20] sm:$0xff]   ;;  %v2781_v32 = vld [vmem:[#allocation8 + $0x68] sm:$0xff]   ;;  %v2782_v34 = vld [vmem:[#allocation8 + $0xb0] sm:$0xff]   ;;  %s3600_s30 = scalar_lea.vmem [#allocation12], %s2227_s10  ;;  %s3630_s11 = scalar_lea.vmem [#allocation13], %s2227_s10 }
  0xaf   : > { %2542 = vmatprep.subr.bf16.mxu0 %v3150_v0  ;;  %2406 = vmatpush3.bf16.msra.mxu1 %v2771_v20  ;;  %v2783_v35 = vld [vmem:[#allocation8 + $0x28] sm:$0xff]   ;;  %v2784_v36 = vld [vmem:[#allocation8 + $0x70] sm:$0xff]   ;;  %v2785_v37 = vld [vmem:[#allocation8 + $0xb8] sm:$0xff]   ;;  %2005 = vst [vmem:[%s3600_s30 + $0x8] sm:$0xf] %v3152_v33  ;;  %s2382_s27 = sshll.u32 %s3233_s17, 10 }
  0xb0   : > { %2407 = vmatprep.subr.bf16.mxu1 %v2772_v23  ;;  %v2786_v38 = vld [vmem:[#allocation8 + $0x30] sm:$0xff]   ;;  %v2787_v39 = vld [vmem:[#allocation8 + $0x78] sm:$0xff]   ;;  %v2792_v41 = vld [vmem:[#allocation9 + $0x40] sm:$0xff]   ;;  %2006 = vst [vmem:[%s3600_s30 + $0xc] sm:$0xf] %v3152_v33  ;;  %s2052_s23 = sshll.u32 %s3600_s30, 4  ;;  %s3673_s23 = int_to_ptr.vmem [resolvable:$true] %s2052_s23 }
  0xb1   : > { %v2791_v40 = vld [vmem:[#allocation8 + $0x38] sm:$0xff]   ;;  %v2229_v42 = vld [vmem:[%s3764_s2] ss:$0 sm:$0xff]  ;;  %vm3489_vm10 = vmand %vm700_vm7, %vm701_vm8  ;;  %2007 = vst [vmem:[%s3600_s30 + $0x10] sm:$0xf] %v3152_v33  ;;  %s3806_s13 = sld [smem:[#allocation23_spill]] }
  0xb2   : > { %2543 = vmatpush3.bf16.msra.mxu0 %v2760_v5  ;;  %v703_v56 = vld [vmem:[#allocation2] sm:$0xf]  ;;  %vm3494_vm13 = vmor %vm449_vm2, %vm680_vm9  ;;  %v2789_v5 = vld [vmem:[#allocation2 + $0x8] ss:$0 sps:$4 sm:$0x11]   ;;  %s2034_s10 = scalar_lea.sflag [#allocation5], %s3435_s25 }
  0xb3   : > { %2544 = vmatprep.subr.bf16.mxu0 %v3150_v0  ;;  %2408 = vmatpush3.bf16.msra.mxu1 %v2774_v25  ;;  %vm3500_vm14 = vmand %vm706_vm11, %vm707_vm12  ;;  %v709_v2 = vld [vmem:[#allocation2 + $0x4] sm:$0x3]  ;;  %v2793_v17 = vld [vmem:[#allocation9 + $0x88] sm:$0xff]   ;;  %2008 = vst [vmem:[%s3600_s30 + $0x14] sm:$0xf] %v3152_v33  ;;  %s3033_s19 = scalar_lea.vmem %s3673_s23, 1024 }
  0xb4   : > { %2409 = vmatprep.subr.bf16.mxu1 %v2775_v26  ;;  %v2794_v18 = vld [vmem:[#allocation9] sm:$0xff]   ;;  %v2795_v20 = vld [vmem:[#allocation9 + $0x48] sm:$0xff]   ;;  %v2796_v21 = vld [vmem:[#allocation9 + $0x90] sm:$0xff]   ;;  %2009 = vst [vmem:[%s3600_s30 + $0x18] sm:$0xf] %v3152_v33  ;;  %p3034_p3 = scmp.ne.s32.totalorder %s3673_s23, %s3033_s19  ;;  %s3153_s21 = smov [#allocation12]  }
  0xb5   : > { %v2797_v22 = vld [vmem:[#allocation9 + $0x8] sm:$0xff]   ;;  %v2798_v23 = vld [vmem:[#allocation9 + $0x50] sm:$0xff]   ;;  %v2801_v26 = vld [vmem:[#allocation9 + $0x58] sm:$0xff]   ;;  %2010 = vst [vmem:[%s3600_s30 + $0x1c] sm:$0xf] %v3152_v33  ;;  %s3037_s28 = sshll.u32 %s3153_s21, 4  ;;  %s3038_s28 = int_to_ptr.vmem [resolvable:$false] %s3037_s28 }
  0xb6   : > { %2545 = vmatpush3.bf16.msra.mxu0 %v2761_v7  ;;  %v740_v7 = vrot.slane %v2789_v5, 1  ;;  %v2800_v25 = vld [vmem:[#allocation9 + $0x10] sm:$0xff]   ;;  %2011 = vst [vmem:[%s3600_s30 + $0x20] sm:$0xf] %v3152_v33  ;;  %2012 = vst [vmem:[%s3600_s30 + $0x24] sm:$0xf] %v3152_v33  ;;  %p3035_p5 = pnand %p3034_p3, %p3383_p10  ;;  %p3040_p12 = scmp.lt.s32.totalorder %s3673_s23, %s3038_s28 }
  0xb7   : > { %2546 = vmatprep.subr.bf16.mxu0 %v3150_v0  ;;  %2410 = vmatpush3.bf16.msra.mxu1 %v2777_v28  ;;  %v2803_v28 = vld [vmem:[#allocation9 + $0x18] sm:$0xff]   ;;  %2013 = vst [vmem:[%s3600_s30 + $0x28] sm:$0xf] %v3152_v33  ;;  %2014 = vst [vmem:[%s3600_s30 + $0x2c] sm:$0xf] %v3152_v33  ;;  %s3807_s29 = smov %s3806_s13  ;;  %s3671_s24 = scalar_lea.hbm %s3806_s13, %s2382_s27 }
  0xb8   : > { %2411 = vmatprep.subr.bf16.mxu1 %v2778_v29  ;;  %v2804_v29 = vld [vmem:[#allocation9 + $0x60] sm:$0xff]   ;;  %2015 = vst [vmem:[%s3600_s30 + $0x30] sm:$0xf] %v3152_v33  ;;  %2016 = vst [vmem:[%s3600_s30 + $0x34] sm:$0xf] %v3152_v33  ;;  %p3036_p7 = pneg %p3035_p5  ;;  %s3039_s26 = scalar_lea.vmem %s3038_s28, 2048 }
  0xb9   : > { %2017 = vst [vmem:[%s3600_s30 + $0x38] sm:$0xf] %v3152_v33  ;;  %2018 = vst [vmem:[%s3600_s30 + $0x3c] sm:$0xf] %v3152_v33  ;;  %p3041_p1 = scmp.lt.s32.totalorder %s3039_s26, %s3033_s19 }
  0xba   : > { %2547 = vmatpush3.bf16.msra.mxu0 %v2762_v8  ;;  %v733_v8 = vshll.u32 %v2789_v5, 16  ;;  %v2837_v5 = vld [vmem:[#allocation8 + $0x138] sm:$0xff]   ;;  %2019 = vst [vmem:[%s3630_s11 + $0x8] sm:$0xf] %v3152_v33  ;;  %2020 = vst [vmem:[%s3630_s11 + $0xc] sm:$0xf] %v3152_v33 }
  0xbb   : > { %2548 = vmatprep.subr.bf16.mxu0 %v3150_v0  ;;  %2412 = vmatpush3.bf16.msra.mxu1 %v2780_v31  ;;  %v2806_v31 = vld [vmem:[#allocation9 + $0x20] sm:$0xff]   ;;  %2021 = vst [vmem:[%s3630_s11 + $0x10] sm:$0xf] %v3152_v33  ;;  %2022 = vst [vmem:[%s3630_s11 + $0x14] sm:$0xf] %v3152_v33  ;;  %p3042_p2 = por %p3041_p1, %p3040_p12 }
  0xbc   : > { %2413 = vmatprep.subr.bf16.mxu1 %v2781_v32  ;;  %v735_v15 = vrot.slane %v733_v8, 1  ;;  %v2807_v32 = vld [vmem:[#allocation9 + $0x68] sm:$0xff]   ;;  %2023 = vst [vmem:[%s3630_s11 + $0x18] sm:$0xf] %v3152_v33  ;;  %2024 = vst [vmem:[%s3630_s11 + $0x1c] sm:$0xf] %v3152_v33 }
  0xbd   : > { %2025 = vst [vmem:[%s3630_s11 + $0x20] sm:$0xf] %v3152_v33  ;;  %2026 = vst [vmem:[%s3630_s11 + $0x24] sm:$0xf] %v3152_v33  ;;  %p3043_p13 = pnand %p3042_p2, %p3036_p7 }
  0xbe   : > { %2549 = vmatpush3.bf16.msra.mxu0 %v2763_v9  ;;  %2027 = vst [vmem:[%s3630_s11 + $0x28] sm:$0xf] %v3152_v33  ;;  %2028 = vst [vmem:[%s3630_s11 + $0x2c] sm:$0xf] %v3152_v33 }
  0xbf   : > { %2550 = vmatprep.subr.bf16.mxu0 %v3150_v0  ;;  %2414 = vmatpush3.bf16.msra.mxu1 %v2783_v35  ;;  %v2809_v35 = vld [vmem:[#allocation9 + $0x28] sm:$0xff]   ;;  %2029 = vst [vmem:[%s3630_s11 + $0x30] sm:$0xf] %v3152_v33  ;;  %2030 = vst [vmem:[%s3630_s11 + $0x34] sm:$0xf] %v3152_v33 }
  0xc0   : > { %2415 = vmatprep.subr.bf16.mxu1 %v2784_v36  ;;  %v2810_v36 = vld [vmem:[#allocation9 + $0x70] sm:$0xff]   ;;  %2031 = vst [vmem:[%s3630_s11 + $0x38] sm:$0xf] %v3152_v33  ;;  %2032 = vst [vmem:[%s3630_s11 + $0x3c] sm:$0xf] %v3152_v33  ;;  %v2890_v33 = vld [vmem:[%s3439_s18 + $0x8] sm:$0xff] }
  0xc2   : > { %2551 = vmatpush3.bf16.msra.mxu0 %v2764_v10  ;;  %v2790_v10 = vld [vmem:[#allocation9 + $0x80] sm:$0xff]  }
  0xc3   : > { %2556 = vmatprep.subr.bf16.mxu0 %v3150_v0  ;;  %2416 = vmatpush3.bf16.msra.mxu1 %v2786_v38  ;;  %v2812_v38 = vld [vmem:[#allocation9 + $0x30] sm:$0xff]  }
  0xc4   : > { %2417 = vmatprep.subr.bf16.mxu1 %v2787_v39  ;;  %v2813_v39 = vld [vmem:[#allocation9 + $0x78] sm:$0xff]  }
  0xc5   : > { %2553 = vmatmul.mubr.bf16.vlgmr.msra.gmra.mrb[0].mxu0 %v463_v14 }
  0xc6   : > { %2557 = vmatpush3.bf16.msra.mxu0 %v2765_v13  ;;  %2572 = vmatprep.mubr.msk.bf16.mxu0 %vm3151_vm0, %v3150_v0 }
  0xc7   : > { %2558 = vmatprep.subr.bf16.mxu0 %v3150_v0  ;;  %2418 = vmatpush3.bf16.msra.mxu1 %v2791_v40  ;;  %v2814_v40 = vld [vmem:[#allocation9 + $0x38] sm:$0xff]  }
  0xc8   : > { %2434 = vmatprep.subr.bf16.mxu1 %v2792_v41  ;;  %v2815_v41 = vld [vmem:[#allocation8 + $0x140] sm:$0xff]  }
  0xca   : > { %2559 = vmatpush3.bf16.msra.mxu0 %v2767_v16 }
  0xcb   : > { %2560 = vmatprep.subr.bf16.mxu0 %v3150_v0 }
  0xce   : > { %2561 = vmatpush3.bf16.msra.mxu0 %v2770_v19 }
  0xcf   : > { %2562 = vmatprep.subr.bf16.mxu0 %v3150_v0 }
  0xd2   : > { %2563 = vmatpush3.bf16.msra.mxu0 %v2773_v24  ;;  %v2799_v24 = vld [vmem:[#allocation9 + $0x98] sm:$0xff]  }
  0xd3   : > { %2564 = vmatprep.subr.bf16.mxu0 %v3150_v0 }
  0xd6   : > { %2565 = vmatpush3.bf16.msra.mxu0 %v2776_v27  ;;  %v2802_v27 = vld [vmem:[#allocation9 + $0xa0] sm:$0xff]  }
  0xd7   : > { %2566 = vmatprep.subr.bf16.mxu0 %v3150_v0 }
  0xda   : > { %2567 = vmatpush3.bf16.msra.mxu0 %v2779_v30  ;;  %v2805_v30 = vld [vmem:[#allocation9 + $0xa8] sm:$0xff]  }
  0xdb   : > { %2568 = vmatprep.subr.bf16.mxu0 %v3150_v0 }
  0xde   : > { %2569 = vmatpush3.bf16.msra.mxu0 %v2782_v34  ;;  %v2808_v34 = vld [vmem:[#allocation9 + $0xb0] sm:$0xff]  }
  0xdf   : > { %2570 = vmatprep.subr.bf16.mxu0 %v3150_v0 }
  0xe2   : > { %2571 = vmatpush3.bf16.msra.mxu0 %v2785_v37  ;;  %v2811_v37 = vld [vmem:[#allocation9 + $0xb8] sm:$0xff]  }
  0xe3   : > { %2576 = vmatprep.subr.bf16.mxu0 %v3150_v0 }
 0x198   : > { %v569_v43 = vpop.f32.mrb[0].mxu0 }
 0x199   : > { %v3481_v44 = vadd.f32 %v2229_v42, %v569_v43  ;;  %v2554_v45 = vpop.f32.mrb[1].mxu0  ;;  %v2817_v43 = vld [vmem:[#allocation8 + $0x148] sm:$0xff]  }
 0x19a   : > { %v572_v46 = vpop.f32.mrb[2].mxu0  ;;  %v2818_v45 = vld [vmem:[#allocation8 + $0xc0] sm:$0xff]  }
 0x19b   : > { %v2374_v47 = vpack.c.bf16 %v3481_v44, %v3481_v44  ;;  %v3485_v48 = vadd.f32 %v2229_v42, %v572_v46  ;;  %v2555_v49 = vpop.f32.mrb[3].mxu0  ;;  %v2816_v42 = vld [vmem:[#allocation8 + $0x100] sm:$0xff]   ;;  %v2819_v46 = vld [vmem:[#allocation8 + $0x108] sm:$0xff]  }
 0x19c   : > { %v2821_v49 = vld [vmem:[#allocation8 + $0xc8] sm:$0xff]  }
 0x19d   : > { %v683_v50 = vshrl.u32 %v2374_v47, 16  ;;  %v2375_v51 = vpack.c.bf16 %v3485_v48, %v3485_v48  ;;  %v686_v53 = vshll.u32 %v2374_v47, 16  ;;  %v2820_v47 = vld [vmem:[#allocation8 + $0x150] sm:$0xff]  }
 0x19f   : > { %v685_v52 = vrot.slane %v683_v50, 7  ;;  %v691_v54 = vshrl.u32 %v2375_v51, 16  ;;  %v694_v59 = vshll.u32 %v2375_v51, 16  ;;  %v2822_v50 = vld [vmem:[#allocation8 + $0x110] sm:$0xff]   ;;  %v2823_v51 = vld [vmem:[#allocation8 + $0x158] sm:$0xff]  }
 0x1a1   : > { %v688_v57 = vor.u32 %v686_v53, %v685_v52  ;;  %v693_v58 = vrot.slane %v691_v54, 7  ;;  %v689_v61 = vrot.slane %v685_v52, 4  ;;  %v2824_v52 = vld [vmem:[#allocation8 + $0xd0] sm:$0xff]   ;;  %v2825_v53 = vld [vmem:[#allocation8 + $0x118] sm:$0xff]   ;;  %v2826_v54 = vld [vmem:[#allocation8 + $0x160] sm:$0xff]  }
 0x1a3   : > { %v704_v62 = vsel %vm3489_vm10, %v688_v57, %v703_v56  ;;  %v696_v63 = vor.u32 %v694_v59, %v693_v58  ;;  %v2827_v56 = vld [vmem:[#allocation8 + $0xd8] sm:$0xff]   ;;  %v2828_v57 = vld [vmem:[#allocation8 + $0x120] sm:$0xff]   ;;  %v2829_v58 = vld [vmem:[#allocation8 + $0x168] sm:$0xff]  }
 0x1a4   : > { %705 = vst [vmem:[#allocation2] sm:$0xf] %v704_v62  ;;  %v2830_v59 = vld [vmem:[#allocation8 + $0xe0] sm:$0xff]   ;;  %v2832_v62 = vld [vmem:[#allocation8 + $0x170] sm:$0xff]  }
 0x1a5   : > { %v697_v3 = vsel %vm3494_vm13, %v689_v61, %v696_v63  ;;  %v2831_v61 = vld [vmem:[#allocation8 + $0x128] sm:$0xff]  }
 0x1a6   : > { %v710_v4 = vsel %vm3500_vm14, %v697_v3, %v709_v2  ;;  %v2833_v63 = vld [vmem:[#allocation8 + $0xe8] sm:$0xff]   ;;  %v2834_v2 = vld [vmem:[#allocation8 + $0x130] sm:$0xff]   ;;  %v2835_v3 = vld [vmem:[#allocation8 + $0x178] sm:$0xff]  }
 0x1a7   : > { %711 = vst [vmem:[#allocation2 + $0x4] sm:$0x3] %v710_v4  ;;  %v2836_v4 = vld [vmem:[#allocation8 + $0xf0] sm:$0xff]  }
 0x1ae   : > { %v3508_v6 = vld [vmem:[#allocation2] sm:$0xff]  }
 0x1af   : > { %v739_v9 = vrot.slane %v3508_v6, 1  ;;  %v728_v11 = vshll.u32 %v3508_v6, 16  ;;  %v726_v13 = vshrl.u32 %v3508_v6, 16 }
 0x1b1   : > { %v3513_v12 = vsel %vm738_vm15, %v739_v9, %v740_v7  ;;  %v730_v14 = vrot.slane %v728_v11, 1  ;;  %v2842_v7 = vld [vmem:[#allocation9 + $0x100] sm:$0xff]  }
 0x1b2   : > { %2573 = vmatmul.mubr.bf16.vlgmr.msra.gmra.mrb[4].mxu0 %v3513_v12 }
 0x1b3   : > { %2577 = vmatpush3.bf16.msra.mxu0 %v2790_v10  ;;  %v731_v16 = vor.u32 %v730_v14, %v726_v13  ;;  %2592 = vmatprep.mubr.msk.bf16.mxu0 %vm3151_vm0, %v3150_v0  ;;  %v2242_v13 = vld [vmem:[%s3766_s4] ss:$0 sm:$0xff] }
 0x1b4   : > { %2578 = vmatprep.subr.bf16.mxu0 %v3150_v0 }
 0x1b5   : > { %v736_v19 = vsel %vm724_vm1, %v731_v16, %v735_v15 }
 0x1b6   : > { %925 = vmatprep.mubr.bf16.mxu1 %v736_v19 }
 0x1b7   : > { %2579 = vmatpush3.bf16.msra.mxu0 %v2793_v17  ;;  %926 = vmatmul.mubr.bf16.vlgmr.msra.gmra.mrb[0].mxu1 %v3508_v6 }
 0x1b8   : > { %2435 = vmatpush3.bf16.msra.mxu1 %v2794_v18  ;;  %1157 = vmatprep.mubr.bf16.mxu1 %v736_v19 }
 0x1b9   : > { %2580 = vmatprep.subr.bf16.mxu0 %v3150_v0  ;;  %2436 = vmatprep.subr.bf16.mxu1 %v2795_v20 }
 0x1bb   : > { %2581 = vmatpush3.bf16.msra.mxu0 %v2796_v21 }
 0x1bc   : > { %2437 = vmatpush3.bf16.msra.mxu1 %v2797_v22  ;;  %2582 = vmatprep.subr.bf16.mxu0 %v3150_v0 }
 0x1bd   : > { %2438 = vmatprep.subr.bf16.mxu1 %v2798_v23 }
 0x1bf   : > { %2583 = vmatpush3.bf16.msra.mxu0 %v2799_v24 }
 0x1c0   : > { %2439 = vmatpush3.bf16.msra.mxu1 %v2800_v25  ;;  %2584 = vmatprep.subr.bf16.mxu0 %v3150_v0 }
 0x1c1   : > { %2440 = vmatprep.subr.bf16.mxu1 %v2801_v26 }
 0x1c3   : > { %2585 = vmatpush3.bf16.msra.mxu0 %v2802_v27 }
 0x1c4   : > { %2441 = vmatpush3.bf16.msra.mxu1 %v2803_v28  ;;  %2586 = vmatprep.subr.bf16.mxu0 %v3150_v0  ;;  %v2267_v28 = vld [vmem:[%s3768_s6] ss:$0 sm:$0xff] }
 0x1c5   : > { %2442 = vmatprep.subr.bf16.mxu1 %v2804_v29 }
 0x1c7   : > { %2587 = vmatpush3.bf16.msra.mxu0 %v2805_v30 }
 0x1c8   : > { %2443 = vmatpush3.bf16.msra.mxu1 %v2806_v31  ;;  %2588 = vmatprep.subr.bf16.mxu0 %v3150_v0 }
 0x1c9   : > { %2444 = vmatprep.subr.bf16.mxu1 %v2807_v32 }
 0x1cb   : > { %2589 = vmatpush3.bf16.msra.mxu0 %v2808_v34 }
 0x1cc   : > { %2445 = vmatpush3.bf16.msra.mxu1 %v2809_v35  ;;  %2590 = vmatprep.subr.bf16.mxu0 %v3150_v0 }
 0x1cd   : > { %2446 = vmatprep.subr.bf16.mxu1 %v2810_v36 }
 0x1cf   : > { %2591 = vmatpush3.bf16.msra.mxu0 %v2811_v37 }
 0x1d0   : > { %2447 = vmatpush3.bf16.msra.mxu1 %v2812_v38  ;;  %2596 = vmatprep.subr.bf16.mxu0 %v3150_v0 }
 0x1d1   : > { %2448 = vmatprep.subr.bf16.mxu1 %v2813_v39 }
 0x1d2   : > { %2593 = vmatmul.mubr.bf16.vlgmr.msra.gmra.mrb[8].mxu0 %v3513_v12 }
 0x1d3   : > { %2612 = vmatprep.mubr.msk.bf16.mxu0 %vm3151_vm0, %v3150_v0  ;;  %2597 = vmatpush3.bf16.msra.mxu0 %v2815_v41 }
 0x1d4   : > { %2449 = vmatpush3.bf16.msra.mxu1 %v2814_v40  ;;  %2598 = vmatprep.subr.bf16.mxu0 %v3150_v0 }
 0x1d5   : > { %2465 = vmatprep.subr.bf16.mxu1 %v2816_v42 }
 0x1d7   : > { %1158 = vmatmul.mubr.bf16.vlgmr.msra.gmra.mrb[4].mxu1 %v3508_v6  ;;  %2599 = vmatpush3.bf16.msra.mxu0 %v2817_v43  ;;  %v2841_v6 = vld [vmem:[#allocation8 + $0xf8] sm:$0xff]  }
 0x1d8   : > { %2466 = vmatpush3.bf16.msra.mxu1 %v2818_v45  ;;  %2600 = vmatprep.subr.bf16.mxu0 %v3150_v0 }
 0x1d9   : > { %2467 = vmatprep.subr.bf16.mxu1 %v2819_v46 }
 0x1db   : > { %2601 = vmatpush3.bf16.msra.mxu0 %v2820_v47 }
 0x1dc   : > { %2468 = vmatpush3.bf16.msra.mxu1 %v2821_v49  ;;  %2602 = vmatprep.subr.bf16.mxu0 %v3150_v0 }
 0x1dd   : > { %2469 = vmatprep.subr.bf16.mxu1 %v2822_v50 }
 0x1df   : > { %2603 = vmatpush3.bf16.msra.mxu0 %v2823_v51 }
 0x1e0   : > { %2470 = vmatpush3.bf16.msra.mxu1 %v2824_v52  ;;  %2604 = vmatprep.subr.bf16.mxu0 %v3150_v0 }
 0x1e1   : > { %2471 = vmatprep.subr.bf16.mxu1 %v2825_v53 }
 0x1e3   : > { %2605 = vmatpush3.bf16.msra.mxu0 %v2826_v54 }
 0x1e4   : > { %2472 = vmatpush3.bf16.msra.mxu1 %v2827_v56  ;;  %2606 = vmatprep.subr.bf16.mxu0 %v3150_v0 }
 0x1e5   : > { %2473 = vmatprep.subr.bf16.mxu1 %v2828_v57 }
 0x1e7   : > { %2607 = vmatpush3.bf16.msra.mxu0 %v2829_v58 }
 0x1e8   : > { %2474 = vmatpush3.bf16.msra.mxu1 %v2830_v59  ;;  %2608 = vmatprep.subr.bf16.mxu0 %v3150_v0 }
 0x1e9   : > { %2475 = vmatprep.subr.bf16.mxu1 %v2831_v61 }
 0x1eb   : > { %2609 = vmatpush3.bf16.msra.mxu0 %v2832_v62 }
 0x1ec   : > { %2476 = vmatpush3.bf16.msra.mxu1 %v2833_v63  ;;  %2610 = vmatprep.subr.bf16.mxu0 %v3150_v0 }
 0x1ed   : > { %2477 = vmatprep.subr.bf16.mxu1 %v2834_v2 }
 0x1ef   : > { %2611 = vmatpush3.bf16.msra.mxu0 %v2835_v3  ;;  %v1351_v3 = vld [vmem:[#allocation2] sm:$0xf] }
 0x1f0   : > { %2478 = vmatpush3.bf16.msra.mxu1 %v2836_v4  ;;  %2616 = vmatprep.subr.bf16.mxu0 %v3150_v0 }
 0x1f1   : > { %2479 = vmatprep.subr.bf16.mxu1 %v2837_v5 }
 0x1f4   : > { %2480 = vmatpush3.bf16.msra.mxu1 %v2841_v6 }
 0x1f5   : > { %2496 = vmatprep.subr.bf16.mxu1 %v2842_v7  ;;  %v1354_v7 = vld [vmem:[#allocation2 + $0x4] sm:$0x3] }
 0x285   : > { %v968_v8 = vpop.f32.mrb[4].mxu0 }
 0x286   : > { %v2574_v9 = vpop.f32.mrb[5].mxu0 }
 0x287   : > { %v971_v10 = vpop.f32.mrb[6].mxu0  ;;  %v2839_v9 = vld [vmem:[#allocation2 + $0x8] ss:$0 sps:$4 sm:$0x11]  }
 0x288   : > { %v2575_v11 = vpop.f32.mrb[7].mxu0 }
 0x289   : > { %v1383_v11 = vrot.slane %v2839_v9, 1 }
 0x28a   : > { %v2419_v12 = vpop.f32.mrb[0].mxu1 }
 0x28b   : > { %v2420_v14 = vpop.f32.mrb[1].mxu1 }
 0x28c   : > { %v2421_v15 = vadd.f32 %v2420_v14, %v2419_v12  ;;  %v2422_v16 = vpop.f32.mrb[2].mxu1  ;;  %v1377_v12 = vshll.u32 %v2839_v9, 16  ;;  %v2840_v14 = vld [vmem:[#allocation9 + $0x140] sm:$0xff]  }
 0x28d   : > { %v2423_v17 = vpop.f32.mrb[3].mxu1 }
 0x28e   : > { %v928_v18 = vadd.f32 %v2421_v15, %v2242_v13  ;;  %v2424_v19 = vadd.f32 %v2423_v17, %v2422_v16  ;;  %v1379_v17 = vrot.slane %v1377_v12, 1 }
 0x290   : > { %v969_v20 = vadd.f32 %v968_v8, %v928_v18  ;;  %v931_v21 = vadd.f32 %v2424_v19, %v2242_v13  ;;  %v2843_v18 = vld [vmem:[#allocation9 + $0x148] sm:$0xff]   ;;  %v2844_v19 = vld [vmem:[#allocation9 + $0xc0] sm:$0xff]  }
 0x292   : > { %v972_v22 = vadd.f32 %v971_v10, %v931_v21  ;;  %v2845_v21 = vld [vmem:[#allocation9 + $0x108] sm:$0xff]  }
 0x2a5   : > { %v1200_v23 = vpop.f32.mrb[8].mxu0 }
 0x2a6   : > { %v2594_v24 = vpop.f32.mrb[9].mxu0 }
 0x2a7   : > { %v1203_v25 = vpop.f32.mrb[10].mxu0  ;;  %v2848_v24 = vld [vmem:[#allocation9 + $0x110] sm:$0xff]  }
 0x2a8   : > { %v2595_v26 = vpop.f32.mrb[11].mxu0 }
 0x2a9   : > { %v2850_v26 = vld [vmem:[#allocation9 + $0xd0] sm:$0xff]  }
 0x2aa   : > { %v2450_v27 = vpop.f32.mrb[4].mxu1 }
 0x2ab   : > { %v2451_v29 = vpop.f32.mrb[5].mxu1 }
 0x2ac   : > { %v2452_v30 = vadd.f32 %v2451_v29, %v2450_v27  ;;  %v2453_v31 = vpop.f32.mrb[6].mxu1  ;;  %v2851_v27 = vld [vmem:[#allocation9 + $0x118] sm:$0xff]  }
 0x2ad   : > { %v2454_v32 = vpop.f32.mrb[7].mxu1  ;;  %v2853_v29 = vld [vmem:[#allocation9 + $0xd8] sm:$0xff]  }
 0x2ae   : > { %v1160_v34 = vadd.f32 %v2452_v30, %v2267_v28  ;;  %v2455_v35 = vadd.f32 %v2454_v32, %v2453_v31  ;;  %v2854_v30 = vld [vmem:[#allocation9 + $0x120] sm:$0xff]   ;;  %v2855_v31 = vld [vmem:[#allocation9 + $0x168] sm:$0xff]  }
 0x2af   : > { %v2856_v32 = vld [vmem:[#allocation9 + $0xe0] sm:$0xff]  }
 0x2b0   : > { %v1201_v36 = vadd.f32 %v1200_v23, %v1160_v34  ;;  %v1163_v37 = vadd.f32 %v2455_v35, %v2267_v28  ;;  %v2847_v23 = vld [vmem:[#allocation9 + $0xc8] sm:$0xff]   ;;  %v2852_v28 = vld [vmem:[#allocation9 + $0x160] sm:$0xff]   ;;  %v2858_v35 = vld [vmem:[#allocation9 + $0x170] sm:$0xff]  }
 0x2b1   : > { %v2857_v34 = vld [vmem:[#allocation9 + $0x128] sm:$0xff]  }
 0x2b2   : > { %v2292_v38 = vmul.f32 -1.442695, %v1201_v36  ;;  %v1204_v39 = vadd.f32 %v1203_v25, %v1163_v37  ;;  %v2849_v25 = vld [vmem:[#allocation9 + $0x158] sm:$0xff]   ;;  %v2859_v36 = vld [vmem:[#allocation9 + $0xe8] sm:$0xff]   ;;  %v2860_v37 = vld [vmem:[#allocation9 + $0x130] sm:$0xff]  }
 0x2b4   : > { %2873 = vpow2.f32 %v2292_v38  ;;  %v2293_v40 = vmul.f32 -1.442695, %v1204_v39  ;;  %v2861_v38 = vld [vmem:[#allocation9 + $0x178] sm:$0xff]   ;;  %v2862_v39 = vld [vmem:[#allocation9 + $0xf0] sm:$0xff]  }
 0x2b6   : > { %2875 = vpow2.f32 %v2293_v40  ;;  %v2863_v40 = vld [vmem:[#allocation9 + $0x138] sm:$0xff]  }
 0x2be   : > { %v2874_v41 = vpop.eup %2873 }
 0x2bf   : > { %v1213_v42 = vadd.f32 1.0, %v2874_v41  ;;  %v2864_v41 = vld [vmem:[#allocation9 + $0xf8] sm:$0xff]  }
 0x2c0   : > { %v2876_v43 = vpop.eup %2875 }
 0x2c1   : > { %2877 = vrcp.f32 %v1213_v42  ;;  %v1214_v45 = vadd.f32 1.0, %v2876_v43  ;;  %v2865_v42 = vld [vmem:[#allocation11] sm:$0xff]   ;;  %v2866_v43 = vld [vmem:[#allocation11 + $0x8] sm:$0xff]  }
 0x2c3   : > { %2879 = vrcp.f32 %v1214_v45  ;;  %v2867_v45 = vld [vmem:[#allocation11 + $0x10] sm:$0xff]  }
 0x2cb   : > { %v2878_v46 = vpop.eup %2877 }
 0x2cc   : > { %v1219_v47 = vmul.f32 %v2878_v46, %v969_v20  ;;  %v2868_v46 = vld [vmem:[#allocation11 + $0x18] sm:$0xff]  }
 0x2cd   : > { %v2880_v49 = vpop.eup %2879 }
 0x2ce   : > { %v1221_v50 = vadd.f32 %v1219_v47, %v3481_v44  ;;  %v1220_v51 = vmul.f32 %v2880_v49, %v972_v22  ;;  %v2846_v22 = vld [vmem:[#allocation9 + $0x150] sm:$0xff]   ;;  %v2869_v47 = vld [vmem:[#allocation11 + $0x20] sm:$0xff]   ;;  %v2870_v49 = vld [vmem:[#allocation11 + $0x28] sm:$0xff]  }
 0x2d0   : > { %v3548_v52 = vmul.f32 0.70710677, %v1221_v50  ;;  %v1222_v53 = vadd.f32 %v1220_v51, %v3485_v48  ;;  %v2871_v50 = vld [vmem:[#allocation11 + $0x30] sm:$0xff]   ;;  %v2872_v51 = vld [vmem:[#allocation11 + $0x38] sm:$0xff]  }
 0x2d2   : > { %v2376_v54 = vpack.c.bf16 %v3548_v52, %v3548_v52  ;;  %v3553_v56 = vmul.f32 0.70710677, %v1222_v53 }
 0x2d4   : > { %v1334_v57 = vshrl.u32 %v2376_v54, 16  ;;  %v2377_v58 = vpack.c.bf16 %v3553_v56, %v3553_v56  ;;  %v1337_v61 = vshll.u32 %v2376_v54, 16 }
 0x2d6   : > { %v1336_v59 = vrot.slane %v1334_v57, 7  ;;  %v1342_v62 = vshrl.u32 %v2377_v58, 16  ;;  %v1345_v44 = vshll.u32 %v2377_v58, 16 }
 0x2d8   : > { %v1339_v63 = vor.u32 %v1337_v61, %v1336_v59  ;;  %v1344_v2 = vrot.slane %v1342_v62, 7  ;;  %v1340_v4 = vrot.slane %v1336_v59, 4  ;;  %v2300_v61 = vld [vmem:[%s3766_s4 + $0x1] ss:$0 sm:$0xff] }
 0x2da   : > { %v1352_v48 = vsel %vm3489_vm10, %v1339_v63, %v1351_v3  ;;  %v1347_v5 = vor.u32 %v1345_v44, %v1344_v2 }
 0x2db   : > { %1353 = vst [vmem:[#allocation2] sm:$0xf] %v1352_v48 }
 0x2dc   : > { %v1348_v6 = vsel %vm3494_vm13, %v1340_v4, %v1347_v5 }
 0x2dd   : > { %v1355_v8 = vsel %vm3500_vm14, %v1348_v6, %v1354_v7 }
 0x2de   : > { %1356 = vst [vmem:[#allocation2 + $0x4] sm:$0x3] %v1355_v8 }
 0x2e5   : > { %v3563_v10 = vld [vmem:[#allocation2] sm:$0xff]  }
 0x2e6   : > { %v1382_v13 = vrot.slane %v3563_v10, 1  ;;  %v1372_v55 = vshll.u32 %v3563_v10, 16  ;;  %v1370_v60 = vshrl.u32 %v3563_v10, 16 }
 0x2e8   : > { %v1384_v15 = vsel %vm738_vm15, %v1382_v13, %v1383_v11  ;;  %v1374_v16 = vrot.slane %v1372_v55, 1  ;;  %v2325_v11 = vld [vmem:[%s3768_s6 + $0x1] ss:$0 sm:$0xff] }
 0x2e9   : > { %2613 = vmatmul.mubr.bf16.vlgmr.msra.gmra.mrb[12].mxu0 %v1384_v15 }
 0x2ea   : > { %2617 = vmatpush3.bf16.msra.mxu0 %v2840_v14  ;;  %v1375_v1 = vor.u32 %v1374_v16, %v1370_v60  ;;  %2632 = vmatprep.mubr.msk.bf16.mxu0 %vm3151_vm0, %v3150_v0 }
 0x2eb   : > { %2618 = vmatprep.subr.bf16.mxu0 %v3150_v0 }
 0x2ec   : > { %v1380_v20 = vsel %vm724_vm1, %v1375_v1, %v1379_v17 }
 0x2ed   : > { %1568 = vmatprep.mubr.bf16.mxu1 %v1380_v20 }
 0x2ee   : > { %2619 = vmatpush3.bf16.msra.mxu0 %v2843_v18  ;;  %1569 = vmatmul.mubr.bf16.vlgmr.msra.gmra.mrb[8].mxu1 %v3563_v10 }
 0x2ef   : > { %2497 = vmatpush3.bf16.msra.mxu1 %v2844_v19  ;;  %1800 = vmatprep.mubr.bf16.mxu1 %v1380_v20 }
 0x2f0   : > { %2620 = vmatprep.subr.bf16.mxu0 %v3150_v0  ;;  %2498 = vmatprep.subr.bf16.mxu1 %v2845_v21 }
 0x2f2   : > { %2621 = vmatpush3.bf16.msra.mxu0 %v2846_v22 }
 0x2f3   : > { %2499 = vmatpush3.bf16.msra.mxu1 %v2847_v23  ;;  %2622 = vmatprep.subr.bf16.mxu0 %v3150_v0 }
 0x2f4   : > { %2500 = vmatprep.subr.bf16.mxu1 %v2848_v24 }
 0x2f6   : > { %2623 = vmatpush3.bf16.msra.mxu0 %v2849_v25 }
 0x2f7   : > { %2501 = vmatpush3.bf16.msra.mxu1 %v2850_v26  ;;  %2624 = vmatprep.subr.bf16.mxu0 %v3150_v0 }
 0x2f8   : > { %2502 = vmatprep.subr.bf16.mxu1 %v2851_v27 }
 0x2fa   : > { %2625 = vmatpush3.bf16.msra.mxu0 %v2852_v28 }
 0x2fb   : > { %2503 = vmatpush3.bf16.msra.mxu1 %v2853_v29  ;;  %2626 = vmatprep.subr.bf16.mxu0 %v3150_v0 }
 0x2fc   : > { %2504 = vmatprep.subr.bf16.mxu1 %v2854_v30 }
 0x2fe   : > { %2627 = vmatpush3.bf16.msra.mxu0 %v2855_v31 }
 0x2ff   : > { %2505 = vmatpush3.bf16.msra.mxu1 %v2856_v32  ;;  %2628 = vmatprep.subr.bf16.mxu0 %v3150_v0 }
 0x300   : > { %2506 = vmatprep.subr.bf16.mxu1 %v2857_v34 }
 0x302   : > { %2629 = vmatpush3.bf16.msra.mxu0 %v2858_v35 }
 0x303   : > { %2507 = vmatpush3.bf16.msra.mxu1 %v2859_v36  ;;  %2630 = vmatprep.subr.bf16.mxu0 %v3150_v0 }
 0x304   : > { %2508 = vmatprep.subr.bf16.mxu1 %v2860_v37  ;;  %v2889_v37 = vld [vmem:[%s3439_s18] sm:$0xff] }
 0x306   : > { %2631 = vmatpush3.bf16.msra.mxu0 %v2861_v38 }
 0x307   : > { %2509 = vmatpush3.bf16.msra.mxu1 %v2862_v39 }
 0x308   : > { %2510 = vmatprep.subr.bf16.mxu1 %v2863_v40 }
 0x309   : > { %2633 = vmatmul.mubr.bf16.vlgmr.msra.gmra.mrb[16].mxu0 %v1384_v15 }
 0x30b   : > { %2511 = vmatpush3.bf16.msra.mxu1 %v2864_v41 }
 0x30c   : > { %2636 = vmatprep.subr.bf16.mxu1 %v3150_v0 }
 0x30e   : > { %1801 = vmatmul.mubr.bf16.vlgmr.msra.gmra.mrb[12].mxu1 %v3563_v10 }
 0x30f   : > { %2652 = vmatprep.mubr.msk.bf16.mxu1 %vm3151_vm0, %v3150_v0  ;;  %2637 = vmatpush3.bf16.msra.mxu1 %v2865_v42 }
 0x310   : > { %2638 = vmatprep.subr.bf16.mxu1 %v3150_v0 }
 0x313   : > { %2639 = vmatpush3.bf16.msra.mxu1 %v2866_v43 }
 0x314   : > { %2640 = vmatprep.subr.bf16.mxu1 %v3150_v0 }
 0x317   : > { %2641 = vmatpush3.bf16.msra.mxu1 %v2867_v45 }
 0x318   : > { %2642 = vmatprep.subr.bf16.mxu1 %v3150_v0 }
 0x31b   : > { %2643 = vmatpush3.bf16.msra.mxu1 %v2868_v46 }
 0x31c   : > { %2644 = vmatprep.subr.bf16.mxu1 %v3150_v0 }
 0x31f   : > { %2645 = vmatpush3.bf16.msra.mxu1 %v2869_v47 }
 0x320   : > { %2646 = vmatprep.subr.bf16.mxu1 %v3150_v0 }
 0x323   : > { %2647 = vmatpush3.bf16.msra.mxu1 %v2870_v49 }
 0x324   : > { %2648 = vmatprep.subr.bf16.mxu1 %v3150_v0 }
 0x327   : > { %2649 = vmatpush3.bf16.msra.mxu1 %v2871_v50 }
 0x328   : > { %2650 = vmatprep.subr.bf16.mxu1 %v3150_v0 }
 0x32b   : > { %2651 = vmatpush3.bf16.msra.mxu1 %v2872_v51 }
 0x3bc   : > { %v1611_v53 = vpop.f32.mrb[12].mxu0 }
 0x3bd   : > { %v2614_v54 = vpop.f32.mrb[13].mxu0 }
 0x3be   : > { %v1614_v57 = vpop.f32.mrb[14].mxu0 }
 0x3bf   : > { %v2615_v58 = vpop.f32.mrb[15].mxu0 }
 0x3c1   : > { %v2481_v59 = vpop.f32.mrb[8].mxu1 }
 0x3c2   : > { %v2482_v62 = vpop.f32.mrb[9].mxu1 }
 0x3c3   : > { %v2483_v63 = vadd.f32 %v2482_v62, %v2481_v59  ;;  %v2484_v2 = vpop.f32.mrb[10].mxu1 }
 0x3c4   : > { %v2485_v44 = vpop.f32.mrb[11].mxu1 }
 0x3c5   : > { %v1571_v3 = vadd.f32 %v2483_v63, %v2300_v61  ;;  %v2486_v4 = vadd.f32 %v2485_v44, %v2484_v2 }
 0x3c7   : > { %v1612_v48 = vadd.f32 %v1611_v53, %v1571_v3  ;;  %v1574_v5 = vadd.f32 %v2486_v4, %v2300_v61 }
 0x3c9   : > { %v1615_v6 = vadd.f32 %v1614_v57, %v1574_v5 }
 0x3dc   : > { %v1843_v0 = vpop.f32.mrb[16].mxu0 }
 0x3dd   : > { %v2634_v7 = vpop.f32.mrb[17].mxu0 }
 0x3de   : > { %v1846_v8 = vpop.f32.mrb[18].mxu0 }
 0x3df   : > { %v2635_v9 = vpop.f32.mrb[19].mxu0 }
 0x3e1   : > { %v2512_v10 = vpop.f32.mrb[12].mxu1 }
 0x3e2   : > { %v2513_v12 = vpop.f32.mrb[13].mxu1 }
 0x3e3   : > { %v2514_v13 = vadd.f32 %v2513_v12, %v2512_v10  ;;  %v2515_v14 = vpop.f32.mrb[14].mxu1 }
 0x3e4   : > { %v2516_v55 = vpop.f32.mrb[15].mxu1 }
 0x3e5   : > { %v1803_v15 = vadd.f32 %v2514_v13, %v2325_v11  ;;  %v2517_v60 = vadd.f32 %v2516_v55, %v2515_v14 }
 0x3e7   : > { %v1844_v16 = vadd.f32 %v1843_v0, %v1803_v15  ;;  %v1806_v17 = vadd.f32 %v2517_v60, %v2325_v11 }
 0x3e9   : > { %v2350_v1 = vmul.f32 -1.442695, %v1844_v16  ;;  %v1847_v18 = vadd.f32 %v1846_v8, %v1806_v17 }
 0x3eb   : > { %2881 = vpow2.f32 %v2350_v1  ;;  %v2351_v19 = vmul.f32 -1.442695, %v1847_v18 }
 0x3ed   : > { %2883 = vpow2.f32 %v2351_v19 }
 0x3f5   : > { %v2882_v20 = vpop.eup %2881 }
 0x3f6   : > { %v1856_v21 = vadd.f32 1.0, %v2882_v20 }
 0x3f7   : > { %v2884_v22 = vpop.eup %2883 }
 0x3f8   : > { %2885 = vrcp.f32 %v1856_v21  ;;  %v1857_v23 = vadd.f32 1.0, %v2884_v22 }
 0x3fa   : > { %2887 = vrcp.f32 %v1857_v23 }
 0x402   : > { %v2886_v24 = vpop.eup %2885 }
 0x403   : > { %v1862_v25 = vmul.f32 %v2886_v24, %v1612_v48 }
 0x404   : > { %v2888_v26 = vpop.eup %2887 }
 0x405   : > { %v1863_v27 = vmul.f32 %v2888_v26, %v1615_v6  ;;  %v1864_v28 = vadd.f32 %v1862_v25, %v3548_v52  ;;  %v2352_v52 = vld [vmem:[%s3770_s8] ss:$0 sm:$0xff] }
 0x407   : > { %v1865_v29 = vadd.f32 %v1863_v27, %v3553_v56  ;;  %v1866_v30 = vmul.f32 0.70710677, %v1864_v28 }
 0x409   : > { %v1867_v31 = vmul.f32 0.70710677, %v1865_v29 }
 0x40b   : > { %v1868_v32 = vpack.c.bf16 %v1867_v31, %v1866_v30 }
 0x40d   : > { %2653 = vmatmul.mubr.bf16.vlgmr.msra.gmra.mrb[16].mxu1 %v1868_v32 }
 0x4e0   : > { %v1974_v56 = vpop.f32.mrb[16].mxu1 }
 0x4e1   : > { %v1975_v34 = vadd.f32 %v2352_v52, %v1974_v56  ;;  %v2654_v35 = vpop.f32.mrb[17].mxu1 }
 0x4e2   : > { %v1977_v36 = vpop.f32.mrb[18].mxu1 }
 0x4e3   : > { %v1981_v38 = vadd.f32 %v2889_v37, %v1975_v34  ;;  %v1978_v39 = vadd.f32 %v2352_v52, %v1977_v36  ;;  %v2655_v40 = vpop.f32.mrb[19].mxu1 }
 0x4e5   : > { %v1982_v41 = vadd.f32 %v2890_v33, %v1978_v39  ;;  %v2387_v42 = vpack.c.bf16 %v1978_v39, %v1975_v34  ;;  %v1983_v43 = vmul.f32 0.70710677, %v1981_v38 }
 0x4e7   : > { %v1984_v45 = vmul.f32 0.70710677, %v1982_v41  ;;  %2388 = vst [vmem:[%s3600_s30] sm:$0xff] %v2387_v42  }
 0x4e8   : > { %3046 = shalt.err (!%p3043_p13)
}
 0x4e9   : > { %s3047_s18 = scalar_lea.hbm %s3671_s24, 1024  ;;  %s3051_s21 = scalar_lea.hbm %s3807_s29, 2048 }
 0x4ea   : > { %p3048_p9 = scmp.ne.s32.totalorder %s3671_s24, %s3047_s18  ;;  %p3052_p4 = scmp.lt.u32.totalorder %s3671_s24, %s3807_s29 }
 0x4eb   : > { %p3053_p8 = scmp.lt.u32.totalorder %s3051_s21, %s3047_s18  ;;  %p3055_p3 = scmp.lt.u32.totalorder %s3047_s18, %s3671_s24 }
 0x4ec   : > { %p3049_p0 = pnand %p3048_p9, %p3383_p10 }
 0x4ed   : > { %p3054_p6 = por %p3053_p8, %p3052_p4 }
 0x4ee   : > { %p3050_p11 = pneg %p3049_p0 }
 0x4ef   : > { %p3056_p5 = por %p3055_p3, %p3054_p6 }
 0x4f1   : > { %p3057_p7 = pnand %p3056_p5, %p3050_p11 }
 0x4f3   : > { %3060 = shalt.err (!%p3057_p7)
}
 0x4f4   : > { %s3154_s19 = smov 64   ;;  %s3155_s26 = smov 4   ;;  %v2392_v46 = vpack.c.bf16 %v1984_v45, %v1983_v43 }
 0x4f5   : > { %2674 = dma.vmem_to_hbm [thread:$0]  (%p3383_p10), %s3673_s23, 1024, %s3671_s24, %s2034_s10, %s3154_s19, %s3154_s19, %s3155_s26  }
 0x4f6   : > { %s3808_s30 = sld [smem:[#allocation24_spill]]  ;;  %s3809_s21 = sshll.u32 %s3630_s11, 4  ;;  %2393 = vst [vmem:[%s3630_s11] sm:$0xff] %v2392_v46   ;;  %s3714_s21 = int_to_ptr.vmem [resolvable:$true] %s3809_s21 }
 0x4f7   : > { %s2039_s28 = scalar_lea.sflag [#allocation14], %s3435_s25  ;;  %s3061_s0 = scalar_lea.vmem %s3714_s21, 1024 }
 0x4f8   : > { %p3062_p12 = scmp.ne.s32.totalorder %s3714_s21, %s3061_s0  ;;  %s3156_s23 = smov [#allocation13]  }
 0x4f9   : > { %s3065_s17 = sshll.u32 %s3156_s23, 4  ;;  %s3066_s17 = int_to_ptr.vmem [resolvable:$false] %s3065_s17 }
 0x4fa   : > { %p3063_p1 = pnand %p3062_p12, %p3383_p10  ;;  %s3067_s24 = scalar_lea.vmem %s3066_s17, 2048 }
 0x4fb   : > { %p3068_p13 = scmp.lt.s32.totalorder %s3714_s21, %s3066_s17  ;;  %p3069_p9 = scmp.lt.s32.totalorder %s3067_s24, %s3061_s0 }
 0x4fc   : > { %s3710_s13 = scalar_lea.hbm %s3808_s30, %s2382_s27  ;;  %p3064_p2 = pneg %p3063_p1 }
 0x4fd   : > { %p3070_p0 = por %p3069_p9, %p3068_p13 }
 0x4ff   : > { %p3071_p11 = pnand %p3070_p0, %p3064_p2 }
 0x501   : > { %3074 = shalt.err (!%p3071_p11)
}
 0x502   : > { %s3075_s11 = scalar_lea.hbm %s3710_s13, 1024  ;;  %s3079_s9 = scalar_lea.hbm %s3808_s30, 2048 }
 0x503   : > { %p3076_p4 = scmp.ne.s32.totalorder %s3710_s13, %s3075_s11  ;;  %p3080_p3 = scmp.lt.u32.totalorder %s3710_s13, %s3808_s30 }
 0x504   : > { %p3081_p5 = scmp.lt.u32.totalorder %s3079_s9, %s3075_s11  ;;  %p3083_p12 = scmp.lt.u32.totalorder %s3075_s11, %s3710_s13 }
 0x505   : > { %p3077_p8 = pnand %p3076_p4, %p3383_p10 }
 0x506   : > { %p3082_p7 = por %p3081_p5, %p3080_p3 }
 0x507   : > { %p3078_p6 = pneg %p3077_p8 }
 0x508   : > { %p3084_p1 = por %p3083_p12, %p3082_p7 }
 0x50a   : > { %p3085_p2 = pnand %p3084_p1, %p3078_p6 }
 0x50c   : > { %3088 = shalt.err (!%p3085_p2)
}
 0x50d   : > { %2675 = dma.vmem_to_hbm [thread:$0]  (%p3383_p10), %s3714_s21, 1024, %s3710_s13, %s2039_s28, %s3154_s19, %s3154_s19, %s3155_s26  }
 0x50e PF: > { %s3810_s0 = sld [smem:[#allocation20_spill]]  ;;  %s3811_s17 = sld [smem:[#allocation21_spill]] }
 0x50f   : > { %p3813_p9 = scmp.ge.s32.totalorder %s3139_s16, 2 }
 0x514   : > { %s2083_s24 = sand.u32 1, %s3810_s0   ;;  %p3812_p13 = scmp.ne.s32.totalorder %s3811_s17, 0 }
 0x515   : > { %s2084_s11 = scalar_lea.sflag [#allocation5], %s2083_s24 }
 0x516   : > { %p2696_p0 = pnand %p3813_p9, %p3812_p13 }
 0x518   : > { %3118 = dma.done.wait (!%p2696_p0), %s2084_s11, 1024  }
 0x519   : > { %3120 = vsyncadd (!%p2696_p0), %s2084_s11, 4294966272  ;;  %s2093_s20 = scalar_lea.sflag [#allocation14], %s2083_s24 }
 0x51a   : > { %3122 = dma.done.wait (!%p2696_p0), %s2093_s20, 1024  }
 0x51b   : > { %3124 = vsyncadd (!%p2696_p0), %s2093_s20, 4294966272  ;;  %p29_p10 = scmp.ge.s32.totalorder %s3373_s22, 4   ;;  %s3814_s13 = smov %s3131_s14 }
 0x51c   : > { %s3815_s14 = smov %s3135_s15  ;;  %s3816_s15 = smov %s3389_s12 }
 0x51d   : > { %s3817_s16 = smov %s3373_s22  ;;  %31 = sbr.rel (!%p29_p10) target bundleno = 13 (0xd), region = 138 }
 0x524   :  { %2098 = vsyncpa [#allocation4], 1 }
 0x525   :  { %2100 = vsyncpa [#allocation4 + $0x1], 1 }
 0x526   :  { %2101 = vsyncpa [#allocation7], 1 }
 0x527   :  { %2102 = vsyncpa [#allocation10], 1 }
 0x528   :  { %2103 = vsyncpa [#allocation5], 1 }
 0x529   :  { %2105 = vsyncpa [#allocation5 + $0x1], 1 }
 0x52a   :  { %2106 = vsyncpa [#allocation14], 1 }
 0x52b   :  { %2108 = vsyncpa [#allocation14 + $0x1], 1 }

</bundles_post_ra>
